<compile_context>
chip_gen: v5e
topology: v5e:2x2
jax: 0.10.0
libtpu: 0.0.40
codegen_flags: <defaults>
</compile_context>

<pallas_src>
import functools

import jax
import jax.numpy as jnp
from jax.experimental import pallas as pl
from jax.experimental.pallas import tpu as pltpu

F_IN = 8      # LSTM input size
H = 8         # LSTM hidden size
G = 4 * H     # packed gate width


def _relu6(v):
    return jnp.minimum(jnp.maximum(v, 0.0), 6.0)


def _temp_layer_g_kernel(x_ref,       # (F, N)        columns ordered k = t*B + b
                         lstm_ref,    # (4H, F+H+1)   W_ih | W_hh | bias  (gate order i,f,o,g)
                         head_ref,    # (H, 2H+4)     W1 | W2 | b1 | b2 | W3^T | b3
                         o_ref,       # (1, N)        lane-dense output
                         h_all,       # VMEM scratch (H, N)
                         *, T, B):
    # ---------------- unpack the two parameter slabs (one load each) ----------------
    lstm = lstm_ref[...]
    wih = lstm[:, 0:F_IN]                       # (4H, F)
    whh = lstm[:, F_IN:F_IN + H]                # (4H, H)
    bias = lstm[:, F_IN + H:F_IN + H + 1]       # (4H, 1)  == b_ih + b_hh (folded on host)

    # ---- hoisted input-side projection: ONE MXU matmul over all N = T*B columns ----
    gx = jnp.dot(wih, x_ref[...], preferred_element_type=jnp.float32) + bias   # (4H, N)

    # Lane-broadcast W_hh's H columns to (4H, B) ONCE (hoisted out of the loop).
    whh_cols = [jnp.broadcast_to(whh[:, j:j + 1], (G, B)) for j in range(H)]

    # ---------------- LSTM recurrence (zero init state), fully unrolled ----------------
    # Gate order is i | f | o | g: rows [0,3H) take ONE sigmoid, rows [3H,4H) ONE tanh
    # per step.  The recurrent term is H VPU broadcast-FMAs (sublane-broadcast h[j] *
    # pre-broadcast whh column j) — no MXU dot on the serial critical path.
    h = jnp.zeros((H, B), jnp.float32)
    c = jnp.zeros((H, B), jnp.float32)
    for t in range(T):
        rec = gx[:, t * B:(t + 1) * B]                        # (4H, B), static slice
        if t > 0:
            for j in range(H):
                rec = rec + whh_cols[j] * h[j:j + 1, :]       # VPU FMA, sublane-bcast row j
        sig = jax.nn.sigmoid(rec[0:3 * H, :])                 # (3H, B): i | f | o
        g_g = jnp.tanh(rec[3 * H:4 * H, :])                   # (H, B)
        i_g = sig[0 * H:1 * H, :]
        f_g = sig[1 * H:2 * H, :]
        o_g = sig[2 * H:3 * H, :]
        c = i_g * g_g if t == 0 else f_g * c + i_g * g_g
        h = o_g * jnp.tanh(c)
        h_all[:, t * B:(t + 1) * B] = h                       # static-offset store, off h/c chain

    # ---------------- lane-dense transposed MLP head over all N columns ----------------
    head = head_ref[...]
    w1 = head[:, 0:H]                                         # (H, H)
    w2 = head[:, H:2 * H]                                     # (H, H)
    b1 = head[:, 2 * H:2 * H + 1]                             # (H, 1)
    b2 = head[:, 2 * H + 1:2 * H + 2]                         # (H, 1)
    w3c = head[:, 2 * H + 2:2 * H + 3]                        # (H, 1) == dense3.weight^T
    b3 = head[0:1, 2 * H + 3:2 * H + 4]                       # (1, 1)

    a = _relu6(h_all[...])                                                       # (H, N)
    a = _relu6(jnp.dot(w1, a, preferred_element_type=jnp.float32) + b1)          # (H, N)
    a = _relu6(jnp.dot(w2, a, preferred_element_type=jnp.float32) + b2)          # (H, N)
    a = _relu6(jnp.sum(w3c * a, axis=0, keepdims=True) + b3)                     # (1, N)

    # Softmax over the module's dim=2 — a size-1 axis — is identically 1.0 for the
    # finite (ReLU6-bounded) activations: exp(a - max) = exp(0) = 1 and the sum over
    # the single element is that same value.  Emitted as (a - a) + 1 to keep the exact
    # value and the data dependence while skipping the pointless exp + divide.
    o_ref[...] = (a - a) + 1.0


def init_params(key):
    """Deterministic init matching the PyTorch module's parameter shapes.

    Tensors are kept in PyTorch-native (out, in) orientation and gate order
    (i, f, g, o); biases are stored as columns.  All kernel-side repacking
    (gate reorder, bias fold, slab concat) happens in the wrapper.
    """
    ks = jax.random.split(key, 10)
    bound = 1.0 / jnp.sqrt(jnp.float32(H))
    u = lambda k, shape: jax.random.uniform(k, shape, jnp.float32, -bound, bound)
    return {
        "wih": u(ks[0], (G, F_IN)),    # weight_ih_l0 (4H, F), gate order i,f,g,o
        "whh": u(ks[1], (G, H)),       # weight_hh_l0 (4H, H)
        "bih": u(ks[2], (G, 1)),       # bias_ih_l0 as a column
        "bhh": u(ks[3], (G, 1)),       # bias_hh_l0 as a column
        "w1":  u(ks[4], (H, H)), "b1": u(ks[5], (H, 1)),
        "w2":  u(ks[6], (H, H)), "b2": u(ks[7], (H, 1)),
        "w3":  u(ks[8], (1, H)), "b3": u(ks[9], (1, 1)),
    }


@jax.jit
def temp_layer_g_forward(x, params):
    """x: (B, T, 8) float32  ->  (B, T, 1) float32."""
    B, T, F = x.shape
    N = T * B

    # Wrapper-side layout plumbing (tiny, one-time):
    #   activations: (B, T, F) -> (F, N), column k = t*B + b (batch on lanes).
    x_fn = jnp.transpose(x.astype(jnp.float32), (2, 1, 0)).reshape(F, N)

    #   LSTM params: gate reorder i,f,g,o -> i,f,o,g, fold the two biases, and pack
    #   W_ih | W_hh | bias into one slab -> one input DMA.
    perm = jnp.concatenate(
        [jnp.arange(0, 2 * H), jnp.arange(3 * H, 4 * H), jnp.arange(2 * H, 3 * H)])
    lstm_slab = jnp.concatenate(
        [params["wih"][perm], params["whh"][perm],
         (params["bih"] + params["bhh"])[perm]], axis=1)                   # (4H, F+H+1)

    #   MLP-head params: W1 | W2 | b1 | b2 | W3^T | b3 in one slab -> one DMA.
    head_slab = jnp.concatenate(
        [params["w1"], params["w2"], params["b1"], params["b2"],
         params["w3"].T, jnp.broadcast_to(params["b3"], (H, 1))], axis=1)  # (H, 2H+4)

    vmem = pl.BlockSpec(memory_space=pltpu.MemorySpace.VMEM)
    kernel = functools.partial(_temp_layer_g_kernel, T=T, B=B)

    out = pl.pallas_call(
        kernel,
        out_shape=jax.ShapeDtypeStruct((1, N), jnp.float32),   # lane-dense, long axis last
        in_specs=[vmem, vmem, vmem],
        out_specs=vmem,
        scratch_shapes=[pltpu.VMEM((H, N), jnp.float32)],
    )(x_fn, lstm_slab, head_slab)

    # (1, N) -> (T, B) -> (B, T, 1)
    return jnp.transpose(out.reshape(T, B), (1, 0))[..., None]


def reference_forward(x, p):
    """Pure-JAX reference of the PyTorch forward (eval mode), batch-major layout."""
    B, T, F = x.shape
    bias = (p["bih"] + p["bhh"]).T                        # (1, 4H)

    def step(carry, x_t):
        h, c = carry
        gates = x_t @ p["wih"].T + h @ p["whh"].T + bias  # (B, 4H), gate order i,f,g,o
        i = jax.nn.sigmoid(gates[:, 0 * H:1 * H])
        f = jax.nn.sigmoid(gates[:, 1 * H:2 * H])
        g = jnp.tanh(gates[:, 2 * H:3 * H])
        o = jax.nn.sigmoid(gates[:, 3 * H:4 * H])
        c = f * c + i * g
        h = o * jnp.tanh(c)
        return (h, c), h

    init = (jnp.zeros((B, H), jnp.float32), jnp.zeros((B, H), jnp.float32))
    _, hs = jax.lax.scan(step, init, jnp.transpose(x, (1, 0, 2)))
    y = _relu6(jnp.transpose(hs, (1, 0, 2)))              # (B, T, H)
    y = _relu6(y @ p["w1"].T + p["b1"].T)
    y = _relu6(y @ p["w2"].T + p["b2"].T)
    y = _relu6(y @ p["w3"].T + p["b3"].T)                 # (B, T, 1)
    return jax.nn.softmax(y, axis=2)


if __name__ == "__main__":
    key = jax.random.PRNGKey(0)
    k_param, k_x = jax.random.split(key)

    B, T = 2, 8
    x = jax.random.normal(k_x, (B, T, F_IN), jnp.float32)
    params = init_params(k_param)

    out = jax.block_until_ready(temp_layer_g_forward(x, params))
    ref = reference_forward(x, params)

    assert out.shape == (B, T, 1), out.shape
    assert jnp.allclose(out, ref, atol=1e-5, rtol=1e-5), (out, ref)

    print("KERNEL_OK")
</pallas_src>

<mosaic_0001>
module attributes {stable_mosaic.version = 11 : i64} {
  func.func @_temp_layer_g_kernel(%arg0: memref<8x16xf32, #tpu.memory_space<vmem>>, %arg1: memref<32x17xf32, #tpu.memory_space<vmem>>, %arg2: memref<8x20xf32, #tpu.memory_space<vmem>>, %arg3: memref<1x16xf32, #tpu.memory_space<vmem>>, %arg4: memref<8x16xf32, #tpu.memory_space<vmem>>) attributes {dimension_semantics = [], scalar_prefetch = 0 : i64, scratch_operands = 1 : i64, tpu.core_type = #tpu.core_type<tc>} {
    %c0 = arith.constant 0 : index
    %c0_0 = arith.constant 0 : index
    %0 = vector.load %arg1[%c0, %c0_0] : memref<32x17xf32, #tpu.memory_space<vmem>>, vector<32x17xf32>
    %1 = vector.extract_strided_slice %0 {offsets = [0, 0], sizes = [32, 8], strides = [1, 1]} : vector<32x17xf32> to vector<32x8xf32>
    %2 = vector.extract_strided_slice %0 {offsets = [0, 8], sizes = [32, 8], strides = [1, 1]} : vector<32x17xf32> to vector<32x8xf32>
    %3 = vector.extract_strided_slice %0 {offsets = [0, 16], sizes = [32, 1], strides = [1, 1]} : vector<32x17xf32> to vector<32x1xf32>
    %c0_1 = arith.constant 0 : index
    %c0_2 = arith.constant 0 : index
    %4 = vector.load %arg0[%c0_1, %c0_2] : memref<8x16xf32, #tpu.memory_space<vmem>>, vector<8x16xf32>
    %cst = arith.constant dense<0.000000e+00> : vector<32x16xf32>
    %5 = tpu.matmul %1, %4, %cst {dimension_numbers = #tpu.dot_dimension_numbers<[1], [0], [0], [1], [0, 0, 1, 1], [], []>} : vector<32x8xf32>, vector<8x16xf32>, vector<32x16xf32> -> vector<32x16xf32>
    %6 = vector.broadcast %3 : vector<32x1xf32> to vector<32x16xf32>
    %7 = arith.addf %5, %6 : vector<32x16xf32>
    %8 = vector.extract_strided_slice %2 {offsets = [0, 0], sizes = [32, 1], strides = [1, 1]} : vector<32x8xf32> to vector<32x1xf32>
    %9 = vector.shape_cast %8 : vector<32x1xf32> to vector<32x1xf32>
    %10 = vector.broadcast %9 : vector<32x1xf32> to vector<32x2xf32>
    %11 = vector.extract_strided_slice %2 {offsets = [0, 1], sizes = [32, 1], strides = [1, 1]} : vector<32x8xf32> to vector<32x1xf32>
    %12 = vector.shape_cast %11 : vector<32x1xf32> to vector<32x1xf32>
    %13 = vector.broadcast %12 : vector<32x1xf32> to vector<32x2xf32>
    %14 = vector.extract_strided_slice %2 {offsets = [0, 2], sizes = [32, 1], strides = [1, 1]} : vector<32x8xf32> to vector<32x1xf32>
    %15 = vector.shape_cast %14 : vector<32x1xf32> to vector<32x1xf32>
    %16 = vector.broadcast %15 : vector<32x1xf32> to vector<32x2xf32>
    %17 = vector.extract_strided_slice %2 {offsets = [0, 3], sizes = [32, 1], strides = [1, 1]} : vector<32x8xf32> to vector<32x1xf32>
    %18 = vector.shape_cast %17 : vector<32x1xf32> to vector<32x1xf32>
    %19 = vector.broadcast %18 : vector<32x1xf32> to vector<32x2xf32>
    %20 = vector.extract_strided_slice %2 {offsets = [0, 4], sizes = [32, 1], strides = [1, 1]} : vector<32x8xf32> to vector<32x1xf32>
    %21 = vector.shape_cast %20 : vector<32x1xf32> to vector<32x1xf32>
    %22 = vector.broadcast %21 : vector<32x1xf32> to vector<32x2xf32>
    %23 = vector.extract_strided_slice %2 {offsets = [0, 5], sizes = [32, 1], strides = [1, 1]} : vector<32x8xf32> to vector<32x1xf32>
    %24 = vector.shape_cast %23 : vector<32x1xf32> to vector<32x1xf32>
    %25 = vector.broadcast %24 : vector<32x1xf32> to vector<32x2xf32>
    %26 = vector.extract_strided_slice %2 {offsets = [0, 6], sizes = [32, 1], strides = [1, 1]} : vector<32x8xf32> to vector<32x1xf32>
    %27 = vector.shape_cast %26 : vector<32x1xf32> to vector<32x1xf32>
    %28 = vector.broadcast %27 : vector<32x1xf32> to vector<32x2xf32>
    %29 = vector.extract_strided_slice %2 {offsets = [0, 7], sizes = [32, 1], strides = [1, 1]} : vector<32x8xf32> to vector<32x1xf32>
    %30 = vector.shape_cast %29 : vector<32x1xf32> to vector<32x1xf32>
    %31 = vector.broadcast %30 : vector<32x1xf32> to vector<32x2xf32>
    %32 = vector.extract_strided_slice %7 {offsets = [0, 0], sizes = [32, 2], strides = [1, 1]} : vector<32x16xf32> to vector<32x2xf32>
    %33 = vector.extract_strided_slice %32 {offsets = [0, 0], sizes = [24, 2], strides = [1, 1]} : vector<32x2xf32> to vector<24x2xf32>
    %34 = arith.negf %33 : vector<24x2xf32>
    %35 = math.exp %34 : vector<24x2xf32>
    %cst_3 = arith.constant 1.000000e+00 : f32
    %36 = vector.broadcast %cst_3 : f32 to vector<24x2xf32>
    %37 = arith.addf %36, %35 : vector<24x2xf32>
    %38 = arith.divf %36, %37 : vector<24x2xf32>
    %39 = vector.extract_strided_slice %32 {offsets = [24, 0], sizes = [8, 2], strides = [1, 1]} : vector<32x2xf32> to vector<8x2xf32>
    %40 = math.tanh %39 : vector<8x2xf32>
    %41 = vector.extract_strided_slice %38 {offsets = [0, 0], sizes = [8, 2], strides = [1, 1]} : vector<24x2xf32> to vector<8x2xf32>
    %42 = vector.extract_strided_slice %38 {offsets = [16, 0], sizes = [8, 2], strides = [1, 1]} : vector<24x2xf32> to vector<8x2xf32>
    %43 = arith.mulf %41, %40 : vector<8x2xf32>
    %44 = math.tanh %43 : vector<8x2xf32>
    %45 = arith.mulf %42, %44 : vector<8x2xf32>
    %c0_4 = arith.constant 0 : index
    %c0_5 = arith.constant 0 : index
    %46 = vector.load %arg4[%c0_4, %c0_5] : memref<8x16xf32, #tpu.memory_space<vmem>>, vector<8x2xf32>
    tpu.vector_store %arg4[%c0_4, %c0_5], %45 {strides = array<i32>} : memref<8x16xf32, #tpu.memory_space<vmem>>, vector<8x2xf32>,
    %47 = vector.extract_strided_slice %7 {offsets = [0, 2], sizes = [32, 2], strides = [1, 1]} : vector<32x16xf32> to vector<32x2xf32>
    %48 = vector.extract_strided_slice %45 {offsets = [0, 0], sizes = [1, 2], strides = [1, 1]} : vector<8x2xf32> to vector<1x2xf32>
    %49 = vector.broadcast %48 : vector<1x2xf32> to vector<32x2xf32>
    %50 = arith.mulf %10, %49 : vector<32x2xf32>
    %51 = arith.addf %47, %50 : vector<32x2xf32>
    %52 = vector.extract_strided_slice %45 {offsets = [1, 0], sizes = [1, 2], strides = [1, 1]} : vector<8x2xf32> to vector<1x2xf32>
    %53 = vector.broadcast %52 : vector<1x2xf32> to vector<32x2xf32>
    %54 = arith.mulf %13, %53 : vector<32x2xf32>
    %55 = arith.addf %51, %54 : vector<32x2xf32>
    %56 = vector.extract_strided_slice %45 {offsets = [2, 0], sizes = [1, 2], strides = [1, 1]} : vector<8x2xf32> to vector<1x2xf32>
    %57 = vector.broadcast %56 : vector<1x2xf32> to vector<32x2xf32>
    %58 = arith.mulf %16, %57 : vector<32x2xf32>
    %59 = arith.addf %55, %58 : vector<32x2xf32>
    %60 = vector.extract_strided_slice %45 {offsets = [3, 0], sizes = [1, 2], strides = [1, 1]} : vector<8x2xf32> to vector<1x2xf32>
    %61 = vector.broadcast %60 : vector<1x2xf32> to vector<32x2xf32>
    %62 = arith.mulf %19, %61 : vector<32x2xf32>
    %63 = arith.addf %59, %62 : vector<32x2xf32>
    %64 = vector.extract_strided_slice %45 {offsets = [4, 0], sizes = [1, 2], strides = [1, 1]} : vector<8x2xf32> to vector<1x2xf32>
    %65 = vector.broadcast %64 : vector<1x2xf32> to vector<32x2xf32>
    %66 = arith.mulf %22, %65 : vector<32x2xf32>
    %67 = arith.addf %63, %66 : vector<32x2xf32>
    %68 = vector.extract_strided_slice %45 {offsets = [5, 0], sizes = [1, 2], strides = [1, 1]} : vector<8x2xf32> to vector<1x2xf32>
    %69 = vector.broadcast %68 : vector<1x2xf32> to vector<32x2xf32>
    %70 = arith.mulf %25, %69 : vector<32x2xf32>
    %71 = arith.addf %67, %70 : vector<32x2xf32>
    %72 = vector.extract_strided_slice %45 {offsets = [6, 0], sizes = [1, 2], strides = [1, 1]} : vector<8x2xf32> to vector<1x2xf32>
    %73 = vector.broadcast %72 : vector<1x2xf32> to vector<32x2xf32>
    %74 = arith.mulf %28, %73 : vector<32x2xf32>
    %75 = arith.addf %71, %74 : vector<32x2xf32>
    %76 = vector.extract_strided_slice %45 {offsets = [7, 0], sizes = [1, 2], strides = [1, 1]} : vector<8x2xf32> to vector<1x2xf32>
    %77 = vector.broadcast %76 : vector<1x2xf32> to vector<32x2xf32>
    %78 = arith.mulf %31, %77 : vector<32x2xf32>
    %79 = arith.addf %75, %78 : vector<32x2xf32>
    %80 = vector.extract_strided_slice %79 {offsets = [0, 0], sizes = [24, 2], strides = [1, 1]} : vector<32x2xf32> to vector<24x2xf32>
    %81 = arith.negf %80 : vector<24x2xf32>
    %82 = math.exp %81 : vector<24x2xf32>
    %cst_6 = arith.constant 1.000000e+00 : f32
    %83 = vector.broadcast %cst_6 : f32 to vector<24x2xf32>
    %84 = arith.addf %83, %82 : vector<24x2xf32>
    %85 = arith.divf %83, %84 : vector<24x2xf32>
    %86 = vector.extract_strided_slice %79 {offsets = [24, 0], sizes = [8, 2], strides = [1, 1]} : vector<32x2xf32> to vector<8x2xf32>
    %87 = math.tanh %86 : vector<8x2xf32>
    %88 = vector.extract_strided_slice %85 {offsets = [0, 0], sizes = [8, 2], strides = [1, 1]} : vector<24x2xf32> to vector<8x2xf32>
    %89 = vector.extract_strided_slice %85 {offsets = [8, 0], sizes = [8, 2], strides = [1, 1]} : vector<24x2xf32> to vector<8x2xf32>
    %90 = vector.extract_strided_slice %85 {offsets = [16, 0], sizes = [8, 2], strides = [1, 1]} : vector<24x2xf32> to vector<8x2xf32>
    %91 = arith.mulf %89, %43 : vector<8x2xf32>
    %92 = arith.mulf %88, %87 : vector<8x2xf32>
    %93 = arith.addf %91, %92 : vector<8x2xf32>
    %94 = math.tanh %93 : vector<8x2xf32>
    %95 = arith.mulf %90, %94 : vector<8x2xf32>
    %c0_7 = arith.constant 0 : index
    %c2 = arith.constant 2 : index
    %96 = vector.load %arg4[%c0_7, %c2] : memref<8x16xf32, #tpu.memory_space<vmem>>, vector<8x2xf32>
    tpu.vector_store %arg4[%c0_7, %c2], %95 {strides = array<i32>} : memref<8x16xf32, #tpu.memory_space<vmem>>, vector<8x2xf32>,
    %97 = vector.extract_strided_slice %7 {offsets = [0, 4], sizes = [32, 2], strides = [1, 1]} : vector<32x16xf32> to vector<32x2xf32>
    %98 = vector.extract_strided_slice %95 {offsets = [0, 0], sizes = [1, 2], strides = [1, 1]} : vector<8x2xf32> to vector<1x2xf32>
    %99 = vector.broadcast %98 : vector<1x2xf32> to vector<32x2xf32>
    %100 = arith.mulf %10, %99 : vector<32x2xf32>
    %101 = arith.addf %97, %100 : vector<32x2xf32>
    %102 = vector.extract_strided_slice %95 {offsets = [1, 0], sizes = [1, 2], strides = [1, 1]} : vector<8x2xf32> to vector<1x2xf32>
    %103 = vector.broadcast %102 : vector<1x2xf32> to vector<32x2xf32>
    %104 = arith.mulf %13, %103 : vector<32x2xf32>
    %105 = arith.addf %101, %104 : vector<32x2xf32>
    %106 = vector.extract_strided_slice %95 {offsets = [2, 0], sizes = [1, 2], strides = [1, 1]} : vector<8x2xf32> to vector<1x2xf32>
    %107 = vector.broadcast %106 : vector<1x2xf32> to vector<32x2xf32>
    %108 = arith.mulf %16, %107 : vector<32x2xf32>
    %109 = arith.addf %105, %108 : vector<32x2xf32>
    %110 = vector.extract_strided_slice %95 {offsets = [3, 0], sizes = [1, 2], strides = [1, 1]} : vector<8x2xf32> to vector<1x2xf32>
    %111 = vector.broadcast %110 : vector<1x2xf32> to vector<32x2xf32>
    %112 = arith.mulf %19, %111 : vector<32x2xf32>
    %113 = arith.addf %109, %112 : vector<32x2xf32>
    %114 = vector.extract_strided_slice %95 {offsets = [4, 0], sizes = [1, 2], strides = [1, 1]} : vector<8x2xf32> to vector<1x2xf32>
    %115 = vector.broadcast %114 : vector<1x2xf32> to vector<32x2xf32>
    %116 = arith.mulf %22, %115 : vector<32x2xf32>
    %117 = arith.addf %113, %116 : vector<32x2xf32>
    %118 = vector.extract_strided_slice %95 {offsets = [5, 0], sizes = [1, 2], strides = [1, 1]} : vector<8x2xf32> to vector<1x2xf32>
    %119 = vector.broadcast %118 : vector<1x2xf32> to vector<32x2xf32>
    %120 = arith.mulf %25, %119 : vector<32x2xf32>
    %121 = arith.addf %117, %120 : vector<32x2xf32>
    %122 = vector.extract_strided_slice %95 {offsets = [6, 0], sizes = [1, 2], strides = [1, 1]} : vector<8x2xf32> to vector<1x2xf32>
    %123 = vector.broadcast %122 : vector<1x2xf32> to vector<32x2xf32>
    %124 = arith.mulf %28, %123 : vector<32x2xf32>
    %125 = arith.addf %121, %124 : vector<32x2xf32>
    %126 = vector.extract_strided_slice %95 {offsets = [7, 0], sizes = [1, 2], strides = [1, 1]} : vector<8x2xf32> to vector<1x2xf32>
    %127 = vector.broadcast %126 : vector<1x2xf32> to vector<32x2xf32>
    %128 = arith.mulf %31, %127 : vector<32x2xf32>
    %129 = arith.addf %125, %128 : vector<32x2xf32>
    %130 = vector.extract_strided_slice %129 {offsets = [0, 0], sizes = [24, 2], strides = [1, 1]} : vector<32x2xf32> to vector<24x2xf32>
    %131 = arith.negf %130 : vector<24x2xf32>
    %132 = math.exp %131 : vector<24x2xf32>
    %cst_8 = arith.constant 1.000000e+00 : f32
    %133 = vector.broadcast %cst_8 : f32 to vector<24x2xf32>
    %134 = arith.addf %133, %132 : vector<24x2xf32>
    %135 = arith.divf %133, %134 : vector<24x2xf32>
    %136 = vector.extract_strided_slice %129 {offsets = [24, 0], sizes = [8, 2], strides = [1, 1]} : vector<32x2xf32> to vector<8x2xf32>
    %137 = math.tanh %136 : vector<8x2xf32>
    %138 = vector.extract_strided_slice %135 {offsets = [0, 0], sizes = [8, 2], strides = [1, 1]} : vector<24x2xf32> to vector<8x2xf32>
    %139 = vector.extract_strided_slice %135 {offsets = [8, 0], sizes = [8, 2], strides = [1, 1]} : vector<24x2xf32> to vector<8x2xf32>
    %140 = vector.extract_strided_slice %135 {offsets = [16, 0], sizes = [8, 2], strides = [1, 1]} : vector<24x2xf32> to vector<8x2xf32>
    %141 = arith.mulf %139, %93 : vector<8x2xf32>
    %142 = arith.mulf %138, %137 : vector<8x2xf32>
    %143 = arith.addf %141, %142 : vector<8x2xf32>
    %144 = math.tanh %143 : vector<8x2xf32>
    %145 = arith.mulf %140, %144 : vector<8x2xf32>
    %c0_9 = arith.constant 0 : index
    %c4 = arith.constant 4 : index
    %146 = vector.load %arg4[%c0_9, %c4] : memref<8x16xf32, #tpu.memory_space<vmem>>, vector<8x2xf32>
    tpu.vector_store %arg4[%c0_9, %c4], %145 {strides = array<i32>} : memref<8x16xf32, #tpu.memory_space<vmem>>, vector<8x2xf32>,
    %147 = vector.extract_strided_slice %7 {offsets = [0, 6], sizes = [32, 2], strides = [1, 1]} : vector<32x16xf32> to vector<32x2xf32>
    %148 = vector.extract_strided_slice %145 {offsets = [0, 0], sizes = [1, 2], strides = [1, 1]} : vector<8x2xf32> to vector<1x2xf32>
    %149 = vector.broadcast %148 : vector<1x2xf32> to vector<32x2xf32>
    %150 = arith.mulf %10, %149 : vector<32x2xf32>
    %151 = arith.addf %147, %150 : vector<32x2xf32>
    %152 = vector.extract_strided_slice %145 {offsets = [1, 0], sizes = [1, 2], strides = [1, 1]} : vector<8x2xf32> to vector<1x2xf32>
    %153 = vector.broadcast %152 : vector<1x2xf32> to vector<32x2xf32>
    %154 = arith.mulf %13, %153 : vector<32x2xf32>
    %155 = arith.addf %151, %154 : vector<32x2xf32>
    %156 = vector.extract_strided_slice %145 {offsets = [2, 0], sizes = [1, 2], strides = [1, 1]} : vector<8x2xf32> to vector<1x2xf32>
    %157 = vector.broadcast %156 : vector<1x2xf32> to vector<32x2xf32>
    %158 = arith.mulf %16, %157 : vector<32x2xf32>
    %159 = arith.addf %155, %158 : vector<32x2xf32>
    %160 = vector.extract_strided_slice %145 {offsets = [3, 0], sizes = [1, 2], strides = [1, 1]} : vector<8x2xf32> to vector<1x2xf32>
    %161 = vector.broadcast %160 : vector<1x2xf32> to vector<32x2xf32>
    %162 = arith.mulf %19, %161 : vector<32x2xf32>
    %163 = arith.addf %159, %162 : vector<32x2xf32>
    %164 = vector.extract_strided_slice %145 {offsets = [4, 0], sizes = [1, 2], strides = [1, 1]} : vector<8x2xf32> to vector<1x2xf32>
    %165 = vector.broadcast %164 : vector<1x2xf32> to vector<32x2xf32>
    %166 = arith.mulf %22, %165 : vector<32x2xf32>
    %167 = arith.addf %163, %166 : vector<32x2xf32>
    %168 = vector.extract_strided_slice %145 {offsets = [5, 0], sizes = [1, 2], strides = [1, 1]} : vector<8x2xf32> to vector<1x2xf32>
    %169 = vector.broadcast %168 : vector<1x2xf32> to vector<32x2xf32>
    %170 = arith.mulf %25, %169 : vector<32x2xf32>
    %171 = arith.addf %167, %170 : vector<32x2xf32>
    %172 = vector.extract_strided_slice %145 {offsets = [6, 0], sizes = [1, 2], strides = [1, 1]} : vector<8x2xf32> to vector<1x2xf32>
    %173 = vector.broadcast %172 : vector<1x2xf32> to vector<32x2xf32>
    %174 = arith.mulf %28, %173 : vector<32x2xf32>
    %175 = arith.addf %171, %174 : vector<32x2xf32>
    %176 = vector.extract_strided_slice %145 {offsets = [7, 0], sizes = [1, 2], strides = [1, 1]} : vector<8x2xf32> to vector<1x2xf32>
    %177 = vector.broadcast %176 : vector<1x2xf32> to vector<32x2xf32>
    %178 = arith.mulf %31, %177 : vector<32x2xf32>
    %179 = arith.addf %175, %178 : vector<32x2xf32>
    %180 = vector.extract_strided_slice %179 {offsets = [0, 0], sizes = [24, 2], strides = [1, 1]} : vector<32x2xf32> to vector<24x2xf32>
    %181 = arith.negf %180 : vector<24x2xf32>
    %182 = math.exp %181 : vector<24x2xf32>
    %cst_10 = arith.constant 1.000000e+00 : f32
    %183 = vector.broadcast %cst_10 : f32 to vector<24x2xf32>
    %184 = arith.addf %183, %182 : vector<24x2xf32>
    %185 = arith.divf %183, %184 : vector<24x2xf32>
    %186 = vector.extract_strided_slice %179 {offsets = [24, 0], sizes = [8, 2], strides = [1, 1]} : vector<32x2xf32> to vector<8x2xf32>
    %187 = math.tanh %186 : vector<8x2xf32>
    %188 = vector.extract_strided_slice %185 {offsets = [0, 0], sizes = [8, 2], strides = [1, 1]} : vector<24x2xf32> to vector<8x2xf32>
    %189 = vector.extract_strided_slice %185 {offsets = [8, 0], sizes = [8, 2], strides = [1, 1]} : vector<24x2xf32> to vector<8x2xf32>
    %190 = vector.extract_strided_slice %185 {offsets = [16, 0], sizes = [8, 2], strides = [1, 1]} : vector<24x2xf32> to vector<8x2xf32>
    %191 = arith.mulf %189, %143 : vector<8x2xf32>
    %192 = arith.mulf %188, %187 : vector<8x2xf32>
    %193 = arith.addf %191, %192 : vector<8x2xf32>
    %194 = math.tanh %193 : vector<8x2xf32>
    %195 = arith.mulf %190, %194 : vector<8x2xf32>
    %c0_11 = arith.constant 0 : index
    %c6 = arith.constant 6 : index
    %196 = vector.load %arg4[%c0_11, %c6] : memref<8x16xf32, #tpu.memory_space<vmem>>, vector<8x2xf32>
    tpu.vector_store %arg4[%c0_11, %c6], %195 {strides = array<i32>} : memref<8x16xf32, #tpu.memory_space<vmem>>, vector<8x2xf32>,
    %197 = vector.extract_strided_slice %7 {offsets = [0, 8], sizes = [32, 2], strides = [1, 1]} : vector<32x16xf32> to vector<32x2xf32>
    %198 = vector.extract_strided_slice %195 {offsets = [0, 0], sizes = [1, 2], strides = [1, 1]} : vector<8x2xf32> to vector<1x2xf32>
    %199 = vector.broadcast %198 : vector<1x2xf32> to vector<32x2xf32>
    %200 = arith.mulf %10, %199 : vector<32x2xf32>
    %201 = arith.addf %197, %200 : vector<32x2xf32>
    %202 = vector.extract_strided_slice %195 {offsets = [1, 0], sizes = [1, 2], strides = [1, 1]} : vector<8x2xf32> to vector<1x2xf32>
    %203 = vector.broadcast %202 : vector<1x2xf32> to vector<32x2xf32>
    %204 = arith.mulf %13, %203 : vector<32x2xf32>
    %205 = arith.addf %201, %204 : vector<32x2xf32>
    %206 = vector.extract_strided_slice %195 {offsets = [2, 0], sizes = [1, 2], strides = [1, 1]} : vector<8x2xf32> to vector<1x2xf32>
    %207 = vector.broadcast %206 : vector<1x2xf32> to vector<32x2xf32>
    %208 = arith.mulf %16, %207 : vector<32x2xf32>
    %209 = arith.addf %205, %208 : vector<32x2xf32>
    %210 = vector.extract_strided_slice %195 {offsets = [3, 0], sizes = [1, 2], strides = [1, 1]} : vector<8x2xf32> to vector<1x2xf32>
    %211 = vector.broadcast %210 : vector<1x2xf32> to vector<32x2xf32>
    %212 = arith.mulf %19, %211 : vector<32x2xf32>
    %213 = arith.addf %209, %212 : vector<32x2xf32>
    %214 = vector.extract_strided_slice %195 {offsets = [4, 0], sizes = [1, 2], strides = [1, 1]} : vector<8x2xf32> to vector<1x2xf32>
    %215 = vector.broadcast %214 : vector<1x2xf32> to vector<32x2xf32>
    %216 = arith.mulf %22, %215 : vector<32x2xf32>
    %217 = arith.addf %213, %216 : vector<32x2xf32>
    %218 = vector.extract_strided_slice %195 {offsets = [5, 0], sizes = [1, 2], strides = [1, 1]} : vector<8x2xf32> to vector<1x2xf32>
    %219 = vector.broadcast %218 : vector<1x2xf32> to vector<32x2xf32>
    %220 = arith.mulf %25, %219 : vector<32x2xf32>
    %221 = arith.addf %217, %220 : vector<32x2xf32>
    %222 = vector.extract_strided_slice %195 {offsets = [6, 0], sizes = [1, 2], strides = [1, 1]} : vector<8x2xf32> to vector<1x2xf32>
    %223 = vector.broadcast %222 : vector<1x2xf32> to vector<32x2xf32>
    %224 = arith.mulf %28, %223 : vector<32x2xf32>
    %225 = arith.addf %221, %224 : vector<32x2xf32>
    %226 = vector.extract_strided_slice %195 {offsets = [7, 0], sizes = [1, 2], strides = [1, 1]} : vector<8x2xf32> to vector<1x2xf32>
    %227 = vector.broadcast %226 : vector<1x2xf32> to vector<32x2xf32>
    %228 = arith.mulf %31, %227 : vector<32x2xf32>
    %229 = arith.addf %225, %228 : vector<32x2xf32>
    %230 = vector.extract_strided_slice %229 {offsets = [0, 0], sizes = [24, 2], strides = [1, 1]} : vector<32x2xf32> to vector<24x2xf32>
    %231 = arith.negf %230 : vector<24x2xf32>
    %232 = math.exp %231 : vector<24x2xf32>
    %cst_12 = arith.constant 1.000000e+00 : f32
    %233 = vector.broadcast %cst_12 : f32 to vector<24x2xf32>
    %234 = arith.addf %233, %232 : vector<24x2xf32>
    %235 = arith.divf %233, %234 : vector<24x2xf32>
    %236 = vector.extract_strided_slice %229 {offsets = [24, 0], sizes = [8, 2], strides = [1, 1]} : vector<32x2xf32> to vector<8x2xf32>
    %237 = math.tanh %236 : vector<8x2xf32>
    %238 = vector.extract_strided_slice %235 {offsets = [0, 0], sizes = [8, 2], strides = [1, 1]} : vector<24x2xf32> to vector<8x2xf32>
    %239 = vector.extract_strided_slice %235 {offsets = [8, 0], sizes = [8, 2], strides = [1, 1]} : vector<24x2xf32> to vector<8x2xf32>
    %240 = vector.extract_strided_slice %235 {offsets = [16, 0], sizes = [8, 2], strides = [1, 1]} : vector<24x2xf32> to vector<8x2xf32>
    %241 = arith.mulf %239, %193 : vector<8x2xf32>
    %242 = arith.mulf %238, %237 : vector<8x2xf32>
    %243 = arith.addf %241, %242 : vector<8x2xf32>
    %244 = math.tanh %243 : vector<8x2xf32>
    %245 = arith.mulf %240, %244 : vector<8x2xf32>
    %c0_13 = arith.constant 0 : index
    %c8 = arith.constant 8 : index
    %246 = vector.load %arg4[%c0_13, %c8] : memref<8x16xf32, #tpu.memory_space<vmem>>, vector<8x2xf32>
    tpu.vector_store %arg4[%c0_13, %c8], %245 {strides = array<i32>} : memref<8x16xf32, #tpu.memory_space<vmem>>, vector<8x2xf32>,
    %247 = vector.extract_strided_slice %7 {offsets = [0, 10], sizes = [32, 2], strides = [1, 1]} : vector<32x16xf32> to vector<32x2xf32>
    %248 = vector.extract_strided_slice %245 {offsets = [0, 0], sizes = [1, 2], strides = [1, 1]} : vector<8x2xf32> to vector<1x2xf32>
    %249 = vector.broadcast %248 : vector<1x2xf32> to vector<32x2xf32>
    %250 = arith.mulf %10, %249 : vector<32x2xf32>
    %251 = arith.addf %247, %250 : vector<32x2xf32>
    %252 = vector.extract_strided_slice %245 {offsets = [1, 0], sizes = [1, 2], strides = [1, 1]} : vector<8x2xf32> to vector<1x2xf32>
    %253 = vector.broadcast %252 : vector<1x2xf32> to vector<32x2xf32>
    %254 = arith.mulf %13, %253 : vector<32x2xf32>
    %255 = arith.addf %251, %254 : vector<32x2xf32>
    %256 = vector.extract_strided_slice %245 {offsets = [2, 0], sizes = [1, 2], strides = [1, 1]} : vector<8x2xf32> to vector<1x2xf32>
    %257 = vector.broadcast %256 : vector<1x2xf32> to vector<32x2xf32>
    %258 = arith.mulf %16, %257 : vector<32x2xf32>
    %259 = arith.addf %255, %258 : vector<32x2xf32>
    %260 = vector.extract_strided_slice %245 {offsets = [3, 0], sizes = [1, 2], strides = [1, 1]} : vector<8x2xf32> to vector<1x2xf32>
    %261 = vector.broadcast %260 : vector<1x2xf32> to vector<32x2xf32>
    %262 = arith.mulf %19, %261 : vector<32x2xf32>
    %263 = arith.addf %259, %262 : vector<32x2xf32>
    %264 = vector.extract_strided_slice %245 {offsets = [4, 0], sizes = [1, 2], strides = [1, 1]} : vector<8x2xf32> to vector<1x2xf32>
    %265 = vector.broadcast %264 : vector<1x2xf32> to vector<32x2xf32>
    %266 = arith.mulf %22, %265 : vector<32x2xf32>
    %267 = arith.addf %263, %266 : vector<32x2xf32>
    %268 = vector.extract_strided_slice %245 {offsets = [5, 0], sizes = [1, 2], strides = [1, 1]} : vector<8x2xf32> to vector<1x2xf32>
    %269 = vector.broadcast %268 : vector<1x2xf32> to vector<32x2xf32>
    %270 = arith.mulf %25, %269 : vector<32x2xf32>
    %271 = arith.addf %267, %270 : vector<32x2xf32>
    %272 = vector.extract_strided_slice %245 {offsets = [6, 0], sizes = [1, 2], strides = [1, 1]} : vector<8x2xf32> to vector<1x2xf32>
    %273 = vector.broadcast %272 : vector<1x2xf32> to vector<32x2xf32>
    %274 = arith.mulf %28, %273 : vector<32x2xf32>
    %275 = arith.addf %271, %274 : vector<32x2xf32>
    %276 = vector.extract_strided_slice %245 {offsets = [7, 0], sizes = [1, 2], strides = [1, 1]} : vector<8x2xf32> to vector<1x2xf32>
    %277 = vector.broadcast %276 : vector<1x2xf32> to vector<32x2xf32>
    %278 = arith.mulf %31, %277 : vector<32x2xf32>
    %279 = arith.addf %275, %278 : vector<32x2xf32>
    %280 = vector.extract_strided_slice %279 {offsets = [0, 0], sizes = [24, 2], strides = [1, 1]} : vector<32x2xf32> to vector<24x2xf32>
    %281 = arith.negf %280 : vector<24x2xf32>
    %282 = math.exp %281 : vector<24x2xf32>
    %cst_14 = arith.constant 1.000000e+00 : f32
    %283 = vector.broadcast %cst_14 : f32 to vector<24x2xf32>
    %284 = arith.addf %283, %282 : vector<24x2xf32>
    %285 = arith.divf %283, %284 : vector<24x2xf32>
    %286 = vector.extract_strided_slice %279 {offsets = [24, 0], sizes = [8, 2], strides = [1, 1]} : vector<32x2xf32> to vector<8x2xf32>
    %287 = math.tanh %286 : vector<8x2xf32>
    %288 = vector.extract_strided_slice %285 {offsets = [0, 0], sizes = [8, 2], strides = [1, 1]} : vector<24x2xf32> to vector<8x2xf32>
    %289 = vector.extract_strided_slice %285 {offsets = [8, 0], sizes = [8, 2], strides = [1, 1]} : vector<24x2xf32> to vector<8x2xf32>
    %290 = vector.extract_strided_slice %285 {offsets = [16, 0], sizes = [8, 2], strides = [1, 1]} : vector<24x2xf32> to vector<8x2xf32>
    %291 = arith.mulf %289, %243 : vector<8x2xf32>
    %292 = arith.mulf %288, %287 : vector<8x2xf32>
    %293 = arith.addf %291, %292 : vector<8x2xf32>
    %294 = math.tanh %293 : vector<8x2xf32>
    %295 = arith.mulf %290, %294 : vector<8x2xf32>
    %c0_15 = arith.constant 0 : index
    %c10 = arith.constant 10 : index
    %296 = vector.load %arg4[%c0_15, %c10] : memref<8x16xf32, #tpu.memory_space<vmem>>, vector<8x2xf32>
    tpu.vector_store %arg4[%c0_15, %c10], %295 {strides = array<i32>} : memref<8x16xf32, #tpu.memory_space<vmem>>, vector<8x2xf32>,
    %297 = vector.extract_strided_slice %7 {offsets = [0, 12], sizes = [32, 2], strides = [1, 1]} : vector<32x16xf32> to vector<32x2xf32>
    %298 = vector.extract_strided_slice %295 {offsets = [0, 0], sizes = [1, 2], strides = [1, 1]} : vector<8x2xf32> to vector<1x2xf32>
    %299 = vector.broadcast %298 : vector<1x2xf32> to vector<32x2xf32>
    %300 = arith.mulf %10, %299 : vector<32x2xf32>
    %301 = arith.addf %297, %300 : vector<32x2xf32>
    %302 = vector.extract_strided_slice %295 {offsets = [1, 0], sizes = [1, 2], strides = [1, 1]} : vector<8x2xf32> to vector<1x2xf32>
    %303 = vector.broadcast %302 : vector<1x2xf32> to vector<32x2xf32>
    %304 = arith.mulf %13, %303 : vector<32x2xf32>
    %305 = arith.addf %301, %304 : vector<32x2xf32>
    %306 = vector.extract_strided_slice %295 {offsets = [2, 0], sizes = [1, 2], strides = [1, 1]} : vector<8x2xf32> to vector<1x2xf32>
    %307 = vector.broadcast %306 : vector<1x2xf32> to vector<32x2xf32>
    %308 = arith.mulf %16, %307 : vector<32x2xf32>
    %309 = arith.addf %305, %308 : vector<32x2xf32>
    %310 = vector.extract_strided_slice %295 {offsets = [3, 0], sizes = [1, 2], strides = [1, 1]} : vector<8x2xf32> to vector<1x2xf32>
    %311 = vector.broadcast %310 : vector<1x2xf32> to vector<32x2xf32>
    %312 = arith.mulf %19, %311 : vector<32x2xf32>
    %313 = arith.addf %309, %312 : vector<32x2xf32>
    %314 = vector.extract_strided_slice %295 {offsets = [4, 0], sizes = [1, 2], strides = [1, 1]} : vector<8x2xf32> to vector<1x2xf32>
    %315 = vector.broadcast %314 : vector<1x2xf32> to vector<32x2xf32>
    %316 = arith.mulf %22, %315 : vector<32x2xf32>
    %317 = arith.addf %313, %316 : vector<32x2xf32>
    %318 = vector.extract_strided_slice %295 {offsets = [5, 0], sizes = [1, 2], strides = [1, 1]} : vector<8x2xf32> to vector<1x2xf32>
    %319 = vector.broadcast %318 : vector<1x2xf32> to vector<32x2xf32>
    %320 = arith.mulf %25, %319 : vector<32x2xf32>
    %321 = arith.addf %317, %320 : vector<32x2xf32>
    %322 = vector.extract_strided_slice %295 {offsets = [6, 0], sizes = [1, 2], strides = [1, 1]} : vector<8x2xf32> to vector<1x2xf32>
    %323 = vector.broadcast %322 : vector<1x2xf32> to vector<32x2xf32>
    %324 = arith.mulf %28, %323 : vector<32x2xf32>
    %325 = arith.addf %321, %324 : vector<32x2xf32>
    %326 = vector.extract_strided_slice %295 {offsets = [7, 0], sizes = [1, 2], strides = [1, 1]} : vector<8x2xf32> to vector<1x2xf32>
    %327 = vector.broadcast %326 : vector<1x2xf32> to vector<32x2xf32>
    %328 = arith.mulf %31, %327 : vector<32x2xf32>
    %329 = arith.addf %325, %328 : vector<32x2xf32>
    %330 = vector.extract_strided_slice %329 {offsets = [0, 0], sizes = [24, 2], strides = [1, 1]} : vector<32x2xf32> to vector<24x2xf32>
    %331 = arith.negf %330 : vector<24x2xf32>
    %332 = math.exp %331 : vector<24x2xf32>
    %cst_16 = arith.constant 1.000000e+00 : f32
    %333 = vector.broadcast %cst_16 : f32 to vector<24x2xf32>
    %334 = arith.addf %333, %332 : vector<24x2xf32>
    %335 = arith.divf %333, %334 : vector<24x2xf32>
    %336 = vector.extract_strided_slice %329 {offsets = [24, 0], sizes = [8, 2], strides = [1, 1]} : vector<32x2xf32> to vector<8x2xf32>
    %337 = math.tanh %336 : vector<8x2xf32>
    %338 = vector.extract_strided_slice %335 {offsets = [0, 0], sizes = [8, 2], strides = [1, 1]} : vector<24x2xf32> to vector<8x2xf32>
    %339 = vector.extract_strided_slice %335 {offsets = [8, 0], sizes = [8, 2], strides = [1, 1]} : vector<24x2xf32> to vector<8x2xf32>
    %340 = vector.extract_strided_slice %335 {offsets = [16, 0], sizes = [8, 2], strides = [1, 1]} : vector<24x2xf32> to vector<8x2xf32>
    %341 = arith.mulf %339, %293 : vector<8x2xf32>
    %342 = arith.mulf %338, %337 : vector<8x2xf32>
    %343 = arith.addf %341, %342 : vector<8x2xf32>
    %344 = math.tanh %343 : vector<8x2xf32>
    %345 = arith.mulf %340, %344 : vector<8x2xf32>
    %c0_17 = arith.constant 0 : index
    %c12 = arith.constant 12 : index
    %346 = vector.load %arg4[%c0_17, %c12] : memref<8x16xf32, #tpu.memory_space<vmem>>, vector<8x2xf32>
    tpu.vector_store %arg4[%c0_17, %c12], %345 {strides = array<i32>} : memref<8x16xf32, #tpu.memory_space<vmem>>, vector<8x2xf32>,
    %347 = vector.extract_strided_slice %7 {offsets = [0, 14], sizes = [32, 2], strides = [1, 1]} : vector<32x16xf32> to vector<32x2xf32>
    %348 = vector.extract_strided_slice %345 {offsets = [0, 0], sizes = [1, 2], strides = [1, 1]} : vector<8x2xf32> to vector<1x2xf32>
    %349 = vector.broadcast %348 : vector<1x2xf32> to vector<32x2xf32>
    %350 = arith.mulf %10, %349 : vector<32x2xf32>
    %351 = arith.addf %347, %350 : vector<32x2xf32>
    %352 = vector.extract_strided_slice %345 {offsets = [1, 0], sizes = [1, 2], strides = [1, 1]} : vector<8x2xf32> to vector<1x2xf32>
    %353 = vector.broadcast %352 : vector<1x2xf32> to vector<32x2xf32>
    %354 = arith.mulf %13, %353 : vector<32x2xf32>
    %355 = arith.addf %351, %354 : vector<32x2xf32>
    %356 = vector.extract_strided_slice %345 {offsets = [2, 0], sizes = [1, 2], strides = [1, 1]} : vector<8x2xf32> to vector<1x2xf32>
    %357 = vector.broadcast %356 : vector<1x2xf32> to vector<32x2xf32>
    %358 = arith.mulf %16, %357 : vector<32x2xf32>
    %359 = arith.addf %355, %358 : vector<32x2xf32>
    %360 = vector.extract_strided_slice %345 {offsets = [3, 0], sizes = [1, 2], strides = [1, 1]} : vector<8x2xf32> to vector<1x2xf32>
    %361 = vector.broadcast %360 : vector<1x2xf32> to vector<32x2xf32>
    %362 = arith.mulf %19, %361 : vector<32x2xf32>
    %363 = arith.addf %359, %362 : vector<32x2xf32>
    %364 = vector.extract_strided_slice %345 {offsets = [4, 0], sizes = [1, 2], strides = [1, 1]} : vector<8x2xf32> to vector<1x2xf32>
    %365 = vector.broadcast %364 : vector<1x2xf32> to vector<32x2xf32>
    %366 = arith.mulf %22, %365 : vector<32x2xf32>
    %367 = arith.addf %363, %366 : vector<32x2xf32>
    %368 = vector.extract_strided_slice %345 {offsets = [5, 0], sizes = [1, 2], strides = [1, 1]} : vector<8x2xf32> to vector<1x2xf32>
    %369 = vector.broadcast %368 : vector<1x2xf32> to vector<32x2xf32>
    %370 = arith.mulf %25, %369 : vector<32x2xf32>
    %371 = arith.addf %367, %370 : vector<32x2xf32>
    %372 = vector.extract_strided_slice %345 {offsets = [6, 0], sizes = [1, 2], strides = [1, 1]} : vector<8x2xf32> to vector<1x2xf32>
    %373 = vector.broadcast %372 : vector<1x2xf32> to vector<32x2xf32>
    %374 = arith.mulf %28, %373 : vector<32x2xf32>
    %375 = arith.addf %371, %374 : vector<32x2xf32>
    %376 = vector.extract_strided_slice %345 {offsets = [7, 0], sizes = [1, 2], strides = [1, 1]} : vector<8x2xf32> to vector<1x2xf32>
    %377 = vector.broadcast %376 : vector<1x2xf32> to vector<32x2xf32>
    %378 = arith.mulf %31, %377 : vector<32x2xf32>
    %379 = arith.addf %375, %378 : vector<32x2xf32>
    %380 = vector.extract_strided_slice %379 {offsets = [0, 0], sizes = [24, 2], strides = [1, 1]} : vector<32x2xf32> to vector<24x2xf32>
    %381 = arith.negf %380 : vector<24x2xf32>
    %382 = math.exp %381 : vector<24x2xf32>
    %cst_18 = arith.constant 1.000000e+00 : f32
    %383 = vector.broadcast %cst_18 : f32 to vector<24x2xf32>
    %384 = arith.addf %383, %382 : vector<24x2xf32>
    %385 = arith.divf %383, %384 : vector<24x2xf32>
    %386 = vector.extract_strided_slice %379 {offsets = [24, 0], sizes = [8, 2], strides = [1, 1]} : vector<32x2xf32> to vector<8x2xf32>
    %387 = math.tanh %386 : vector<8x2xf32>
    %388 = vector.extract_strided_slice %385 {offsets = [0, 0], sizes = [8, 2], strides = [1, 1]} : vector<24x2xf32> to vector<8x2xf32>
    %389 = vector.extract_strided_slice %385 {offsets = [8, 0], sizes = [8, 2], strides = [1, 1]} : vector<24x2xf32> to vector<8x2xf32>
    %390 = vector.extract_strided_slice %385 {offsets = [16, 0], sizes = [8, 2], strides = [1, 1]} : vector<24x2xf32> to vector<8x2xf32>
    %391 = arith.mulf %389, %343 : vector<8x2xf32>
    %392 = arith.mulf %388, %387 : vector<8x2xf32>
    %393 = arith.addf %391, %392 : vector<8x2xf32>
    %394 = math.tanh %393 : vector<8x2xf32>
    %395 = arith.mulf %390, %394 : vector<8x2xf32>
    %c0_19 = arith.constant 0 : index
    %c14 = arith.constant 14 : index
    %396 = vector.load %arg4[%c0_19, %c14] : memref<8x16xf32, #tpu.memory_space<vmem>>, vector<8x2xf32>
    tpu.vector_store %arg4[%c0_19, %c14], %395 {strides = array<i32>} : memref<8x16xf32, #tpu.memory_space<vmem>>, vector<8x2xf32>,
    %c0_20 = arith.constant 0 : index
    %c0_21 = arith.constant 0 : index
    %397 = vector.load %arg2[%c0_20, %c0_21] : memref<8x20xf32, #tpu.memory_space<vmem>>, vector<8x20xf32>
    %398 = vector.extract_strided_slice %397 {offsets = [0, 0], sizes = [8, 8], strides = [1, 1]} : vector<8x20xf32> to vector<8x8xf32>
    %399 = vector.extract_strided_slice %397 {offsets = [0, 8], sizes = [8, 8], strides = [1, 1]} : vector<8x20xf32> to vector<8x8xf32>
    %400 = vector.extract_strided_slice %397 {offsets = [0, 16], sizes = [8, 1], strides = [1, 1]} : vector<8x20xf32> to vector<8x1xf32>
    %401 = vector.extract_strided_slice %397 {offsets = [0, 17], sizes = [8, 1], strides = [1, 1]} : vector<8x20xf32> to vector<8x1xf32>
    %402 = vector.extract_strided_slice %397 {offsets = [0, 18], sizes = [8, 1], strides = [1, 1]} : vector<8x20xf32> to vector<8x1xf32>
    %403 = vector.extract_strided_slice %397 {offsets = [0, 19], sizes = [1, 1], strides = [1, 1]} : vector<8x20xf32> to vector<1x1xf32>
    %c0_22 = arith.constant 0 : index
    %c0_23 = arith.constant 0 : index
    %404 = vector.load %arg4[%c0_22, %c0_23] : memref<8x16xf32, #tpu.memory_space<vmem>>, vector<8x16xf32>
    %cst_24 = arith.constant 0.000000e+00 : f32
    %405 = vector.broadcast %cst_24 : f32 to vector<8x16xf32>
    %406 = arith.maximumf %404, %405 : vector<8x16xf32>
    %cst_25 = arith.constant 6.000000e+00 : f32
    %407 = vector.broadcast %cst_25 : f32 to vector<8x16xf32>
    %408 = arith.minimumf %406, %407 : vector<8x16xf32>
    %cst_26 = arith.constant dense<0.000000e+00> : vector<8x16xf32>
    %409 = tpu.matmul %398, %408, %cst_26 {dimension_numbers = #tpu.dot_dimension_numbers<[1], [0], [0], [1], [0, 0, 1, 1], [], []>} : vector<8x8xf32>, vector<8x16xf32>, vector<8x16xf32> -> vector<8x16xf32>
    %410 = vector.broadcast %400 : vector<8x1xf32> to vector<8x16xf32>
    %411 = arith.addf %409, %410 : vector<8x16xf32>
    %cst_27 = arith.constant 0.000000e+00 : f32
    %412 = vector.broadcast %cst_27 : f32 to vector<8x16xf32>
    %413 = arith.maximumf %411, %412 : vector<8x16xf32>
    %cst_28 = arith.constant 6.000000e+00 : f32
    %414 = vector.broadcast %cst_28 : f32 to vector<8x16xf32>
    %415 = arith.minimumf %413, %414 : vector<8x16xf32>
    %cst_29 = arith.constant dense<0.000000e+00> : vector<8x16xf32>
    %416 = tpu.matmul %399, %415, %cst_29 {dimension_numbers = #tpu.dot_dimension_numbers<[1], [0], [0], [1], [0, 0, 1, 1], [], []>} : vector<8x8xf32>, vector<8x16xf32>, vector<8x16xf32> -> vector<8x16xf32>
    %417 = vector.broadcast %401 : vector<8x1xf32> to vector<8x16xf32>
    %418 = arith.addf %416, %417 : vector<8x16xf32>
    %cst_30 = arith.constant 0.000000e+00 : f32
    %419 = vector.broadcast %cst_30 : f32 to vector<8x16xf32>
    %420 = arith.maximumf %418, %419 : vector<8x16xf32>
    %cst_31 = arith.constant 6.000000e+00 : f32
    %421 = vector.broadcast %cst_31 : f32 to vector<8x16xf32>
    %422 = arith.minimumf %420, %421 : vector<8x16xf32>
    %423 = vector.broadcast %402 : vector<8x1xf32> to vector<8x16xf32>
    %424 = arith.mulf %423, %422 : vector<8x16xf32>
    %cst_32 = arith.constant dense<0.000000e+00> : vector<16xf32>
    %425 = vector.multi_reduction <add>, %424, %cst_32 [0] : vector<8x16xf32> to vector<16xf32>
    %426 = vector.shape_cast %425 : vector<16xf32> to vector<1x16xf32>
    %427 = vector.broadcast %403 : vector<1x1xf32> to vector<1x16xf32>
    %428 = arith.addf %426, %427 : vector<1x16xf32>
    %cst_33 = arith.constant 0.000000e+00 : f32
    %429 = vector.broadcast %cst_33 : f32 to vector<1x16xf32>
    %430 = arith.maximumf %428, %429 : vector<1x16xf32>
    %cst_34 = arith.constant 6.000000e+00 : f32
    %431 = vector.broadcast %cst_34 : f32 to vector<1x16xf32>
    %432 = arith.minimumf %430, %431 : vector<1x16xf32>
    %433 = arith.subf %432, %432 : vector<1x16xf32>
    %cst_35 = arith.constant 1.000000e+00 : f32
    %434 = vector.broadcast %cst_35 : f32 to vector<1x16xf32>
    %435 = arith.addf %433, %434 : vector<1x16xf32>
    %c0_36 = arith.constant 0 : index
    %c0_37 = arith.constant 0 : index
    %436 = vector.load %arg3[%c0_36, %c0_37] : memref<1x16xf32, #tpu.memory_space<vmem>>, vector<1x16xf32>
    tpu.vector_store %arg3[%c0_36, %c0_37], %435 {strides = array<i32>} : memref<1x16xf32, #tpu.memory_space<vmem>>, vector<1x16xf32>,
    return
  }
}

</mosaic_0001>

<bundles_post_ra>
// kernel: temp_layer_g_forward.1
= control target key start
LH: loop header
LB: loop body
LE: loop exit
PB: predicated region body
PF: predicated region fallthrough
CT: control target
= control target key end

     0   :  { %v2429_v0 = vmov 8   ;;  %v2430_v1 = vmov 16   ;;  %vm39_vm0 = vcmask 64512   ;;  %v2431_v7 = vmov 9   ;;  %s2439_s23 = smov 120   ;;  %s3151_s1 = inlined_call_operand.vmem [shape: f32[32,17], index: 1, kind: input, shape index: {}]   ;;  %s3152_s0 = inlined_call_operand.vmem [shape: f32[8,16], index: 0, kind: input, shape index: {}]   ;;  %s3153_s2 = inlined_call_operand.vmem [shape: f32[8,20], index: 2, kind: input, shape index: {}]   ;;  %s3154_s3 = inlined_call_operand.vmem [shape: f32[1,16], index: 3, kind: output, shape index: {}]  }
   0x1   :  { %2270 = vset.pattern.permute.xlu2 %v2429_v0  ;;  %2268 = vset.pattern.permute.xlu1 %v2430_v1  ;;  %v2468_v2 = vld [vmem:[%s3151_s1 + $0x18] sm:$0xff]  ;;  %v2473_v3 = vld [vmem:[%s3151_s1 + $0x8] sm:$0xff]  ;;  %v14_v4 = vld [vmem:[%s3151_s1] sm:$0xff]  ;;  %v2432_v8 = vmov 14   ;;  %v2433_v9 = vmov 10   ;;  %v2434_v10 = vmov 11  }
   0x2   :  { %2267 = vset.pattern.permute.xlu0 %v2430_v1  ;;  %36 = vperm.xlu1 %2268, %v2468_v2   ;;  %v18_v5 = vld [vmem:[%s3152_s0] sm:$0xff]  ;;  %v2486_v6 = vld [vmem:[%s3151_s1 + $0x10] sm:$0xff]  ;;  %v2435_v11 = vmov 13   ;;  %v2436_v12 = vmov 12   ;;  %v2437_v13 = vmov 15   ;;  %vm247_vm9 = vcmask 15360  }
   0x3   :  { %82 = vperm.xlu2 %2270, %v2473_v3   ;;  %21 = vperm.xlu0 %2267, %v14_v4   ;;  %s2438_s0 = smov 2  }
   0x4   :  { %63 = vmatpush.msra.mxu0 %v18_v5  ;;  %2252 = vmatpush.msra.mxu3 %v18_v5 }
   0x5   :  { %2223 = vmatmul.msk.f32.vlgmr.msra.gmra.mxu0 %vm39_vm0, %v14_v4  ;;  %2225 = vmatmul.msk.f32.vlgmr.msra.gmra.mxu3 %vm39_vm0, %v2486_v6 }
   0xa   :  { %2269 = vset.pattern.permute.xlu1 %v2429_v0 }
   0xb   :  { %2271 = vset.pattern.permute.xlu2 %v2431_v7  ;;  %31 = vperm.xlu0 %2267, %v2486_v6  }
   0xc   :  { %94 = vperm.xlu2 %2271, %v14_v4   ;;  %78 = vperm.xlu1 %2269, %v14_v4  }
   0xd   :  { %2226 = vmatmul.msk.f32.gmra.mxu3 %vm39_vm0, %v2468_v2  ;;  %2224 = vmatmul.msk.f32.gmra.mxu0 %vm39_vm0, %v2473_v3 }
  0x13   :  { %2280 = vset.pattern.permute.xlu0 %v2432_v8 }
  0x14   :  { %2273 = vset.pattern.permute.xlu2 %v2433_v9  ;;  %2272 = vset.pattern.permute.xlu1 %v2433_v9 }
  0x15   :  { %174 = vperm.xlu0 %2280, %v14_v4   ;;  %114 = vperm.xlu2 %2273, %v2473_v3  }
  0x16   :  { %110 = vperm.xlu1 %2272, %v14_v4  }
  0x1d   :  { %2285 = vset.pattern.permute.xlu0 %v2433_v9  ;;  %2275 = vset.pattern.permute.xlu2 %v2434_v10 }
  0x1e   :  { %2274 = vset.pattern.permute.xlu1 %v2434_v10  ;;  %118 = vperm.xlu0 %2285, %v2486_v6  }
  0x1f   :  { %130 = vperm.xlu2 %2275, %v2473_v3   ;;  %126 = vperm.xlu1 %2274, %v14_v4  }
  0x26   :  { %2286 = vset.pattern.permute.xlu0 %v2431_v7 }
  0x27   :  { %2277 = vset.pattern.permute.xlu2 %v2435_v11  ;;  %2276 = vset.pattern.permute.xlu1 %v2436_v12 }
  0x28   :  { %98 = vperm.xlu0 %2286, %v2473_v3   ;;  %158 = vperm.xlu2 %2277, %v14_v4  }
  0x29   :  { %146 = vperm.xlu1 %2276, %v2473_v3  }
  0x30   :  { %106 = vperm.xlu0 %2286, %v2468_v2   ;;  %2279 = vset.pattern.permute.xlu2 %v2429_v0 }
  0x31   :  { %2278 = vset.pattern.permute.xlu1 %v2435_v11  ;;  %86 = vperm.xlu2 %2279, %v2486_v6  }
  0x32   :  { %162 = vperm.xlu1 %2278, %v2473_v3  }
  0x38   :  { %2291 = vset.pattern.permute.xlu0 %v2436_v12 }
  0x39   :  { %142 = vperm.xlu0 %2291, %v14_v4   ;;  %2282 = vset.pattern.permute.xlu2 %v2431_v7 }
  0x3a   :  { %2281 = vset.pattern.permute.xlu1 %v2432_v8  ;;  %102 = vperm.xlu2 %2282, %v2486_v6  }
  0x3b   :  { %178 = vperm.xlu1 %2281, %v2473_v3  }
  0x41   :  { %154 = vperm.xlu0 %2291, %v2468_v2  }
  0x42   :  { %2284 = vset.pattern.permute.xlu2 %v2437_v13 }
  0x43   :  { %2283 = vset.pattern.permute.xlu1 %v2437_v13  ;;  %194 = vperm.xlu2 %2284, %v2473_v3  }
  0x44   :  { %190 = vperm.xlu1 %2283, %v14_v4  }
  0x49   :  { %2300 = vset.pattern.permute.xlu0 %v2430_v1 }
  0x4b   :  { %2288 = vset.pattern.permute.xlu2 %v2436_v12 }
  0x4c   :  { %2287 = vset.pattern.permute.xlu1 %v2434_v10  ;;  %150 = vperm.xlu2 %2288, %v2486_v6  }
  0x4d   :  { %134 = vperm.xlu1 %2287, %v2486_v6  }
  0x54   :  { %2290 = vset.pattern.permute.xlu2 %v2435_v11 }
  0x55   :  { %2289 = vset.pattern.permute.xlu1 %v2429_v0  ;;  %166 = vperm.xlu2 %2290, %v2486_v6  }
  0x56   :  { %90 = vperm.xlu1 %2289, %v2468_v2  }
  0x5d   :  { %2293 = vset.pattern.permute.xlu2 %v2433_v9  ;;  %v2530_v19 = vpop.permute.xlu2 %82 }
  0x5e   :  { %2292 = vset.pattern.permute.xlu1 %v2432_v8  ;;  %122 = vperm.xlu2 %2293, %v2468_v2  }
  0x5f   :  { %182 = vperm.xlu1 %2292, %v2486_v6  }
  0x66   :  { %2295 = vset.pattern.permute.xlu2 %v2434_v10  ;;  %v2538_v27 = vpop.permute.xlu2 %94 }
  0x67   :  { %2294 = vset.pattern.permute.xlu1 %v2437_v13  ;;  %138 = vperm.xlu2 %2295, %v2468_v2  }
  0x68   :  { %198 = vperm.xlu1 %2294, %v2486_v6  }
  0x6f   :  { %2297 = vset.pattern.permute.xlu2 %v2432_v8  ;;  %v2546_v37 = vpop.permute.xlu2 %114 }
  0x70   :  { %2296 = vset.pattern.permute.xlu1 %v2435_v11  ;;  %186 = vperm.xlu2 %2297, %v2468_v2  }
  0x71   :  { %170 = vperm.xlu1 %2296, %v2468_v2  }
  0x74   :  { %v37_v14 = vpop.permute.xlu1 %36 }
  0x75   :  { %v22_v15 = vpop.permute.xlu0 %21 }
  0x78   :  { %2299 = vset.pattern.permute.xlu2 %v2430_v1 }
  0x79   :  { %2298 = vset.pattern.permute.xlu1 %v2437_v13  ;;  %26 = vperm.xlu2 %2299, %v2473_v3   ;;  %v2555_v54 = vpop.permute.xlu2 %130 }
  0x7a   :  { %202 = vperm.xlu1 %2298, %v2468_v2  }
  0x7d   :  { %v32_v21 = vpop.permute.xlu0 %31 }
  0x7e   :  { %v2528_v18 = vpop.permute.xlu1 %78 }
  0x82   :  { %v65_v16 = vpop.f32.mrf.mxu0  ;;  %v2562_v1 = vpop.permute.xlu2 %158 }
  0x83   :  { %v2526_v17 = vadd.f32 %v65_v16, %v22_v15 }
  0x85   :  { %3161 = vst [vmem:[#allocation3_spill] sm:$0xff] %v2526_v17  ;;  %v2227_v20 = vmul.f32 -1.442695, %v2526_v17 }
  0x87   :  { %2305 = vpow2.f32 %v2227_v20  ;;  %v2540_v32 = vpop.permute.xlu0 %174 }
  0x88   :  { %v71_v22 = vpop.f32.mrf.mxu3  ;;  %v2536_v26 = vpop.permute.xlu1 %110 }
  0x89   :  { %v2533_v23 = vadd.f32 %v71_v22, %v32_v21 }
  0x8b   :  { %v2228_v24 = vmul.f32 -1.442695, %v2533_v23  ;;  %v2583_v10 = vpop.permute.xlu2 %86 }
  0x8d   :  { %v2306_v25 = vpop.eup %2305  ;;  %2307 = vpow2.f32 %v2228_v24 }
  0x8e   :  { %v211_v28 = vadd.f32 1.0, %v2306_v25 }
  0x90   :  { %2309 = vrcp.f32 %v211_v28  ;;  %v74_v30 = vpop.f32.mrf.mxu3  ;;  %v224_v39 = vand.u32 2147483648, %v211_v28  ;;  %v222_v41 = vand.u32 2147483647, %v211_v28  ;;  %vm218_vm2 = vweird.f32 %v211_v28  ;;  %v2549_v48 = vpop.permute.xlu0 %118 }
  0x91   :  { %v2542_v34 = vadd.f32 %v74_v30, %v37_v14  ;;  %v2544_v36 = vpop.permute.xlu1 %126 }
  0x92   :  { %v225_v45 = vor.u32 1.1754944e-38, %v224_v39  ;;  %vm223_vm4 = vcmp.eq.f32.partialorder %v222_v41, 8.507059e+37 }
  0x93   :  { %v2308_v29 = vpop.eup %2307 }
  0x94   :  { %v212_v31 = vadd.f32 1.0, %v2308_v29  ;;  %v2601_v25 = vpop.permute.xlu2 %102 }
  0x96   :  { %v2310_v33 = vpop.eup %2309  ;;  %2311 = vrcp.f32 %v212_v31  ;;  %v239_v56 = vand.u32 2147483648, %v212_v31  ;;  %vm233_vm6 = vweird.f32 %v212_v31  ;;  %v237_v57 = vand.u32 2147483647, %v212_v31 }
  0x97   :  { %v214_v35 = vmul.f32 %v2310_v33, %v211_v28  ;;  %2313 = vtanh.f32 %v2542_v34  ;;  %vm219_vm1 = vweird.f32 %v2310_v33 }
  0x98   :  { %vm220_vm3 = vmor %vm218_vm2, %vm219_vm1  ;;  %v240_v59 = vor.u32 1.1754944e-38, %v239_v56  ;;  %vm238_vm8 = vcmp.eq.f32.partialorder %v237_v57, 8.507059e+37 }
  0x99   :  { %v215_v38 = vsub.f32 1.0, %v214_v35 }
  0x9a   :  { %v2558_v62 = vpop.permute.xlu0 %98 }
  0x9b   :  { %v216_v40 = vmul.f32 %v2310_v33, %v215_v38  ;;  %v2553_v53 = vpop.permute.xlu1 %146 }
  0x9c   :  { %v2312_v42 = vpop.eup %2311 }
  0x9d   :  { %v229_v43 = vmul.f32 %v2312_v42, %v212_v31  ;;  %v217_v44 = vadd.f32 %v2310_v33, %v216_v40  ;;  %v2314_v49 = vpop.eup %2313  ;;  %vm234_vm5 = vweird.f32 %v2312_v42  ;;  %v2614_v35 = vpop.permute.xlu2 %194 }
  0x9e   :  { %vm235_vm7 = vmor %vm233_vm6, %vm234_vm5 }
  0x9f   :  { %v230_v46 = vsub.f32 1.0, %v229_v43  ;;  %v221_v47 = vsel %vm220_vm3, %v2310_v33, %v217_v44 }
  0xa0   :  { %v226_v50 = vsel %vm223_vm4, %v225_v45, %v221_v47 }
  0xa1   :  { %v231_v51 = vmul.f32 %v2312_v42, %v230_v46  ;;  %v2551_v52 = vmul.f32 %v2314_v49, %v226_v50 }
  0xa2   :  { %v2579_v8 = vpop.permute.xlu0 %106 }
  0xa3   :  { %v232_v55 = vadd.f32 %v2312_v42, %v231_v51  ;;  %2315 = vtanh.f32 %v2551_v52 }
  0xa4   :  { %v2560_v0 = vpop.permute.xlu1 %162 }
  0xa5   :  { %v236_v58 = vsel %vm235_vm7, %v2312_v42, %v232_v55  ;;  %vm516_vm7 = vcmask 31760  }
  0xa6   :  { %v241_v61 = vsel %vm238_vm8, %v240_v59, %v236_v58  ;;  %v2625_v44 = vpop.permute.xlu2 %150 }
  0xa9   :  { %v2316_v60 = vpop.eup %2315 }
  0xaa   :  { %v246_v63 = vmul.f32 %v2316_v60, %v241_v61 }
  0xab   :  { %v2594_v16 = vpop.permute.xlu0 %142 }
  0xac   :  { %v2564_v2 = vperm.slane %v246_v63, 1  ;;  %v2566_v3 = vperm.slane %v246_v63, 0  ;;  %248 = vst.msk [vmem:[#allocation2] sm:$0xff] %vm247_vm9, %v246_v63  ;;  %v2577_v7 = vperm.slane %v246_v63, 2  ;;  %v349_v14 = vperm.slane %v246_v63, 4 }
  0xad   :  { %v2581_v9 = vpop.permute.xlu1 %178  ;;  %v324_v15 = vperm.slane %v246_v63, 3  ;;  %v374_v28 = vperm.slane %v246_v63, 5  ;;  %v399_v38 = vperm.slane %v246_v63, 6  ;;  %v424_v42 = vperm.slane %v246_v63, 7 }
  0xae   :  { %v275_v4 = vmul.f32 %v2564_v2, %v2538_v27  ;;  %v251_v5 = vmul.f32 %v2566_v3, %v2530_v19  ;;  %v250_v6 = vmul.f32 %v2566_v3, %v2528_v18  ;;  %v301_v11 = vmul.f32 %v2577_v7, %v2546_v37 }
  0xaf   :  { %v300_v12 = vmul.f32 %v2577_v7, %v2536_v26  ;;  %v276_v13 = vmul.f32 %v2564_v2, %v2558_v62  ;;  %v350_v20 = vmul.f32 %v349_v14, %v2594_v16  ;;  %v326_v21 = vmul.f32 %v324_v15, %v2555_v54  ;;  %v2636_v50 = vpop.permute.xlu2 %166 }
  0xb0   :  { %283 = vrot.lane.b32.xlu2 %v275_v4, %s2438_s0  ;;  %260 = vrot.lane.b32.xlu1 %v251_v5, %s2438_s0  ;;  %v325_v24 = vmul.f32 %v324_v15, %v2544_v36  ;;  %v376_v29 = vmul.f32 %v374_v28, %v2560_v0  ;;  %v375_v30 = vmul.f32 %v374_v28, %v2562_v1 }
  0xb1   :  { %258 = vrot.lane.b32.xlu0 %v250_v6, %s2438_s0  ;;  %v351_v31 = vmul.f32 %v349_v14, %v2553_v53  ;;  %v401_v39 = vmul.f32 %v399_v38, %v2581_v9  ;;  %v400_v40 = vmul.f32 %v399_v38, %v2540_v32  ;;  %v252_v41 = vmul.f32 %v2566_v3, %v2583_v10 }
  0xb2   :  { %v426_v45 = vmul.f32 %v424_v42, %v2614_v35  ;;  %v277_v47 = vmul.f32 %v2564_v2, %v2601_v25  ;;  %v352_v51 = vmul.f32 %v349_v14, %v2625_v44  ;;  %v302_v56 = vmul.f32 %v2577_v7, %v2549_v48 }
  0xb3   :  { %v278_v57 = vmul.f32 %v2564_v2, %v2579_v8  ;;  %v377_v58 = vmul.f32 %v374_v28, %v2636_v50  ;;  %v2668_v6 = vpop.permute.xlu0 %154 }
  0xb6   :  { %v2598_v22 = vpop.permute.xlu1 %190 }
  0xb7   :  { %v425_v46 = vmul.f32 %v424_v42, %v2598_v22 }
  0xb8   :  { %310 = vrot.lane.b32.xlu2 %v301_v11, %s2438_s0  ;;  %308 = vrot.lane.b32.xlu1 %v300_v12, %s2438_s0  ;;  %v2652_v61 = vpop.permute.xlu2 %122  ;;  %v353_v12 = vmul.f32 %v349_v14, %v2668_v6 }
  0xb9   :  { %285 = vrot.lane.b32.xlu0 %v276_v13, %s2438_s0  ;;  %v303_v2 = vmul.f32 %v2577_v7, %v2652_v61 }
  0xbf   :  { %v2611_v33 = vpop.permute.xlu1 %134 }
  0xc0   :  { %358 = vrot.lane.b32.xlu2 %v350_v20, %s2438_s0  ;;  %335 = vrot.lane.b32.xlu1 %v326_v21, %s2438_s0  ;;  %v327_v55 = vmul.f32 %v324_v15, %v2611_v33 }
  0xc1   :  { %333 = vrot.lane.b32.xlu0 %v325_v24, %s2438_s0  ;;  %v2666_v5 = vpop.permute.xlu2 %138 }
  0xc2   :  { %v328_v7 = vmul.f32 %v324_v15, %v2666_v5 }
  0xc8   :  { %385 = vrot.lane.b32.xlu2 %v376_v29, %s2438_s0  ;;  %383 = vrot.lane.b32.xlu1 %v375_v30, %s2438_s0  ;;  %v2623_v43 = vpop.permute.xlu1 %90 }
  0xc9   :  { %360 = vrot.lane.b32.xlu0 %v351_v31, %s2438_s0  ;;  %v253_v60 = vmul.f32 %v2566_v3, %v2623_v43 }
  0xca   :  { %v2678_v20 = vpop.permute.xlu2 %186 }
  0xcb   :  { %3162 = vst [vmem:[#allocation4_spill] sm:$0xff] %v2678_v20  ;;  %v403_v24 = vmul.f32 %v399_v38, %v2678_v20 }
  0xd0   :  { %410 = vrot.lane.b32.xlu2 %v401_v39, %s2438_s0  ;;  %408 = vrot.lane.b32.xlu1 %v400_v40, %s2438_s0 }
  0xd1   :  { %262 = vrot.lane.b32.xlu0 %v252_v41, %s2438_s0  ;;  %v2634_v49 = vpop.permute.xlu1 %182  ;;  %v68_v41 = vpop.f32.mrf.mxu0 }
  0xd2   :  { %v402_v4 = vmul.f32 %v399_v38, %v2634_v49 }
  0xd3   :  { %v27_v14 = vpop.permute.xlu2 %26 }
  0xd8   :  { %435 = vrot.lane.b32.xlu2 %v426_v45, %s2438_s0  ;;  %433 = vrot.lane.b32.xlu1 %v425_v46, %s2438_s0  ;;  %v2686_v45 = vadd.f32 %v68_v41, %v27_v14 }
  0xd9   :  { %287 = vrot.lane.b32.xlu0 %v277_v47, %s2438_s0 }
  0xda   :  { %v2648_v59 = vpop.permute.xlu1 %198  ;;  %3163 = vst [vmem:[#allocation5_spill] sm:$0xff] %v2686_v45 }
  0xdb   :  { %v427_v63 = vmul.f32 %v424_v42, %v2648_v59 }
  0xe0   :  { %362 = vrot.lane.b32.xlu2 %v352_v51, %s2438_s0  ;;  %337 = vrot.lane.b32.xlu1 %v327_v55, %s2438_s0 }
  0xe1   :  { %312 = vrot.lane.b32.xlu0 %v302_v56, %s2438_s0 }
  0xe3   :  { %v2663_v3 = vpop.permute.xlu1 %170 }
  0xe4   :  { %v378_v11 = vmul.f32 %v374_v28, %v2663_v3 }
  0xe8   :  { %289 = vrot.lane.b32.xlu2 %v278_v57, %s2438_s0  ;;  %387 = vrot.lane.b32.xlu1 %v377_v58, %s2438_s0 }
  0xe9   :  { %264 = vrot.lane.b32.xlu0 %v253_v60, %s2438_s0 }
  0xec   :  { %v2676_v13 = vpop.permute.xlu1 %202 }
  0xed   :  { %v428_v21 = vmul.f32 %v424_v42, %v2676_v13 }
  0xf0   :  { %437 = vrot.lane.b32.xlu2 %v427_v63, %s2438_s0  ;;  %314 = vrot.lane.b32.xlu1 %v303_v2, %s2438_s0 }
  0xf1   :  { %412 = vrot.lane.b32.xlu0 %v402_v4, %s2438_s0 }
  0xf8   :  { %389 = vrot.lane.b32.xlu2 %v378_v11, %s2438_s0  ;;  %364 = vrot.lane.b32.xlu1 %v353_v12, %s2438_s0 }
  0xf9   :  { %339 = vrot.lane.b32.xlu0 %v328_v7, %s2438_s0 }
 0x100   :  { %508 = vrot.lane.b32.xlu2 %v2551_v52, %s2438_s0  ;;  %439 = vrot.lane.b32.xlu1 %v428_v21, %s2438_s0 }
 0x101   :  { %414 = vrot.lane.b32.xlu0 %v403_v24, %s2438_s0 }
 0x10a   :  { %v284_v15 = vpop.permute.xlu2 %283 }
 0x112   :  { %v311_v28 = vpop.permute.xlu2 %310 }
 0x11a   :  { %v359_v31 = vpop.permute.xlu2 %358 }
 0x122   :  { %v261_v29 = vpop.permute.xlu1 %260  ;;  %v386_v38 = vpop.permute.xlu2 %385 }
 0x123   :  { %v259_v30 = vpop.permute.xlu0 %258  ;;  %v271_v52 = vadd.f32 %v261_v29, %v2686_v45 }
 0x124   :  { %v270_v55 = vadd.f32 %v259_v30, %v2526_v17 }
 0x126   :  { %v295_v63 = vadd.f32 %v284_v15, %v270_v55 }
 0x12a   :  { %v309_v39 = vpop.permute.xlu1 %308  ;;  %v411_v58 = vpop.permute.xlu2 %410 }
 0x12b   :  { %v286_v40 = vpop.permute.xlu0 %285  ;;  %v320_v4 = vadd.f32 %v309_v39, %v295_v63 }
 0x12c   :  { %v296_v47 = vadd.f32 %v286_v40, %v271_v52 }
 0x12e   :  { %v321_v56 = vadd.f32 %v311_v28, %v296_v47 }
 0x132   :  { %v336_v42 = vpop.permute.xlu1 %335  ;;  %v436_v24 = vpop.permute.xlu2 %435 }
 0x133   :  { %v334_v46 = vpop.permute.xlu0 %333  ;;  %v346_v60 = vadd.f32 %v336_v42, %v321_v56 }
 0x134   :  { %v345_v12 = vadd.f32 %v334_v46, %v320_v4 }
 0x136   :  { %v370_v14 = vadd.f32 %v359_v31, %v345_v12 }
 0x13a   :  { %v384_v51 = vpop.permute.xlu1 %383  ;;  %v363_v47 = vpop.permute.xlu2 %362 }
 0x13b   :  { %v361_v57 = vpop.permute.xlu0 %360  ;;  %v395_v20 = vadd.f32 %v384_v51, %v370_v14 }
 0x13c   :  { %v371_v2 = vadd.f32 %v361_v57, %v346_v60 }
 0x13e   :  { %v396_v7 = vadd.f32 %v386_v38, %v371_v2 }
 0x140   :  { %v421_v41 = vadd.f32 %v411_v58, %v396_v7 }
 0x142   :  { %v409_v11 = vpop.permute.xlu1 %408  ;;  %v446_v40 = vadd.f32 %v436_v24, %v421_v41  ;;  %v290_v51 = vpop.permute.xlu2 %289 }
 0x143   :  { %v263_v21 = vpop.permute.xlu0 %262  ;;  %v420_v52 = vadd.f32 %v409_v11, %v395_v20 }
 0x144   :  { %v2230_v28 = vmul.f32 -1.442695, %v446_v40  ;;  %v272_v39 = vadd.f32 %v263_v21, %v2533_v23 }
 0x146   :  { %2317 = vpow2.f32 %v2230_v28 }
 0x14a   :  { %v434_v29 = vpop.permute.xlu1 %433 }
 0x14b   :  { %v288_v45 = vpop.permute.xlu0 %287  ;;  %v445_v30 = vadd.f32 %v434_v29, %v420_v52 }
 0x14c   :  { %v297_v38 = vadd.f32 %v288_v45, %v272_v39  ;;  %v2318_v55 = vpop.eup %2317 }
 0x14d   :  { %v2229_v17 = vmul.f32 -1.442695, %v445_v30  ;;  %v459_v58 = vadd.f32 1.0, %v2318_v55 }
 0x14f   :  { %2319 = vpow2.f32 %v2229_v17  ;;  %v438_v17 = vpop.permute.xlu2 %437  ;;  %vm481_vm11 = vweird.f32 %v459_v58 }
 0x150   :  { %2321 = vrcp.f32 %v459_v58 }
 0x152   :  { %v338_v42 = vpop.permute.xlu1 %337 }
 0x153   :  { %v313_v15 = vpop.permute.xlu0 %312 }
 0x154   :  { %v322_v46 = vadd.f32 %v313_v15, %v297_v38 }
 0x155   :  { %v2320_v56 = vpop.eup %2319 }
 0x156   :  { %v347_v20 = vadd.f32 %v338_v42, %v322_v46  ;;  %v458_v60 = vadd.f32 1.0, %v2320_v56  ;;  %v2322_v45 = vpop.eup %2321 }
 0x157   :  { %v477_v29 = vmul.f32 %v2322_v45, %v459_v58  ;;  %v390_v46 = vpop.permute.xlu2 %389  ;;  %vm482_vm10 = vweird.f32 %v2322_v45 }
 0x158   :  { %v372_v63 = vadd.f32 %v363_v47, %v347_v20  ;;  %2323 = vrcp.f32 %v458_v60  ;;  %vm483_vm13 = vmor %vm481_vm11, %vm482_vm10  ;;  %vm466_vm14 = vweird.f32 %v458_v60 }
 0x159   :  { %v478_v42 = vsub.f32 1.0, %v477_v29 }
 0x15a   :  { %v388_v31 = vpop.permute.xlu1 %387 }
 0x15b   :  { %v265_v57 = vpop.permute.xlu0 %264  ;;  %v397_v2 = vadd.f32 %v388_v31, %v372_v63  ;;  %v479_v55 = vmul.f32 %v2322_v45, %v478_v42 }
 0x15c   :  { %v273_v12 = vadd.f32 %v265_v57, %v2542_v34 }
 0x15d   :  { %v480_v63 = vadd.f32 %v2322_v45, %v479_v55 }
 0x15e   :  { %v2324_v24 = vpop.eup %2323  ;;  %v298_v14 = vadd.f32 %v290_v51, %v273_v12  ;;  %v485_v12 = vand.u32 2147483647, %v459_v58 }
 0x15f   :  { %v462_v52 = vmul.f32 %v2324_v24, %v458_v60  ;;  %vm467_vm12 = vweird.f32 %v2324_v24 }
 0x160   :  { %vm468_vm15 = vmor %vm466_vm14, %vm467_vm12  ;;  %vm486_vm1 = vcmp.eq.f32.partialorder %v485_v12, 8.507059e+37 }
 0x161   :  { %v463_v39 = vsub.f32 1.0, %v462_v52 }
 0x162   :  { %v315_v4 = vpop.permute.xlu1 %314 }
 0x163   :  { %v413_v11 = vpop.permute.xlu0 %412  ;;  %v323_v40 = vadd.f32 %v315_v4, %v298_v14  ;;  %v464_v57 = vmul.f32 %v2324_v24, %v463_v39  ;;  %v487_v4 = vand.u32 2147483648, %v459_v58  ;;  %v484_v14 = vsel %vm483_vm13, %v2322_v45, %v480_v63  ;;  %v509_v58 = vpop.permute.xlu2 %508 }
 0x164   :  { %v422_v7 = vadd.f32 %v413_v11, %v397_v2 }
 0x165   :  { %v488_v29 = vor.u32 1.1754944e-38, %v487_v4 }
 0x166   :  { %v447_v21 = vadd.f32 %v438_v17, %v422_v7  ;;  %v465_v7 = vadd.f32 %v2324_v24, %v464_v57  ;;  %v472_v17 = vand.u32 2147483648, %v458_v60 }
 0x168   :  { %v2231_v41 = vmul.f32 -1.442695, %v447_v21  ;;  %v469_v52 = vsel %vm468_vm15, %v2324_v24, %v465_v7 }
 0x16a   :  { %2325 = vpow2.f32 %v2231_v41  ;;  %v365_v30 = vpop.permute.xlu1 %364  ;;  %v470_v41 = vand.u32 2147483647, %v458_v60 }
 0x16b   :  { %v340_v28 = vpop.permute.xlu0 %339 }
 0x16c   :  { %v348_v47 = vadd.f32 %v340_v28, %v323_v40  ;;  %vm471_vm2 = vcmp.eq.f32.partialorder %v470_v41, 8.507059e+37 }
 0x16e   :  { %v373_v15 = vadd.f32 %v365_v30, %v348_v47  ;;  %v489_v30 = vsel %vm486_vm1, %v488_v29, %v484_v14  ;;  %v473_v47 = vor.u32 1.1754944e-38, %v472_v17 }
 0x170   :  { %v2326_v38 = vpop.eup %2325  ;;  %v398_v56 = vadd.f32 %v390_v46, %v373_v15  ;;  %v474_v39 = vsel %vm471_vm2, %v473_v47, %v469_v52 }
 0x171   :  { %v460_v31 = vadd.f32 1.0, %v2326_v38  ;;  %v511_v38 = vmul.f32 %v509_v58, %v489_v30 }
 0x172   :  { %v440_v2 = vpop.permute.xlu1 %439 }
 0x173   :  { %2327 = vrcp.f32 %v460_v31  ;;  %v415_v20 = vpop.permute.xlu0 %414  ;;  %v502_v60 = vand.u32 2147483648, %v460_v31  ;;  %vm496_vm4 = vweird.f32 %v460_v31  ;;  %v500_v45 = vand.u32 2147483647, %v460_v31 }
 0x174   :  { %v423_v51 = vadd.f32 %v415_v20, %v398_v56 }
 0x175   :  { %v503_v57 = vor.u32 1.1754944e-38, %v502_v60  ;;  %vm501_vm6 = vcmp.eq.f32.partialorder %v500_v45, 8.507059e+37 }
 0x176   :  { %v448_v11 = vadd.f32 %v440_v2, %v423_v51 }
 0x178   :  { %2329 = vtanh.f32 %v448_v11 }
 0x179   :  { %v2328_v21 = vpop.eup %2327 }
 0x17a   :  { %v492_v40 = vmul.f32 %v2328_v21, %v460_v31  ;;  %vm497_vm3 = vweird.f32 %v2328_v21 }
 0x17b   :  { %vm498_vm5 = vmor %vm496_vm4, %vm497_vm3 }
 0x17c   :  { %v493_v28 = vsub.f32 1.0, %v492_v40 }
 0x17e   :  { %v2330_v42 = vpop.eup %2329  ;;  %v494_v15 = vmul.f32 %v2328_v21, %v493_v28 }
 0x17f   :  { %v512_v46 = vmul.f32 %v2330_v42, %v474_v39 }
 0x180   :  { %v495_v56 = vadd.f32 %v2328_v21, %v494_v15 }
 0x181   :  { %v2692_v55 = vadd.f32 %v512_v46, %v511_v38 }
 0x182   :  { %v499_v24 = vsel %vm498_vm5, %v2328_v21, %v495_v56  ;;  %vm785_vm5 = vcmask 48160  }
 0x183   :  { %2331 = vtanh.f32 %v2692_v55  ;;  %v504_v51 = vsel %vm501_vm6, %v503_v57, %v499_v24 }
 0x189   :  { %v2332_v20 = vpop.eup %2331 }
 0x18a   :  { %v515_v63 = vmul.f32 %v2332_v20, %v504_v51 }
 0x18c   :  { %v543_v2 = vperm.slane %v515_v63, 1  ;;  %v518_v4 = vperm.slane %v515_v63, 0  ;;  %517 = vst.msk [vmem:[#allocation2] sm:$0xff] %vm516_vm7, %v515_v63  ;;  %v568_v31 = vperm.slane %v515_v63, 2  ;;  %v618_v41 = vperm.slane %v515_v63, 4 }
 0x18d   :  { %v593_v29 = vperm.slane %v515_v63, 3  ;;  %v643_v28 = vperm.slane %v515_v63, 5  ;;  %v668_v15 = vperm.slane %v515_v63, 6  ;;  %v693_v56 = vperm.slane %v515_v63, 7 }
 0x18e   :  { %v544_v11 = vmul.f32 %v543_v2, %v2538_v27  ;;  %v520_v12 = vmul.f32 %v518_v4, %v2530_v19  ;;  %v519_v7 = vmul.f32 %v518_v4, %v2528_v18  ;;  %v570_v17 = vmul.f32 %v568_v31, %v2546_v37 }
 0x18f   :  { %v569_v21 = vmul.f32 %v568_v31, %v2536_v26  ;;  %v545_v14 = vmul.f32 %v543_v2, %v2558_v62  ;;  %v619_v40 = vmul.f32 %v618_v41, %v2594_v16  ;;  %v595_v52 = vmul.f32 %v593_v29, %v2555_v54 }
 0x190   :  { %552 = vrot.lane.b32.xlu2 %v544_v11, %s2438_s0  ;;  %529 = vrot.lane.b32.xlu1 %v520_v12, %s2438_s0  ;;  %v594_v30 = vmul.f32 %v593_v29, %v2544_v36  ;;  %v645_v47 = vmul.f32 %v643_v28, %v2560_v0  ;;  %v644_v42 = vmul.f32 %v643_v28, %v2562_v1 }
 0x191   :  { %527 = vrot.lane.b32.xlu0 %v519_v7, %s2438_s0  ;;  %v620_v58 = vmul.f32 %v618_v41, %v2553_v53  ;;  %v670_v39 = vmul.f32 %v668_v15, %v2581_v9  ;;  %v669_v38 = vmul.f32 %v668_v15, %v2540_v32  ;;  %v521_v46 = vmul.f32 %v518_v4, %v2583_v10 }
 0x192   :  { %v695_v60 = vmul.f32 %v693_v56, %v2614_v35  ;;  %v694_v45 = vmul.f32 %v693_v56, %v2598_v22  ;;  %v546_v24 = vmul.f32 %v543_v2, %v2601_v25  ;;  %v621_v57 = vmul.f32 %v618_v41, %v2625_v44 }
 0x193   :  { %v596_v20 = vmul.f32 %v593_v29, %v2611_v33  ;;  %v571_v51 = vmul.f32 %v568_v31, %v2549_v48  ;;  %v547_v63 = vmul.f32 %v543_v2, %v2579_v8  ;;  %v646_v11 = vmul.f32 %v643_v28, %v2636_v50 }
 0x194   :  { %v522_v12 = vmul.f32 %v518_v4, %v2623_v43  ;;  %v696_v7 = vmul.f32 %v693_v56, %v2648_v59  ;;  %v647_v2 = vmul.f32 %v643_v28, %v2663_v3  ;;  %v622_v4 = vmul.f32 %v618_v41, %v2668_v6 }
 0x198   :  { %579 = vrot.lane.b32.xlu2 %v570_v17, %s2438_s0  ;;  %577 = vrot.lane.b32.xlu1 %v569_v21, %s2438_s0  ;;  %v572_v17 = vmul.f32 %v568_v31, %v2652_v61  ;;  %v671_v21 = vmul.f32 %v668_v15, %v2634_v49  ;;  %v697_v31 = vmul.f32 %v693_v56, %v2676_v13  ;;  %v3165_v56 = vld [vmem:[#allocation5_spill] sm:$0xff] }
 0x199   :  { %554 = vrot.lane.b32.xlu0 %v545_v14, %s2438_s0  ;;  %v597_v14 = vmul.f32 %v593_v29, %v2666_v5 }
 0x1a0   :  { %627 = vrot.lane.b32.xlu2 %v619_v40, %s2438_s0  ;;  %604 = vrot.lane.b32.xlu1 %v595_v52, %s2438_s0  ;;  %v3164_v40 = vld [vmem:[#allocation4_spill] sm:$0xff] }
 0x1a1   :  { %602 = vrot.lane.b32.xlu0 %v594_v30, %s2438_s0  ;;  %v672_v52 = vmul.f32 %v668_v15, %v3164_v40 }
 0x1a8   :  { %654 = vrot.lane.b32.xlu2 %v645_v47, %s2438_s0  ;;  %652 = vrot.lane.b32.xlu1 %v644_v42, %s2438_s0 }
 0x1a9   :  { %629 = vrot.lane.b32.xlu0 %v620_v58, %s2438_s0 }
 0x1b0   :  { %679 = vrot.lane.b32.xlu2 %v670_v39, %s2438_s0  ;;  %677 = vrot.lane.b32.xlu1 %v669_v38, %s2438_s0 }
 0x1b1   :  { %531 = vrot.lane.b32.xlu0 %v521_v46, %s2438_s0 }
 0x1b8   :  { %704 = vrot.lane.b32.xlu2 %v695_v60, %s2438_s0  ;;  %702 = vrot.lane.b32.xlu1 %v694_v45, %s2438_s0 }
 0x1b9   :  { %556 = vrot.lane.b32.xlu0 %v546_v24, %s2438_s0  ;;  %v3166_v24 = vld [vmem:[#allocation3_spill] sm:$0xff] }
 0x1c0   :  { %631 = vrot.lane.b32.xlu2 %v621_v57, %s2438_s0  ;;  %606 = vrot.lane.b32.xlu1 %v596_v20, %s2438_s0 }
 0x1c1   :  { %581 = vrot.lane.b32.xlu0 %v571_v51, %s2438_s0 }
 0x1c8   :  { %558 = vrot.lane.b32.xlu2 %v547_v63, %s2438_s0  ;;  %656 = vrot.lane.b32.xlu1 %v646_v11, %s2438_s0 }
 0x1c9   :  { %533 = vrot.lane.b32.xlu0 %v522_v12, %s2438_s0 }
 0x1d0   :  { %706 = vrot.lane.b32.xlu2 %v696_v7, %s2438_s0  ;;  %583 = vrot.lane.b32.xlu1 %v572_v17, %s2438_s0 }
 0x1d1   :  { %681 = vrot.lane.b32.xlu0 %v671_v21, %s2438_s0 }
 0x1d8   :  { %658 = vrot.lane.b32.xlu2 %v647_v2, %s2438_s0  ;;  %633 = vrot.lane.b32.xlu1 %v622_v4, %s2438_s0 }
 0x1d9   :  { %608 = vrot.lane.b32.xlu0 %v597_v14, %s2438_s0 }
 0x1e0   :  { %777 = vrot.lane.b32.xlu2 %v2692_v55, %s2438_s0  ;;  %708 = vrot.lane.b32.xlu1 %v697_v31, %s2438_s0 }
 0x1e1   :  { %683 = vrot.lane.b32.xlu0 %v672_v52, %s2438_s0 }
 0x1ea   :  { %v553_v41 = vpop.permute.xlu2 %552 }
 0x1f2   :  { %v580_v30 = vpop.permute.xlu2 %579 }
 0x1fa   :  { %v628_v47 = vpop.permute.xlu2 %627 }
 0x202   :  { %v530_v29 = vpop.permute.xlu1 %529  ;;  %v655_v38 = vpop.permute.xlu2 %654 }
 0x203   :  { %v528_v28 = vpop.permute.xlu0 %527  ;;  %v540_v60 = vadd.f32 %v530_v29, %v3165_v56 }
 0x204   :  { %v539_v55 = vadd.f32 %v528_v28, %v3166_v24 }
 0x206   :  { %v564_v11 = vadd.f32 %v553_v41, %v539_v55 }
 0x20a   :  { %v578_v42 = vpop.permute.xlu1 %577  ;;  %v680_v51 = vpop.permute.xlu2 %679 }
 0x20b   :  { %v555_v58 = vpop.permute.xlu0 %554  ;;  %v589_v7 = vadd.f32 %v578_v42, %v564_v11 }
 0x20c   :  { %v565_v15 = vadd.f32 %v555_v58, %v540_v60 }
 0x20e   :  { %v590_v57 = vadd.f32 %v580_v30, %v565_v15 }
 0x212   :  { %v605_v39 = vpop.permute.xlu1 %604  ;;  %v705_v14 = vpop.permute.xlu2 %704 }
 0x213   :  { %v603_v46 = vpop.permute.xlu0 %602  ;;  %v615_v63 = vadd.f32 %v605_v39, %v590_v57 }
 0x214   :  { %v614_v21 = vadd.f32 %v603_v46, %v589_v7 }
 0x216   :  { %v639_v31 = vadd.f32 %v628_v47, %v614_v21 }
 0x21a   :  { %v653_v45 = vpop.permute.xlu1 %652  ;;  %v632_v15 = vpop.permute.xlu2 %631 }
 0x21b   :  { %v630_v20 = vpop.permute.xlu0 %629  ;;  %v664_v40 = vadd.f32 %v653_v45, %v639_v31 }
 0x21c   :  { %v640_v12 = vadd.f32 %v630_v20, %v615_v63 }
 0x21e   :  { %v665_v2 = vadd.f32 %v655_v38, %v640_v12 }
 0x220   :  { %v690_v52 = vadd.f32 %v680_v51, %v665_v2 }
 0x222   :  { %v678_v17 = vpop.permute.xlu1 %677  ;;  %v715_v58 = vadd.f32 %v705_v14, %v690_v52  ;;  %v559_v45 = vpop.permute.xlu2 %558 }
 0x223   :  { %v532_v4 = vpop.permute.xlu0 %531  ;;  %v689_v60 = vadd.f32 %v678_v17, %v664_v40 }
 0x224   :  { %v2233_v30 = vmul.f32 -1.442695, %v715_v58  ;;  %v541_v42 = vadd.f32 %v532_v4, %v2533_v23 }
 0x226   :  { %2333 = vpow2.f32 %v2233_v30 }
 0x22a   :  { %v703_v29 = vpop.permute.xlu1 %702 }
 0x22b   :  { %v557_v56 = vpop.permute.xlu0 %556  ;;  %v714_v28 = vadd.f32 %v703_v29, %v689_v60 }
 0x22c   :  { %v566_v38 = vadd.f32 %v557_v56, %v541_v42  ;;  %v2334_v55 = vpop.eup %2333 }
 0x22d   :  { %v2232_v24 = vmul.f32 -1.442695, %v714_v28  ;;  %v728_v51 = vadd.f32 1.0, %v2334_v55 }
 0x22f   :  { %2335 = vpow2.f32 %v2232_v24  ;;  %v707_v24 = vpop.permute.xlu2 %706  ;;  %vm750_vm9 = vweird.f32 %v728_v51 }
 0x230   :  { %2337 = vrcp.f32 %v728_v51 }
 0x232   :  { %v607_v39 = vpop.permute.xlu1 %606 }
 0x233   :  { %v582_v41 = vpop.permute.xlu0 %581 }
 0x234   :  { %v591_v46 = vadd.f32 %v582_v41, %v566_v38 }
 0x235   :  { %v2336_v57 = vpop.eup %2335 }
 0x236   :  { %v616_v40 = vadd.f32 %v607_v39, %v591_v46  ;;  %v727_v63 = vadd.f32 1.0, %v2336_v57  ;;  %v2338_v56 = vpop.eup %2337 }
 0x237   :  { %v746_v29 = vmul.f32 %v2338_v56, %v728_v51  ;;  %v659_v46 = vpop.permute.xlu2 %658  ;;  %vm751_vm8 = vweird.f32 %v2338_v56 }
 0x238   :  { %v641_v11 = vadd.f32 %v632_v15, %v616_v40  ;;  %2339 = vrcp.f32 %v727_v63  ;;  %vm752_vm11 = vmor %vm750_vm9, %vm751_vm8  ;;  %vm735_vm12 = vweird.f32 %v727_v63 }
 0x239   :  { %v747_v39 = vsub.f32 1.0, %v746_v29 }
 0x23a   :  { %v657_v47 = vpop.permute.xlu1 %656 }
 0x23b   :  { %v534_v20 = vpop.permute.xlu0 %533  ;;  %v666_v12 = vadd.f32 %v657_v47, %v641_v11  ;;  %v748_v55 = vmul.f32 %v2338_v56, %v747_v39 }
 0x23c   :  { %v542_v21 = vadd.f32 %v534_v20, %v2542_v34 }
 0x23d   :  { %v749_v11 = vadd.f32 %v2338_v56, %v748_v55 }
 0x23e   :  { %v2340_v14 = vpop.eup %2339  ;;  %v567_v31 = vadd.f32 %v559_v45, %v542_v21  ;;  %v754_v21 = vand.u32 2147483647, %v728_v51 }
 0x23f   :  { %v731_v60 = vmul.f32 %v2340_v14, %v727_v63  ;;  %vm736_vm10 = vweird.f32 %v2340_v14 }
 0x240   :  { %vm737_vm13 = vmor %vm735_vm12, %vm736_vm10  ;;  %vm755_vm14 = vcmp.eq.f32.partialorder %v754_v21, 8.507059e+37 }
 0x241   :  { %v732_v42 = vsub.f32 1.0, %v731_v60 }
 0x242   :  { %v584_v7 = vpop.permute.xlu1 %583 }
 0x243   :  { %v682_v17 = vpop.permute.xlu0 %681  ;;  %v592_v58 = vadd.f32 %v584_v7, %v567_v31  ;;  %v733_v20 = vmul.f32 %v2340_v14, %v732_v42  ;;  %v756_v7 = vand.u32 2147483648, %v728_v51  ;;  %v753_v31 = vsel %vm752_vm11, %v2338_v56, %v749_v11  ;;  %v778_v51 = vpop.permute.xlu2 %777 }
 0x244   :  { %v691_v2 = vadd.f32 %v682_v17, %v666_v12 }
 0x245   :  { %v757_v29 = vor.u32 1.1754944e-38, %v756_v7 }
 0x246   :  { %v716_v4 = vadd.f32 %v707_v24, %v691_v2  ;;  %v734_v2 = vadd.f32 %v2340_v14, %v733_v20  ;;  %v741_v24 = vand.u32 2147483648, %v727_v63 }
 0x248   :  { %v2234_v52 = vmul.f32 -1.442695, %v716_v4  ;;  %v738_v60 = vsel %vm737_vm13, %v2340_v14, %v734_v2 }
 0x24a   :  { %2341 = vpow2.f32 %v2234_v52  ;;  %v634_v28 = vpop.permute.xlu1 %633  ;;  %v739_v52 = vand.u32 2147483647, %v727_v63 }
 0x24b   :  { %v609_v30 = vpop.permute.xlu0 %608 }
 0x24c   :  { %v617_v15 = vadd.f32 %v609_v30, %v592_v58  ;;  %vm740_vm15 = vcmp.eq.f32.partialorder %v739_v52, 8.507059e+37 }
 0x24e   :  { %v642_v41 = vadd.f32 %v634_v28, %v617_v15  ;;  %v758_v28 = vsel %vm755_vm14, %v757_v29, %v753_v31  ;;  %v742_v15 = vor.u32 1.1754944e-38, %v741_v24 }
 0x250   :  { %v2342_v38 = vpop.eup %2341  ;;  %v667_v57 = vadd.f32 %v659_v46, %v642_v41  ;;  %v743_v42 = vsel %vm740_vm15, %v742_v15, %v738_v60 }
 0x251   :  { %v729_v47 = vadd.f32 1.0, %v2342_v38  ;;  %v780_v38 = vmul.f32 %v778_v51, %v758_v28 }
 0x252   :  { %v709_v12 = vpop.permute.xlu1 %708 }
 0x253   :  { %2343 = vrcp.f32 %v729_v47  ;;  %v684_v40 = vpop.permute.xlu0 %683  ;;  %v771_v63 = vand.u32 2147483648, %v729_v47  ;;  %vm765_vm2 = vweird.f32 %v729_v47  ;;  %v769_v56 = vand.u32 2147483647, %v729_v47 }
 0x254   :  { %v692_v45 = vadd.f32 %v684_v40, %v667_v57 }
 0x255   :  { %v772_v20 = vor.u32 1.1754944e-38, %v771_v63  ;;  %vm770_vm4 = vcmp.eq.f32.partialorder %v769_v56, 8.507059e+37 }
 0x256   :  { %v717_v17 = vadd.f32 %v709_v12, %v692_v45 }
 0x258   :  { %2345 = vtanh.f32 %v717_v17 }
 0x259   :  { %v2344_v4 = vpop.eup %2343 }
 0x25a   :  { %v761_v58 = vmul.f32 %v2344_v4, %v729_v47  ;;  %vm766_vm1 = vweird.f32 %v2344_v4 }
 0x25b   :  { %vm767_vm3 = vmor %vm765_vm2, %vm766_vm1 }
 0x25c   :  { %v762_v30 = vsub.f32 1.0, %v761_v58 }
 0x25e   :  { %v2346_v39 = vpop.eup %2345  ;;  %v763_v41 = vmul.f32 %v2344_v4, %v762_v30 }
 0x25f   :  { %v781_v46 = vmul.f32 %v2346_v39, %v743_v42 }
 0x260   :  { %v764_v57 = vadd.f32 %v2344_v4, %v763_v41 }
 0x261   :  { %v2765_v55 = vadd.f32 %v781_v46, %v780_v38 }
 0x262   :  { %v768_v14 = vsel %vm767_vm3, %v2344_v4, %v764_v57  ;;  %vm1054_vm3 = vcmask 64560  }
 0x263   :  { %2347 = vtanh.f32 %v2765_v55  ;;  %v773_v45 = vsel %vm770_vm4, %v772_v20, %v768_v14 }
 0x269   :  { %v2348_v40 = vpop.eup %2347 }
 0x26a   :  { %v784_v11 = vmul.f32 %v2348_v40, %v773_v45 }
 0x26c   :  { %v812_v12 = vperm.slane %v784_v11, 1  ;;  %v787_v7 = vperm.slane %v784_v11, 0  ;;  %786 = vst.msk [vmem:[#allocation2] sm:$0xff] %vm785_vm5, %v784_v11  ;;  %v837_v47 = vperm.slane %v784_v11, 2  ;;  %v887_v52 = vperm.slane %v784_v11, 4 }
 0x26d   :  { %v862_v29 = vperm.slane %v784_v11, 3  ;;  %v912_v30 = vperm.slane %v784_v11, 5  ;;  %v937_v41 = vperm.slane %v784_v11, 6  ;;  %v962_v57 = vperm.slane %v784_v11, 7 }
 0x26e   :  { %v813_v17 = vmul.f32 %v812_v12, %v2538_v27  ;;  %v789_v21 = vmul.f32 %v787_v7, %v2530_v19  ;;  %v788_v2 = vmul.f32 %v787_v7, %v2528_v18  ;;  %v839_v24 = vmul.f32 %v837_v47, %v2546_v37 }
 0x26f   :  { %v838_v4 = vmul.f32 %v837_v47, %v2536_v26  ;;  %v814_v31 = vmul.f32 %v812_v12, %v2558_v62  ;;  %v888_v58 = vmul.f32 %v887_v52, %v2594_v16  ;;  %v864_v60 = vmul.f32 %v862_v29, %v2555_v54 }
 0x270   :  { %821 = vrot.lane.b32.xlu2 %v813_v17, %s2438_s0  ;;  %798 = vrot.lane.b32.xlu1 %v789_v21, %s2438_s0  ;;  %v863_v28 = vmul.f32 %v862_v29, %v2544_v36  ;;  %v914_v15 = vmul.f32 %v912_v30, %v2560_v0  ;;  %v913_v39 = vmul.f32 %v912_v30, %v2562_v1 }
 0x271   :  { %796 = vrot.lane.b32.xlu0 %v788_v2, %s2438_s0  ;;  %v889_v51 = vmul.f32 %v887_v52, %v2553_v53  ;;  %v939_v42 = vmul.f32 %v937_v41, %v2581_v9  ;;  %v938_v38 = vmul.f32 %v937_v41, %v2540_v32  ;;  %v790_v46 = vmul.f32 %v787_v7, %v2583_v10 }
 0x272   :  { %v964_v63 = vmul.f32 %v962_v57, %v2614_v35  ;;  %v963_v56 = vmul.f32 %v962_v57, %v2598_v22  ;;  %v815_v14 = vmul.f32 %v812_v12, %v2601_v25  ;;  %v890_v20 = vmul.f32 %v887_v52, %v2625_v44 }
 0x273   :  { %v865_v40 = vmul.f32 %v862_v29, %v2611_v33  ;;  %v840_v45 = vmul.f32 %v837_v47, %v2549_v48  ;;  %v816_v11 = vmul.f32 %v812_v12, %v2579_v8  ;;  %v915_v17 = vmul.f32 %v912_v30, %v2636_v50 }
 0x274   :  { %v791_v21 = vmul.f32 %v787_v7, %v2623_v43  ;;  %v965_v2 = vmul.f32 %v962_v57, %v2648_v59  ;;  %v916_v12 = vmul.f32 %v912_v30, %v2663_v3  ;;  %v891_v7 = vmul.f32 %v887_v52, %v2668_v6 }
 0x278   :  { %848 = vrot.lane.b32.xlu2 %v839_v24, %s2438_s0  ;;  %846 = vrot.lane.b32.xlu1 %v838_v4, %s2438_s0  ;;  %v841_v24 = vmul.f32 %v837_v47, %v2652_v61  ;;  %v940_v4 = vmul.f32 %v937_v41, %v2634_v49  ;;  %v966_v47 = vmul.f32 %v962_v57, %v2676_v13  ;;  %v3168_v57 = vld [vmem:[#allocation5_spill] sm:$0xff] }
 0x279   :  { %823 = vrot.lane.b32.xlu0 %v814_v31, %s2438_s0  ;;  %v866_v31 = vmul.f32 %v862_v29, %v2666_v5 }
 0x280   :  { %896 = vrot.lane.b32.xlu2 %v888_v58, %s2438_s0  ;;  %873 = vrot.lane.b32.xlu1 %v864_v60, %s2438_s0  ;;  %v3167_v58 = vld [vmem:[#allocation4_spill] sm:$0xff] }
 0x281   :  { %871 = vrot.lane.b32.xlu0 %v863_v28, %s2438_s0  ;;  %v941_v60 = vmul.f32 %v937_v41, %v3167_v58 }
 0x288   :  { %923 = vrot.lane.b32.xlu2 %v914_v15, %s2438_s0  ;;  %921 = vrot.lane.b32.xlu1 %v913_v39, %s2438_s0 }
 0x289   :  { %898 = vrot.lane.b32.xlu0 %v889_v51, %s2438_s0 }
 0x290   :  { %948 = vrot.lane.b32.xlu2 %v939_v42, %s2438_s0  ;;  %946 = vrot.lane.b32.xlu1 %v938_v38, %s2438_s0 }
 0x291   :  { %800 = vrot.lane.b32.xlu0 %v790_v46, %s2438_s0 }
 0x298   :  { %973 = vrot.lane.b32.xlu2 %v964_v63, %s2438_s0  ;;  %971 = vrot.lane.b32.xlu1 %v963_v56, %s2438_s0 }
 0x299   :  { %825 = vrot.lane.b32.xlu0 %v815_v14, %s2438_s0  ;;  %v3169_v14 = vld [vmem:[#allocation3_spill] sm:$0xff] }
 0x2a0   :  { %900 = vrot.lane.b32.xlu2 %v890_v20, %s2438_s0  ;;  %875 = vrot.lane.b32.xlu1 %v865_v40, %s2438_s0 }
 0x2a1   :  { %850 = vrot.lane.b32.xlu0 %v840_v45, %s2438_s0 }
 0x2a8   :  { %827 = vrot.lane.b32.xlu2 %v816_v11, %s2438_s0  ;;  %925 = vrot.lane.b32.xlu1 %v915_v17, %s2438_s0 }
 0x2a9   :  { %802 = vrot.lane.b32.xlu0 %v791_v21, %s2438_s0 }
 0x2b0   :  { %975 = vrot.lane.b32.xlu2 %v965_v2, %s2438_s0  ;;  %852 = vrot.lane.b32.xlu1 %v841_v24, %s2438_s0 }
 0x2b1   :  { %950 = vrot.lane.b32.xlu0 %v940_v4, %s2438_s0 }
 0x2b8   :  { %927 = vrot.lane.b32.xlu2 %v916_v12, %s2438_s0  ;;  %902 = vrot.lane.b32.xlu1 %v891_v7, %s2438_s0 }
 0x2b9   :  { %877 = vrot.lane.b32.xlu0 %v866_v31, %s2438_s0 }
 0x2c0   :  { %1046 = vrot.lane.b32.xlu2 %v2765_v55, %s2438_s0  ;;  %977 = vrot.lane.b32.xlu1 %v966_v47, %s2438_s0 }
 0x2c1   :  { %952 = vrot.lane.b32.xlu0 %v941_v60, %s2438_s0 }
 0x2ca   :  { %v822_v52 = vpop.permute.xlu2 %821 }
 0x2d2   :  { %v849_v28 = vpop.permute.xlu2 %848 }
 0x2da   :  { %v897_v15 = vpop.permute.xlu2 %896 }
 0x2e2   :  { %v799_v29 = vpop.permute.xlu1 %798  ;;  %v924_v38 = vpop.permute.xlu2 %923 }
 0x2e3   :  { %v797_v30 = vpop.permute.xlu0 %796  ;;  %v809_v63 = vadd.f32 %v799_v29, %v3168_v57 }
 0x2e4   :  { %v808_v55 = vadd.f32 %v797_v30, %v3169_v14 }
 0x2e6   :  { %v833_v17 = vadd.f32 %v822_v52, %v808_v55 }
 0x2ea   :  { %v847_v39 = vpop.permute.xlu1 %846  ;;  %v949_v45 = vpop.permute.xlu2 %948 }
 0x2eb   :  { %v824_v51 = vpop.permute.xlu0 %823  ;;  %v858_v2 = vadd.f32 %v847_v39, %v833_v17 }
 0x2ec   :  { %v834_v41 = vadd.f32 %v824_v51, %v809_v63 }
 0x2ee   :  { %v859_v20 = vadd.f32 %v849_v28, %v834_v41 }
 0x2f2   :  { %v874_v42 = vpop.permute.xlu1 %873  ;;  %v974_v31 = vpop.permute.xlu2 %973 }
 0x2f3   :  { %v872_v46 = vpop.permute.xlu0 %871  ;;  %v884_v11 = vadd.f32 %v874_v42, %v859_v20 }
 0x2f4   :  { %v883_v4 = vadd.f32 %v872_v46, %v858_v2 }
 0x2f6   :  { %v908_v47 = vadd.f32 %v897_v15, %v883_v4 }
 0x2fa   :  { %v922_v56 = vpop.permute.xlu1 %921  ;;  %v901_v41 = vpop.permute.xlu2 %900 }
 0x2fb   :  { %v899_v40 = vpop.permute.xlu0 %898  ;;  %v933_v58 = vadd.f32 %v922_v56, %v908_v47 }
 0x2fc   :  { %v909_v21 = vadd.f32 %v899_v40, %v884_v11 }
 0x2fe   :  { %v934_v12 = vadd.f32 %v924_v38, %v909_v21 }
 0x300   :  { %v959_v60 = vadd.f32 %v949_v45, %v934_v12 }
 0x302   :  { %v947_v24 = vpop.permute.xlu1 %946  ;;  %v984_v51 = vadd.f32 %v974_v31, %v959_v60  ;;  %v828_v56 = vpop.permute.xlu2 %827 }
 0x303   :  { %v801_v7 = vpop.permute.xlu0 %800  ;;  %v958_v63 = vadd.f32 %v947_v24, %v933_v58 }
 0x304   :  { %v2236_v28 = vmul.f32 -1.442695, %v984_v51  ;;  %v810_v39 = vadd.f32 %v801_v7, %v2533_v23 }
 0x306   :  { %2349 = vpow2.f32 %v2236_v28 }
 0x30a   :  { %v972_v29 = vpop.permute.xlu1 %971 }
 0x30b   :  { %v826_v57 = vpop.permute.xlu0 %825  ;;  %v983_v30 = vadd.f32 %v972_v29, %v958_v63 }
 0x30c   :  { %v835_v38 = vadd.f32 %v826_v57, %v810_v39  ;;  %v2350_v55 = vpop.eup %2349 }
 0x30d   :  { %v2235_v14 = vmul.f32 -1.442695, %v983_v30  ;;  %v997_v45 = vadd.f32 1.0, %v2350_v55 }
 0x30f   :  { %2351 = vpow2.f32 %v2235_v14  ;;  %v976_v14 = vpop.permute.xlu2 %975  ;;  %vm1019_vm7 = vweird.f32 %v997_v45 }
 0x310   :  { %2353 = vrcp.f32 %v997_v45 }
 0x312   :  { %v876_v42 = vpop.permute.xlu1 %875 }
 0x313   :  { %v851_v52 = vpop.permute.xlu0 %850 }
 0x314   :  { %v860_v46 = vadd.f32 %v851_v52, %v835_v38 }
 0x315   :  { %v2352_v20 = vpop.eup %2351 }
 0x316   :  { %v885_v58 = vadd.f32 %v876_v42, %v860_v46  ;;  %v996_v11 = vadd.f32 1.0, %v2352_v20  ;;  %v2354_v57 = vpop.eup %2353 }
 0x317   :  { %v1015_v29 = vmul.f32 %v2354_v57, %v997_v45  ;;  %v928_v46 = vpop.permute.xlu2 %927  ;;  %vm1020_vm6 = vweird.f32 %v2354_v57 }
 0x318   :  { %v910_v17 = vadd.f32 %v901_v41, %v885_v58  ;;  %2355 = vrcp.f32 %v996_v11  ;;  %vm1021_vm9 = vmor %vm1019_vm7, %vm1020_vm6  ;;  %vm1004_vm10 = vweird.f32 %v996_v11 }
 0x319   :  { %v1016_v42 = vsub.f32 1.0, %v1015_v29 }
 0x31a   :  { %v926_v15 = vpop.permute.xlu1 %925 }
 0x31b   :  { %v803_v40 = vpop.permute.xlu0 %802  ;;  %v935_v21 = vadd.f32 %v926_v15, %v910_v17  ;;  %v1017_v55 = vmul.f32 %v2354_v57, %v1016_v42 }
 0x31c   :  { %v811_v4 = vadd.f32 %v803_v40, %v2542_v34 }
 0x31d   :  { %v1018_v17 = vadd.f32 %v2354_v57, %v1017_v55 }
 0x31e   :  { %v2356_v31 = vpop.eup %2355  ;;  %v836_v47 = vadd.f32 %v828_v56, %v811_v4  ;;  %v1023_v4 = vand.u32 2147483647, %v997_v45 }
 0x31f   :  { %v1000_v63 = vmul.f32 %v2356_v31, %v996_v11  ;;  %vm1005_vm8 = vweird.f32 %v2356_v31 }
 0x320   :  { %vm1006_vm11 = vmor %vm1004_vm10, %vm1005_vm8  ;;  %vm1024_vm12 = vcmp.eq.f32.partialorder %v1023_v4, 8.507059e+37 }
 0x321   :  { %v1001_v39 = vsub.f32 1.0, %v1000_v63 }
 0x322   :  { %v853_v2 = vpop.permute.xlu1 %852 }
 0x323   :  { %v951_v24 = vpop.permute.xlu0 %950  ;;  %v861_v51 = vadd.f32 %v853_v2, %v836_v47  ;;  %v1002_v40 = vmul.f32 %v2356_v31, %v1001_v39  ;;  %v1025_v2 = vand.u32 2147483648, %v997_v45  ;;  %v1022_v47 = vsel %vm1021_vm9, %v2354_v57, %v1018_v17  ;;  %v1047_v45 = vpop.permute.xlu2 %1046 }
 0x324   :  { %v960_v12 = vadd.f32 %v951_v24, %v935_v21 }
 0x325   :  { %v1026_v29 = vor.u32 1.1754944e-38, %v1025_v2 }
 0x326   :  { %v985_v7 = vadd.f32 %v976_v14, %v960_v12  ;;  %v1003_v12 = vadd.f32 %v2356_v31, %v1002_v40  ;;  %v1010_v14 = vand.u32 2147483648, %v996_v11 }
 0x328   :  { %v2237_v60 = vmul.f32 -1.442695, %v985_v7  ;;  %v1007_v63 = vsel %vm1006_vm11, %v2356_v31, %v1003_v12 }
 0x32a   :  { %2357 = vpow2.f32 %v2237_v60  ;;  %v903_v30 = vpop.permute.xlu1 %902  ;;  %v1008_v60 = vand.u32 2147483647, %v996_v11 }
 0x32b   :  { %v878_v28 = vpop.permute.xlu0 %877 }
 0x32c   :  { %v886_v41 = vadd.f32 %v878_v28, %v861_v51  ;;  %vm1009_vm13 = vcmp.eq.f32.partialorder %v1008_v60, 8.507059e+37 }
 0x32e   :  { %v911_v52 = vadd.f32 %v903_v30, %v886_v41  ;;  %v1027_v30 = vsel %vm1024_vm12, %v1026_v29, %v1022_v47  ;;  %v1011_v41 = vor.u32 1.1754944e-38, %v1010_v14 }
 0x330   :  { %v2358_v38 = vpop.eup %2357  ;;  %v936_v20 = vadd.f32 %v928_v46, %v911_v52  ;;  %v1012_v39 = vsel %vm1009_vm13, %v1011_v41, %v1007_v63 }
 0x331   :  { %v998_v15 = vadd.f32 1.0, %v2358_v38  ;;  %v1049_v38 = vmul.f32 %v1047_v45, %v1027_v30 }
 0x332   :  { %v978_v21 = vpop.permute.xlu1 %977 }
 0x333   :  { %2359 = vrcp.f32 %v998_v15  ;;  %v953_v58 = vpop.permute.xlu0 %952  ;;  %v1040_v11 = vand.u32 2147483648, %v998_v15  ;;  %vm1034_vm15 = vweird.f32 %v998_v15 }
 0x334   :  { %v961_v56 = vadd.f32 %v953_v58, %v936_v20  ;;  %v1038_v20 = vand.u32 2147483647, %v998_v15 }
 0x335   :  { %v1041_v40 = vor.u32 1.1754944e-38, %v1040_v11 }
 0x336   :  { %v986_v24 = vadd.f32 %v978_v21, %v961_v56  ;;  %vm1039_vm2 = vcmp.eq.f32.partialorder %v1038_v20, 8.507059e+37 }
 0x338   :  { %2361 = vtanh.f32 %v986_v24 }
 0x339   :  { %v2360_v7 = vpop.eup %2359 }
 0x33a   :  { %v1030_v51 = vmul.f32 %v2360_v7, %v998_v15  ;;  %vm1035_vm14 = vweird.f32 %v2360_v7 }
 0x33b   :  { %vm1036_vm1 = vmor %vm1034_vm15, %vm1035_vm14 }
 0x33c   :  { %v1031_v28 = vsub.f32 1.0, %v1030_v51 }
 0x33e   :  { %v2362_v42 = vpop.eup %2361  ;;  %v1032_v52 = vmul.f32 %v2360_v7, %v1031_v28 }
 0x33f   :  { %v1050_v46 = vmul.f32 %v2362_v42, %v1012_v39 }
 0x340   :  { %v1033_v57 = vadd.f32 %v2360_v7, %v1032_v52 }
 0x341   :  { %v2838_v55 = vadd.f32 %v1050_v46, %v1049_v38 }
 0x342   :  { %v1037_v31 = vsel %vm1036_vm1, %v2360_v7, %v1033_v57  ;;  %vm1323_vm1 = vcmask 80960  }
 0x343   :  { %2363 = vtanh.f32 %v2838_v55  ;;  %v1042_v56 = vsel %vm1039_vm2, %v1041_v40, %v1037_v31 }
 0x349   :  { %v2364_v58 = vpop.eup %2363 }
 0x34a   :  { %v1053_v17 = vmul.f32 %v2364_v58, %v1042_v56 }
 0x34c   :  { %v1081_v21 = vperm.slane %v1053_v17, 1  ;;  %v1056_v2 = vperm.slane %v1053_v17, 0  ;;  %1055 = vst.msk [vmem:[#allocation2] sm:$0xff] %vm1054_vm3, %v1053_v17  ;;  %v1106_v15 = vperm.slane %v1053_v17, 2  ;;  %v1156_v60 = vperm.slane %v1053_v17, 4 }
 0x34d   :  { %v1131_v29 = vperm.slane %v1053_v17, 3  ;;  %v1181_v28 = vperm.slane %v1053_v17, 5  ;;  %v1206_v52 = vperm.slane %v1053_v17, 6  ;;  %v1231_v57 = vperm.slane %v1053_v17, 7 }
 0x34e   :  { %v1082_v24 = vmul.f32 %v1081_v21, %v2538_v27  ;;  %v1058_v4 = vmul.f32 %v1056_v2, %v2530_v19  ;;  %v1057_v12 = vmul.f32 %v1056_v2, %v2528_v18  ;;  %v1108_v14 = vmul.f32 %v1106_v15, %v2546_v37 }
 0x34f   :  { %v1107_v7 = vmul.f32 %v1106_v15, %v2536_v26  ;;  %v1083_v47 = vmul.f32 %v1081_v21, %v2558_v62  ;;  %v1157_v51 = vmul.f32 %v1156_v60, %v2594_v16  ;;  %v1133_v63 = vmul.f32 %v1131_v29, %v2555_v54 }
 0x350   :  { %1090 = vrot.lane.b32.xlu2 %v1082_v24, %s2438_s0  ;;  %1067 = vrot.lane.b32.xlu1 %v1058_v4, %s2438_s0  ;;  %v1132_v30 = vmul.f32 %v1131_v29, %v2544_v36  ;;  %v1183_v41 = vmul.f32 %v1181_v28, %v2560_v0  ;;  %v1182_v42 = vmul.f32 %v1181_v28, %v2562_v1 }
 0x351   :  { %1065 = vrot.lane.b32.xlu0 %v1057_v12, %s2438_s0  ;;  %v1158_v45 = vmul.f32 %v1156_v60, %v2553_v53  ;;  %v1208_v39 = vmul.f32 %v1206_v52, %v2581_v9  ;;  %v1207_v38 = vmul.f32 %v1206_v52, %v2540_v32  ;;  %v1059_v46 = vmul.f32 %v1056_v2, %v2583_v10 }
 0x352   :  { %v1233_v11 = vmul.f32 %v1231_v57, %v2614_v35  ;;  %v1232_v20 = vmul.f32 %v1231_v57, %v2598_v22  ;;  %v1084_v31 = vmul.f32 %v1081_v21, %v2601_v25  ;;  %v1159_v40 = vmul.f32 %v1156_v60, %v2625_v44 }
 0x353   :  { %v1134_v58 = vmul.f32 %v1131_v29, %v2611_v33  ;;  %v1109_v56 = vmul.f32 %v1106_v15, %v2549_v48  ;;  %v1085_v17 = vmul.f32 %v1081_v21, %v2579_v8  ;;  %v1184_v24 = vmul.f32 %v1181_v28, %v2636_v50 }
 0x354   :  { %v1060_v4 = vmul.f32 %v1056_v2, %v2623_v43  ;;  %v1234_v12 = vmul.f32 %v1231_v57, %v2648_v59  ;;  %v1185_v21 = vmul.f32 %v1181_v28, %v2663_v3  ;;  %v1160_v2 = vmul.f32 %v1156_v60, %v2668_v6 }
 0x358   :  { %1117 = vrot.lane.b32.xlu2 %v1108_v14, %s2438_s0  ;;  %1115 = vrot.lane.b32.xlu1 %v1107_v7, %s2438_s0  ;;  %v1110_v14 = vmul.f32 %v1106_v15, %v2652_v61  ;;  %v1209_v7 = vmul.f32 %v1206_v52, %v2634_v49  ;;  %v1235_v15 = vmul.f32 %v1231_v57, %v2676_v13  ;;  %v3171_v57 = vld [vmem:[#allocation5_spill] sm:$0xff] }
 0x359   :  { %1092 = vrot.lane.b32.xlu0 %v1083_v47, %s2438_s0  ;;  %v1135_v47 = vmul.f32 %v1131_v29, %v2666_v5 }
 0x360   :  { %1165 = vrot.lane.b32.xlu2 %v1157_v51, %s2438_s0  ;;  %1142 = vrot.lane.b32.xlu1 %v1133_v63, %s2438_s0  ;;  %v3170_v51 = vld [vmem:[#allocation4_spill] sm:$0xff] }
 0x361   :  { %1140 = vrot.lane.b32.xlu0 %v1132_v30, %s2438_s0  ;;  %v1210_v63 = vmul.f32 %v1206_v52, %v3170_v51 }
 0x368   :  { %1192 = vrot.lane.b32.xlu2 %v1183_v41, %s2438_s0  ;;  %1190 = vrot.lane.b32.xlu1 %v1182_v42, %s2438_s0 }
 0x369   :  { %1167 = vrot.lane.b32.xlu0 %v1158_v45, %s2438_s0 }
 0x370   :  { %1217 = vrot.lane.b32.xlu2 %v1208_v39, %s2438_s0  ;;  %1215 = vrot.lane.b32.xlu1 %v1207_v38, %s2438_s0 }
 0x371   :  { %1069 = vrot.lane.b32.xlu0 %v1059_v46, %s2438_s0 }
 0x378   :  { %1242 = vrot.lane.b32.xlu2 %v1233_v11, %s2438_s0  ;;  %1240 = vrot.lane.b32.xlu1 %v1232_v20, %s2438_s0 }
 0x379   :  { %1094 = vrot.lane.b32.xlu0 %v1084_v31, %s2438_s0  ;;  %v3172_v31 = vld [vmem:[#allocation3_spill] sm:$0xff] }
 0x380   :  { %1169 = vrot.lane.b32.xlu2 %v1159_v40, %s2438_s0  ;;  %1144 = vrot.lane.b32.xlu1 %v1134_v58, %s2438_s0 }
 0x381   :  { %1119 = vrot.lane.b32.xlu0 %v1109_v56, %s2438_s0 }
 0x388   :  { %1096 = vrot.lane.b32.xlu2 %v1085_v17, %s2438_s0  ;;  %1194 = vrot.lane.b32.xlu1 %v1184_v24, %s2438_s0 }
 0x389   :  { %1071 = vrot.lane.b32.xlu0 %v1060_v4, %s2438_s0 }
 0x390   :  { %1244 = vrot.lane.b32.xlu2 %v1234_v12, %s2438_s0  ;;  %1121 = vrot.lane.b32.xlu1 %v1110_v14, %s2438_s0 }
 0x391   :  { %1219 = vrot.lane.b32.xlu0 %v1209_v7, %s2438_s0 }
 0x398   :  { %1196 = vrot.lane.b32.xlu2 %v1185_v21, %s2438_s0  ;;  %1171 = vrot.lane.b32.xlu1 %v1160_v2, %s2438_s0 }
 0x399   :  { %1146 = vrot.lane.b32.xlu0 %v1135_v47, %s2438_s0 }
 0x3a0   :  { %1315 = vrot.lane.b32.xlu2 %v2838_v55, %s2438_s0  ;;  %1246 = vrot.lane.b32.xlu1 %v1235_v15, %s2438_s0 }
 0x3a1   :  { %1221 = vrot.lane.b32.xlu0 %v1210_v63, %s2438_s0 }
 0x3aa   :  { %v1091_v60 = vpop.permute.xlu2 %1090 }
 0x3b2   :  { %v1118_v30 = vpop.permute.xlu2 %1117 }
 0x3ba   :  { %v1166_v41 = vpop.permute.xlu2 %1165 }
 0x3c2   :  { %v1068_v29 = vpop.permute.xlu1 %1067  ;;  %v1193_v38 = vpop.permute.xlu2 %1192 }
 0x3c3   :  { %v1066_v28 = vpop.permute.xlu0 %1065  ;;  %v1078_v11 = vadd.f32 %v1068_v29, %v3171_v57 }
 0x3c4   :  { %v1077_v55 = vadd.f32 %v1066_v28, %v3172_v31 }
 0x3c6   :  { %v1102_v24 = vadd.f32 %v1091_v60, %v1077_v55 }
 0x3ca   :  { %v1116_v42 = vpop.permute.xlu1 %1115  ;;  %v1218_v56 = vpop.permute.xlu2 %1217 }
 0x3cb   :  { %v1093_v45 = vpop.permute.xlu0 %1092  ;;  %v1127_v12 = vadd.f32 %v1116_v42, %v1102_v24 }
 0x3cc   :  { %v1103_v52 = vadd.f32 %v1093_v45, %v1078_v11 }
 0x3ce   :  { %v1128_v40 = vadd.f32 %v1118_v30, %v1103_v52 }
 0x3d2   :  { %v1143_v39 = vpop.permute.xlu1 %1142  ;;  %v1243_v47 = vpop.permute.xlu2 %1242 }
 0x3d3   :  { %v1141_v46 = vpop.permute.xlu0 %1140  ;;  %v1153_v17 = vadd.f32 %v1143_v39, %v1128_v40 }
 0x3d4   :  { %v1152_v7 = vadd.f32 %v1141_v46, %v1127_v12 }
 0x3d6   :  { %v1177_v15 = vadd.f32 %v1166_v41, %v1152_v7 }
 0x3da   :  { %v1191_v20 = vpop.permute.xlu1 %1190  ;;  %v1170_v52 = vpop.permute.xlu2 %1169 }
 0x3db   :  { %v1168_v58 = vpop.permute.xlu0 %1167  ;;  %v1202_v51 = vadd.f32 %v1191_v20, %v1177_v15 }
 0x3dc   :  { %v1178_v4 = vadd.f32 %v1168_v58, %v1153_v17 }
 0x3de   :  { %v1203_v21 = vadd.f32 %v1193_v38, %v1178_v4 }
 0x3e0   :  { %v1228_v63 = vadd.f32 %v1218_v56, %v1203_v21 }
 0x3e2   :  { %v1216_v14 = vpop.permute.xlu1 %1215  ;;  %v1253_v45 = vadd.f32 %v1243_v47, %v1228_v63  ;;  %v1097_v20 = vpop.permute.xlu2 %1096 }
 0x3e3   :  { %v1070_v2 = vpop.permute.xlu0 %1069  ;;  %v1227_v11 = vadd.f32 %v1216_v14, %v1202_v51 }
 0x3e4   :  { %v2239_v30 = vmul.f32 -1.442695, %v1253_v45  ;;  %v1079_v42 = vadd.f32 %v1070_v2, %v2533_v23 }
 0x3e6   :  { %2365 = vpow2.f32 %v2239_v30 }
 0x3ea   :  { %v1241_v29 = vpop.permute.xlu1 %1240 }
 0x3eb   :  { %v1095_v57 = vpop.permute.xlu0 %1094  ;;  %v1252_v28 = vadd.f32 %v1241_v29, %v1227_v11 }
 0x3ec   :  { %v1104_v38 = vadd.f32 %v1095_v57, %v1079_v42  ;;  %v2366_v55 = vpop.eup %2365 }
 0x3ed   :  { %v2238_v31 = vmul.f32 -1.442695, %v1252_v28  ;;  %v1266_v56 = vadd.f32 1.0, %v2366_v55 }
 0x3ef   :  { %2367 = vpow2.f32 %v2238_v31  ;;  %v1245_v31 = vpop.permute.xlu2 %1244  ;;  %vm1288_vm5 = vweird.f32 %v1266_v56 }
 0x3f0   :  { %2369 = vrcp.f32 %v1266_v56 }
 0x3f2   :  { %v1145_v39 = vpop.permute.xlu1 %1144 }
 0x3f3   :  { %v1120_v60 = vpop.permute.xlu0 %1119 }
 0x3f4   :  { %v1129_v46 = vadd.f32 %v1120_v60, %v1104_v38 }
 0x3f5   :  { %v2368_v40 = vpop.eup %2367 }
 0x3f6   :  { %v1154_v51 = vadd.f32 %v1145_v39, %v1129_v46  ;;  %v1265_v17 = vadd.f32 1.0, %v2368_v40  ;;  %v2370_v57 = vpop.eup %2369 }
 0x3f7   :  { %v1284_v29 = vmul.f32 %v2370_v57, %v1266_v56  ;;  %v1197_v46 = vpop.permute.xlu2 %1196  ;;  %vm1289_vm4 = vweird.f32 %v2370_v57 }
 0x3f8   :  { %v1179_v24 = vadd.f32 %v1170_v52, %v1154_v51  ;;  %2371 = vrcp.f32 %v1265_v17  ;;  %vm1290_vm7 = vmor %vm1288_vm5, %vm1289_vm4  ;;  %vm1273_vm8 = vweird.f32 %v1265_v17 }
 0x3f9   :  { %v1285_v39 = vsub.f32 1.0, %v1284_v29 }
 0x3fa   :  { %v1195_v41 = vpop.permute.xlu1 %1194 }
 0x3fb   :  { %v1072_v58 = vpop.permute.xlu0 %1071  ;;  %v1204_v4 = vadd.f32 %v1195_v41, %v1179_v24  ;;  %v1286_v55 = vmul.f32 %v2370_v57, %v1285_v39 }
 0x3fc   :  { %v1080_v7 = vadd.f32 %v1072_v58, %v2542_v34 }
 0x3fd   :  { %v1287_v24 = vadd.f32 %v2370_v57, %v1286_v55 }
 0x3fe   :  { %v2372_v47 = vpop.eup %2371  ;;  %v1105_v15 = vadd.f32 %v1097_v20, %v1080_v7  ;;  %v1292_v7 = vand.u32 2147483647, %v1266_v56 }
 0x3ff   :  { %v1269_v11 = vmul.f32 %v2372_v47, %v1265_v17  ;;  %vm1274_vm6 = vweird.f32 %v2372_v47 }
 0x400   :  { %vm1275_vm9 = vmor %vm1273_vm8, %vm1274_vm6  ;;  %vm1293_vm10 = vcmp.eq.f32.partialorder %v1292_v7, 8.507059e+37 }
 0x401   :  { %v1270_v42 = vsub.f32 1.0, %v1269_v11 }
 0x402   :  { %v1122_v12 = vpop.permute.xlu1 %1121 }
 0x403   :  { %v1220_v14 = vpop.permute.xlu0 %1219  ;;  %v1130_v45 = vadd.f32 %v1122_v12, %v1105_v15  ;;  %v1271_v58 = vmul.f32 %v2372_v47, %v1270_v42  ;;  %v1294_v12 = vand.u32 2147483648, %v1266_v56  ;;  %v1291_v15 = vsel %vm1290_vm7, %v2370_v57, %v1287_v24  ;;  %v1316_v56 = vpop.permute.xlu2 %1315 }
 0x404   :  { %v1229_v21 = vadd.f32 %v1220_v14, %v1204_v4 }
 0x405   :  { %v1295_v29 = vor.u32 1.1754944e-38, %v1294_v12 }
 0x406   :  { %v1254_v2 = vadd.f32 %v1245_v31, %v1229_v21  ;;  %v1272_v21 = vadd.f32 %v2372_v47, %v1271_v58  ;;  %v1279_v31 = vand.u32 2147483648, %v1265_v17 }
 0x408   :  { %v2240_v63 = vmul.f32 -1.442695, %v1254_v2  ;;  %v1276_v11 = vsel %vm1275_vm9, %v2372_v47, %v1272_v21 }
 0x40a   :  { %2373 = vpow2.f32 %v2240_v63  ;;  %v1172_v28 = vpop.permute.xlu1 %1171  ;;  %v1277_v63 = vand.u32 2147483647, %v1265_v17 }
 0x40b   :  { %v1147_v30 = vpop.permute.xlu0 %1146 }
 0x40c   :  { %v1155_v52 = vadd.f32 %v1147_v30, %v1130_v45  ;;  %vm1278_vm11 = vcmp.eq.f32.partialorder %v1277_v63, 8.507059e+37 }
 0x40e   :  { %v1180_v60 = vadd.f32 %v1172_v28, %v1155_v52  ;;  %v1296_v28 = vsel %vm1293_vm10, %v1295_v29, %v1291_v15  ;;  %v1280_v52 = vor.u32 1.1754944e-38, %v1279_v31 }
 0x410   :  { %v2374_v38 = vpop.eup %2373  ;;  %v1205_v40 = vadd.f32 %v1197_v46, %v1180_v60  ;;  %v1281_v42 = vsel %vm1278_vm11, %v1280_v52, %v1276_v11 }
 0x411   :  { %v1267_v41 = vadd.f32 1.0, %v2374_v38  ;;  %v1318_v38 = vmul.f32 %v1316_v56, %v1296_v28 }
 0x412   :  { %v1247_v4 = vpop.permute.xlu1 %1246 }
 0x413   :  { %2375 = vrcp.f32 %v1267_v41  ;;  %v1222_v51 = vpop.permute.xlu0 %1221  ;;  %v1309_v17 = vand.u32 2147483648, %v1267_v41  ;;  %vm1303_vm13 = vweird.f32 %v1267_v41  ;;  %v1307_v57 = vand.u32 2147483647, %v1267_v41 }
 0x414   :  { %v1230_v20 = vadd.f32 %v1222_v51, %v1205_v40 }
 0x415   :  { %v1310_v58 = vor.u32 1.1754944e-38, %v1309_v17  ;;  %vm1308_vm15 = vcmp.eq.f32.partialorder %v1307_v57, 8.507059e+37 }
 0x416   :  { %v1255_v14 = vadd.f32 %v1247_v4, %v1230_v20 }
 0x418   :  { %2377 = vtanh.f32 %v1255_v14 }
 0x419   :  { %v2376_v2 = vpop.eup %2375 }
 0x41a   :  { %v1299_v45 = vmul.f32 %v2376_v2, %v1267_v41  ;;  %vm1304_vm12 = vweird.f32 %v2376_v2 }
 0x41b   :  { %vm1305_vm14 = vmor %vm1303_vm13, %vm1304_vm12 }
 0x41c   :  { %v1300_v30 = vsub.f32 1.0, %v1299_v45 }
 0x41e   :  { %v2378_v39 = vpop.eup %2377  ;;  %v1301_v60 = vmul.f32 %v2376_v2, %v1300_v30 }
 0x41f   :  { %v1319_v46 = vmul.f32 %v2378_v39, %v1281_v42 }
 0x420   :  { %v1302_v40 = vadd.f32 %v2376_v2, %v1301_v60 }
 0x421   :  { %v2911_v55 = vadd.f32 %v1319_v46, %v1318_v38 }
 0x422   :  { %v1306_v47 = vsel %vm1305_vm14, %v2376_v2, %v1302_v40  ;;  %vm1592_vm14 = vcmask 97360  }
 0x423   :  { %2379 = vtanh.f32 %v2911_v55  ;;  %v1311_v20 = vsel %vm1308_vm15, %v1310_v58, %v1306_v47 }
 0x429   :  { %v2380_v51 = vpop.eup %2379 }
 0x42a   :  { %v1322_v24 = vmul.f32 %v2380_v51, %v1311_v20 }
 0x42c   :  { %v1350_v4 = vperm.slane %v1322_v24, 1  ;;  %v1325_v12 = vperm.slane %v1322_v24, 0  ;;  %1324 = vst.msk [vmem:[#allocation2] sm:$0xff] %vm1323_vm1, %v1322_v24  ;;  %v1375_v41 = vperm.slane %v1322_v24, 2  ;;  %v1425_v63 = vperm.slane %v1322_v24, 4 }
 0x42d   :  { %v1400_v29 = vperm.slane %v1322_v24, 3  ;;  %v1450_v30 = vperm.slane %v1322_v24, 5  ;;  %v1475_v60 = vperm.slane %v1322_v24, 6  ;;  %v1500_v40 = vperm.slane %v1322_v24, 7 }
 0x42e   :  { %v1351_v14 = vmul.f32 %v1350_v4, %v2538_v27  ;;  %v1327_v7 = vmul.f32 %v1325_v12, %v2530_v19  ;;  %v1326_v21 = vmul.f32 %v1325_v12, %v2528_v18  ;;  %v1377_v31 = vmul.f32 %v1375_v41, %v2546_v37 }
 0x42f   :  { %v1376_v2 = vmul.f32 %v1375_v41, %v2536_v26  ;;  %v1352_v15 = vmul.f32 %v1350_v4, %v2558_v62  ;;  %v1426_v45 = vmul.f32 %v1425_v63, %v2594_v16  ;;  %v1402_v11 = vmul.f32 %v1400_v29, %v2555_v54 }
 0x430   :  { %1359 = vrot.lane.b32.xlu2 %v1351_v14, %s2438_s0  ;;  %1336 = vrot.lane.b32.xlu1 %v1327_v7, %s2438_s0  ;;  %v1401_v28 = vmul.f32 %v1400_v29, %v2544_v36  ;;  %v1452_v52 = vmul.f32 %v1450_v30, %v2560_v0  ;;  %v1451_v39 = vmul.f32 %v1450_v30, %v2562_v1 }
 0x431   :  { %1334 = vrot.lane.b32.xlu0 %v1326_v21, %s2438_s0  ;;  %v1427_v56 = vmul.f32 %v1425_v63, %v2553_v53  ;;  %v1477_v42 = vmul.f32 %v1475_v60, %v2581_v9  ;;  %v1476_v38 = vmul.f32 %v1475_v60, %v2540_v32  ;;  %v1328_v46 = vmul.f32 %v1325_v12, %v2583_v10 }
 0x432   :  { %v1502_v17 = vmul.f32 %v1500_v40, %v2614_v35  ;;  %v1501_v57 = vmul.f32 %v1500_v40, %v2598_v22  ;;  %v1353_v47 = vmul.f32 %v1350_v4, %v2601_v25  ;;  %v1428_v58 = vmul.f32 %v1425_v63, %v2625_v44 }
 0x433   :  { %v1403_v51 = vmul.f32 %v1400_v29, %v2611_v33  ;;  %v1378_v20 = vmul.f32 %v1375_v41, %v2549_v48  ;;  %v1354_v24 = vmul.f32 %v1350_v4, %v2579_v8  ;;  %v1453_v14 = vmul.f32 %v1450_v30, %v2636_v50 }
 0x434   :  { %v1329_v7 = vmul.f32 %v1325_v12, %v2623_v43  ;;  %v1503_v21 = vmul.f32 %v1500_v40, %v2648_v59  ;;  %v1454_v4 = vmul.f32 %v1450_v30, %v2663_v3  ;;  %v1429_v12 = vmul.f32 %v1425_v63, %v2668_v6 }
 0x438   :  { %1386 = vrot.lane.b32.xlu2 %v1377_v31, %s2438_s0  ;;  %1384 = vrot.lane.b32.xlu1 %v1376_v2, %s2438_s0  ;;  %v1379_v31 = vmul.f32 %v1375_v41, %v2652_v61  ;;  %v1478_v2 = vmul.f32 %v1475_v60, %v2634_v49  ;;  %v1504_v41 = vmul.f32 %v1500_v40, %v2676_v13  ;;  %v3174_v40 = vld [vmem:[#allocation5_spill] sm:$0xff] }
 0x439   :  { %1361 = vrot.lane.b32.xlu0 %v1352_v15, %s2438_s0  ;;  %v1404_v15 = vmul.f32 %v1400_v29, %v2666_v5 }
 0x440   :  { %1434 = vrot.lane.b32.xlu2 %v1426_v45, %s2438_s0  ;;  %1411 = vrot.lane.b32.xlu1 %v1402_v11, %s2438_s0  ;;  %v3173_v45 = vld [vmem:[#allocation4_spill] sm:$0xff] }
 0x441   :  { %1409 = vrot.lane.b32.xlu0 %v1401_v28, %s2438_s0  ;;  %v1479_v11 = vmul.f32 %v1475_v60, %v3173_v45 }
 0x448   :  { %1461 = vrot.lane.b32.xlu2 %v1452_v52, %s2438_s0  ;;  %1459 = vrot.lane.b32.xlu1 %v1451_v39, %s2438_s0 }
 0x449   :  { %1436 = vrot.lane.b32.xlu0 %v1427_v56, %s2438_s0 }
 0x450   :  { %1486 = vrot.lane.b32.xlu2 %v1477_v42, %s2438_s0  ;;  %1484 = vrot.lane.b32.xlu1 %v1476_v38, %s2438_s0 }
 0x451   :  { %1338 = vrot.lane.b32.xlu0 %v1328_v46, %s2438_s0 }
 0x458   :  { %1511 = vrot.lane.b32.xlu2 %v1502_v17, %s2438_s0  ;;  %1509 = vrot.lane.b32.xlu1 %v1501_v57, %s2438_s0 }
 0x459   :  { %1363 = vrot.lane.b32.xlu0 %v1353_v47, %s2438_s0  ;;  %v3175_v47 = vld [vmem:[#allocation3_spill] sm:$0xff] }
 0x460   :  { %1438 = vrot.lane.b32.xlu2 %v1428_v58, %s2438_s0  ;;  %1413 = vrot.lane.b32.xlu1 %v1403_v51, %s2438_s0 }
 0x461   :  { %1388 = vrot.lane.b32.xlu0 %v1378_v20, %s2438_s0 }
 0x468   :  { %1365 = vrot.lane.b32.xlu2 %v1354_v24, %s2438_s0  ;;  %1463 = vrot.lane.b32.xlu1 %v1453_v14, %s2438_s0 }
 0x469   :  { %1340 = vrot.lane.b32.xlu0 %v1329_v7, %s2438_s0 }
 0x470   :  { %1513 = vrot.lane.b32.xlu2 %v1503_v21, %s2438_s0  ;;  %1390 = vrot.lane.b32.xlu1 %v1379_v31, %s2438_s0 }
 0x471   :  { %1488 = vrot.lane.b32.xlu0 %v1478_v2, %s2438_s0 }
 0x478   :  { %1465 = vrot.lane.b32.xlu2 %v1454_v4, %s2438_s0  ;;  %1440 = vrot.lane.b32.xlu1 %v1429_v12, %s2438_s0 }
 0x479   :  { %1415 = vrot.lane.b32.xlu0 %v1404_v15, %s2438_s0 }
 0x480   :  { %1584 = vrot.lane.b32.xlu2 %v2911_v55, %s2438_s0  ;;  %1515 = vrot.lane.b32.xlu1 %v1504_v41, %s2438_s0 }
 0x481   :  { %1490 = vrot.lane.b32.xlu0 %v1479_v11, %s2438_s0 }
 0x48a   :  { %v1360_v63 = vpop.permute.xlu2 %1359 }
 0x492   :  { %v1387_v28 = vpop.permute.xlu2 %1386 }
 0x49a   :  { %v1435_v52 = vpop.permute.xlu2 %1434 }
 0x4a2   :  { %v1337_v29 = vpop.permute.xlu1 %1336  ;;  %v1462_v38 = vpop.permute.xlu2 %1461 }
 0x4a3   :  { %v1335_v30 = vpop.permute.xlu0 %1334  ;;  %v1347_v17 = vadd.f32 %v1337_v29, %v3174_v40 }
 0x4a4   :  { %v1346_v55 = vadd.f32 %v1335_v30, %v3175_v47 }
 0x4a6   :  { %v1371_v14 = vadd.f32 %v1360_v63, %v1346_v55 }
 0x4aa   :  { %v1385_v39 = vpop.permute.xlu1 %1384  ;;  %v1487_v20 = vpop.permute.xlu2 %1486 }
 0x4ab   :  { %v1362_v56 = vpop.permute.xlu0 %1361  ;;  %v1396_v21 = vadd.f32 %v1385_v39, %v1371_v14 }
 0x4ac   :  { %v1372_v60 = vadd.f32 %v1362_v56, %v1347_v17 }
 0x4ae   :  { %v1397_v58 = vadd.f32 %v1387_v28, %v1372_v60 }
 0x4b2   :  { %v1412_v42 = vpop.permute.xlu1 %1411  ;;  %v1512_v15 = vpop.permute.xlu2 %1511 }
 0x4b3   :  { %v1410_v46 = vpop.permute.xlu0 %1409  ;;  %v1422_v24 = vadd.f32 %v1412_v42, %v1397_v58 }
 0x4b4   :  { %v1421_v2 = vadd.f32 %v1410_v46, %v1396_v21 }
 0x4b6   :  { %v1446_v41 = vadd.f32 %v1435_v52, %v1421_v2 }
 0x4ba   :  { %v1460_v57 = vpop.permute.xlu1 %1459  ;;  %v1439_v60 = vpop.permute.xlu2 %1438 }
 0x4bb   :  { %v1437_v51 = vpop.permute.xlu0 %1436  ;;  %v1471_v45 = vadd.f32 %v1460_v57, %v1446_v41 }
 0x4bc   :  { %v1447_v7 = vadd.f32 %v1437_v51, %v1422_v24 }
 0x4be   :  { %v1472_v4 = vadd.f32 %v1462_v38, %v1447_v7 }
 0x4c0   :  { %v1497_v11 = vadd.f32 %v1487_v20, %v1472_v4 }
 0x4c2   :  { %v1485_v31 = vpop.permute.xlu1 %1484  ;;  %v1522_v56 = vadd.f32 %v1512_v15, %v1497_v11  ;;  %v1366_v57 = vpop.permute.xlu2 %1365 }
 0x4c3   :  { %v1339_v12 = vpop.permute.xlu0 %1338  ;;  %v1496_v17 = vadd.f32 %v1485_v31, %v1471_v45 }
 0x4c4   :  { %v2242_v28 = vmul.f32 -1.442695, %v1522_v56  ;;  %v1348_v39 = vadd.f32 %v1339_v12, %v2533_v23 }
 0x4c6   :  { %2381 = vpow2.f32 %v2242_v28 }
 0x4ca   :  { %v1510_v29 = vpop.permute.xlu1 %1509 }
 0x4cb   :  { %v1364_v40 = vpop.permute.xlu0 %1363  ;;  %v1521_v30 = vadd.f32 %v1510_v29, %v1496_v17 }
 0x4cc   :  { %v1373_v38 = vadd.f32 %v1364_v40, %v1348_v39  ;;  %v2382_v55 = vpop.eup %2381 }
 0x4cd   :  { %v2241_v47 = vmul.f32 -1.442695, %v1521_v30  ;;  %v1535_v20 = vadd.f32 1.0, %v2382_v55 }
 0x4cf   :  { %2383 = vpow2.f32 %v2241_v47  ;;  %v1514_v47 = vpop.permute.xlu2 %1513  ;;  %vm1557_vm3 = vweird.f32 %v1535_v20 }
 0x4d0   :  { %2385 = vrcp.f32 %v1535_v20 }
 0x4d2   :  { %v1414_v42 = vpop.permute.xlu1 %1413 }
 0x4d3   :  { %v1389_v63 = vpop.permute.xlu0 %1388 }
 0x4d4   :  { %v1398_v46 = vadd.f32 %v1389_v63, %v1373_v38 }
 0x4d5   :  { %v2384_v58 = vpop.eup %2383 }
 0x4d6   :  { %v1423_v45 = vadd.f32 %v1414_v42, %v1398_v46  ;;  %v1534_v24 = vadd.f32 1.0, %v2384_v58  ;;  %v2386_v40 = vpop.eup %2385 }
 0x4d7   :  { %v1553_v29 = vmul.f32 %v2386_v40, %v1535_v20  ;;  %v1466_v46 = vpop.permute.xlu2 %1465  ;;  %vm1558_vm2 = vweird.f32 %v2386_v40 }
 0x4d8   :  { %v1448_v14 = vadd.f32 %v1439_v60, %v1423_v45  ;;  %2387 = vrcp.f32 %v1534_v24  ;;  %vm1559_vm5 = vmor %vm1557_vm3, %vm1558_vm2  ;;  %vm1542_vm6 = vweird.f32 %v1534_v24 }
 0x4d9   :  { %v1554_v42 = vsub.f32 1.0, %v1553_v29 }
 0x4da   :  { %v1464_v52 = vpop.permute.xlu1 %1463 }
 0x4db   :  { %v1341_v51 = vpop.permute.xlu0 %1340  ;;  %v1473_v7 = vadd.f32 %v1464_v52, %v1448_v14  ;;  %v1555_v55 = vmul.f32 %v2386_v40, %v1554_v42 }
 0x4dc   :  { %v1349_v2 = vadd.f32 %v1341_v51, %v2542_v34 }
 0x4dd   :  { %v1556_v14 = vadd.f32 %v2386_v40, %v1555_v55 }
 0x4de   :  { %v2388_v15 = vpop.eup %2387  ;;  %v1374_v41 = vadd.f32 %v1366_v57, %v1349_v2  ;;  %v1561_v2 = vand.u32 2147483647, %v1535_v20 }
 0x4df   :  { %v1538_v17 = vmul.f32 %v2388_v15, %v1534_v24  ;;  %vm1543_vm4 = vweird.f32 %v2388_v15 }
 0x4e0   :  { %vm1544_vm7 = vmor %vm1542_vm6, %vm1543_vm4  ;;  %vm1562_vm8 = vcmp.eq.f32.partialorder %v1561_v2, 8.507059e+37 }
 0x4e1   :  { %v1539_v39 = vsub.f32 1.0, %v1538_v17 }
 0x4e2   :  { %v1391_v21 = vpop.permute.xlu1 %1390 }
 0x4e3   :  { %v1489_v31 = vpop.permute.xlu0 %1488  ;;  %v1399_v56 = vadd.f32 %v1391_v21, %v1374_v41  ;;  %v1540_v51 = vmul.f32 %v2388_v15, %v1539_v39  ;;  %v1563_v21 = vand.u32 2147483648, %v1535_v20  ;;  %v1560_v41 = vsel %vm1559_vm5, %v2386_v40, %v1556_v14  ;;  %v1585_v20 = vpop.permute.xlu2 %1584 }
 0x4e4   :  { %v1498_v4 = vadd.f32 %v1489_v31, %v1473_v7 }
 0x4e5   :  { %v1564_v29 = vor.u32 1.1754944e-38, %v1563_v21 }
 0x4e6   :  { %v1523_v12 = vadd.f32 %v1514_v47, %v1498_v4  ;;  %v1541_v4 = vadd.f32 %v2388_v15, %v1540_v51  ;;  %v1548_v47 = vand.u32 2147483648, %v1534_v24 }
 0x4e8   :  { %v2243_v11 = vmul.f32 -1.442695, %v1523_v12  ;;  %v1545_v17 = vsel %vm1544_vm7, %v2388_v15, %v1541_v4 }
 0x4ea   :  { %2389 = vpow2.f32 %v2243_v11  ;;  %v1441_v30 = vpop.permute.xlu1 %1440  ;;  %v1546_v11 = vand.u32 2147483647, %v1534_v24 }
 0x4eb   :  { %v1416_v28 = vpop.permute.xlu0 %1415 }
 0x4ec   :  { %v1424_v60 = vadd.f32 %v1416_v28, %v1399_v56  ;;  %vm1547_vm9 = vcmp.eq.f32.partialorder %v1546_v11, 8.507059e+37 }
 0x4ee   :  { %v1449_v63 = vadd.f32 %v1441_v30, %v1424_v60  ;;  %v1565_v30 = vsel %vm1562_vm8, %v1564_v29, %v1560_v41  ;;  %v1549_v60 = vor.u32 1.1754944e-38, %v1548_v47 }
 0x4f0   :  { %v2390_v38 = vpop.eup %2389  ;;  %v1474_v58 = vadd.f32 %v1466_v46, %v1449_v63  ;;  %v1550_v39 = vsel %vm1547_vm9, %v1549_v60, %v1545_v17 }
 0x4f1   :  { %v1536_v52 = vadd.f32 1.0, %v2390_v38  ;;  %v1587_v38 = vmul.f32 %v1585_v20, %v1565_v30 }
 0x4f2   :  { %v1516_v7 = vpop.permute.xlu1 %1515 }
 0x4f3   :  { %2391 = vrcp.f32 %v1536_v52  ;;  %v1491_v45 = vpop.permute.xlu0 %1490  ;;  %v1578_v24 = vand.u32 2147483648, %v1536_v52  ;;  %vm1572_vm11 = vweird.f32 %v1536_v52  ;;  %v1576_v40 = vand.u32 2147483647, %v1536_v52 }
 0x4f4   :  { %v1499_v57 = vadd.f32 %v1491_v45, %v1474_v58 }
 0x4f5   :  { %v1579_v51 = vor.u32 1.1754944e-38, %v1578_v24  ;;  %vm1577_vm13 = vcmp.eq.f32.partialorder %v1576_v40, 8.507059e+37 }
 0x4f6   :  { %v1524_v31 = vadd.f32 %v1516_v7, %v1499_v57 }
 0x4f8   :  { %2393 = vtanh.f32 %v1524_v31 }
 0x4f9   :  { %v2392_v12 = vpop.eup %2391 }
 0x4fa   :  { %v1568_v56 = vmul.f32 %v2392_v12, %v1536_v52  ;;  %vm1573_vm10 = vweird.f32 %v2392_v12 }
 0x4fb   :  { %vm1574_vm12 = vmor %vm1572_vm11, %vm1573_vm10 }
 0x4fc   :  { %v1569_v28 = vsub.f32 1.0, %v1568_v56 }
 0x4fe   :  { %v2394_v42 = vpop.eup %2393  ;;  %v1570_v63 = vmul.f32 %v2392_v12, %v1569_v28 }
 0x4ff   :  { %v1588_v46 = vmul.f32 %v2394_v42, %v1550_v39 }
 0x500   :  { %v1571_v58 = vadd.f32 %v2392_v12, %v1570_v63 }
 0x501   :  { %v2984_v55 = vadd.f32 %v1588_v46, %v1587_v38 }
 0x502   :  { %v1575_v15 = vsel %vm1574_vm12, %v2392_v12, %v1571_v58  ;;  %vm1861_vm12 = vcmask 113760  }
 0x503   :  { %2395 = vtanh.f32 %v2984_v55  ;;  %v1580_v57 = vsel %vm1577_vm13, %v1579_v51, %v1575_v15 }
 0x509   :  { %v2396_v45 = vpop.eup %2395 }
 0x50a   :  { %v1591_v14 = vmul.f32 %v2396_v45, %v1580_v57 }
 0x50c   :  { %v1619_v7 = vperm.slane %v1591_v14, 1  ;;  %v1594_v21 = vperm.slane %v1591_v14, 0  ;;  %1593 = vst.msk [vmem:[#allocation2] sm:$0xff] %vm1592_vm14, %v1591_v14  ;;  %v1644_v52 = vperm.slane %v1591_v14, 2  ;;  %v1694_v11 = vperm.slane %v1591_v14, 4 }
 0x50d   :  { %v1669_v29 = vperm.slane %v1591_v14, 3  ;;  %v1719_v28 = vperm.slane %v1591_v14, 5  ;;  %v1744_v63 = vperm.slane %v1591_v14, 6  ;;  %v1769_v58 = vperm.slane %v1591_v14, 7 }
 0x50e   :  { %v1620_v31 = vmul.f32 %v1619_v7, %v2538_v27  ;;  %v1596_v2 = vmul.f32 %v1594_v21, %v2530_v19  ;;  %v1595_v4 = vmul.f32 %v1594_v21, %v2528_v18  ;;  %v1646_v47 = vmul.f32 %v1644_v52, %v2546_v37 }
 0x50f   :  { %v1645_v12 = vmul.f32 %v1644_v52, %v2536_v26  ;;  %v1621_v41 = vmul.f32 %v1619_v7, %v2558_v62  ;;  %v1695_v56 = vmul.f32 %v1694_v11, %v2594_v16  ;;  %v1671_v17 = vmul.f32 %v1669_v29, %v2555_v54 }
 0x510   :  { %1628 = vrot.lane.b32.xlu2 %v1620_v31, %s2438_s0  ;;  %1605 = vrot.lane.b32.xlu1 %v1596_v2, %s2438_s0  ;;  %v1670_v30 = vmul.f32 %v1669_v29, %v2544_v36  ;;  %v1721_v60 = vmul.f32 %v1719_v28, %v2560_v0  ;;  %v1720_v42 = vmul.f32 %v1719_v28, %v2562_v1 }
 0x511   :  { %1603 = vrot.lane.b32.xlu0 %v1595_v4, %s2438_s0  ;;  %v1696_v20 = vmul.f32 %v1694_v11, %v2553_v53  ;;  %v1746_v39 = vmul.f32 %v1744_v63, %v2581_v9  ;;  %v1745_v38 = vmul.f32 %v1744_v63, %v2540_v32  ;;  %v1597_v46 = vmul.f32 %v1594_v21, %v2583_v10 }
 0x512   :  { %v1771_v24 = vmul.f32 %v1769_v58, %v2614_v35  ;;  %v1770_v40 = vmul.f32 %v1769_v58, %v2598_v22  ;;  %v1622_v15 = vmul.f32 %v1619_v7, %v2601_v25  ;;  %v1697_v51 = vmul.f32 %v1694_v11, %v2625_v44 }
 0x513   :  { %v1672_v45 = vmul.f32 %v1669_v29, %v2611_v33  ;;  %v1647_v57 = vmul.f32 %v1644_v52, %v2549_v48  ;;  %v1623_v14 = vmul.f32 %v1619_v7, %v2579_v8  ;;  %v1722_v31 = vmul.f32 %v1719_v28, %v2636_v50 }
 0x514   :  { %v1598_v2 = vmul.f32 %v1594_v21, %v2623_v43  ;;  %v1772_v4 = vmul.f32 %v1769_v58, %v2648_v59  ;;  %v1723_v7 = vmul.f32 %v1719_v28, %v2663_v3  ;;  %v1698_v21 = vmul.f32 %v1694_v11, %v2668_v6 }
 0x518   :  { %1655 = vrot.lane.b32.xlu2 %v1646_v47, %s2438_s0  ;;  %1653 = vrot.lane.b32.xlu1 %v1645_v12, %s2438_s0  ;;  %v1648_v47 = vmul.f32 %v1644_v52, %v2652_v61  ;;  %v1747_v12 = vmul.f32 %v1744_v63, %v2634_v49  ;;  %v1773_v52 = vmul.f32 %v1769_v58, %v2676_v13  ;;  %v3177_v58 = vld [vmem:[#allocation5_spill] sm:$0xff] }
 0x519   :  { %1630 = vrot.lane.b32.xlu0 %v1621_v41, %s2438_s0  ;;  %v1673_v41 = vmul.f32 %v1669_v29, %v2666_v5 }
 0x520   :  { %1703 = vrot.lane.b32.xlu2 %v1695_v56, %s2438_s0  ;;  %1680 = vrot.lane.b32.xlu1 %v1671_v17, %s2438_s0  ;;  %v3176_v56 = vld [vmem:[#allocation4_spill] sm:$0xff] }
 0x521   :  { %1678 = vrot.lane.b32.xlu0 %v1670_v30, %s2438_s0  ;;  %v1748_v17 = vmul.f32 %v1744_v63, %v3176_v56 }
 0x528   :  { %1730 = vrot.lane.b32.xlu2 %v1721_v60, %s2438_s0  ;;  %1728 = vrot.lane.b32.xlu1 %v1720_v42, %s2438_s0 }
 0x529   :  { %1705 = vrot.lane.b32.xlu0 %v1696_v20, %s2438_s0 }
 0x530   :  { %1755 = vrot.lane.b32.xlu2 %v1746_v39, %s2438_s0  ;;  %1753 = vrot.lane.b32.xlu1 %v1745_v38, %s2438_s0 }
 0x531   :  { %1607 = vrot.lane.b32.xlu0 %v1597_v46, %s2438_s0 }
 0x538   :  { %1780 = vrot.lane.b32.xlu2 %v1771_v24, %s2438_s0  ;;  %1778 = vrot.lane.b32.xlu1 %v1770_v40, %s2438_s0 }
 0x539   :  { %1632 = vrot.lane.b32.xlu0 %v1622_v15, %s2438_s0  ;;  %v3178_v15 = vld [vmem:[#allocation3_spill] sm:$0xff] }
 0x540   :  { %1707 = vrot.lane.b32.xlu2 %v1697_v51, %s2438_s0  ;;  %1682 = vrot.lane.b32.xlu1 %v1672_v45, %s2438_s0 }
 0x541   :  { %1657 = vrot.lane.b32.xlu0 %v1647_v57, %s2438_s0 }
 0x548   :  { %1634 = vrot.lane.b32.xlu2 %v1623_v14, %s2438_s0  ;;  %1732 = vrot.lane.b32.xlu1 %v1722_v31, %s2438_s0 }
 0x549   :  { %1609 = vrot.lane.b32.xlu0 %v1598_v2, %s2438_s0 }
 0x550   :  { %1782 = vrot.lane.b32.xlu2 %v1772_v4, %s2438_s0  ;;  %1659 = vrot.lane.b32.xlu1 %v1648_v47, %s2438_s0 }
 0x551   :  { %1757 = vrot.lane.b32.xlu0 %v1747_v12, %s2438_s0 }
 0x558   :  { %1734 = vrot.lane.b32.xlu2 %v1723_v7, %s2438_s0  ;;  %1709 = vrot.lane.b32.xlu1 %v1698_v21, %s2438_s0 }
 0x559   :  { %1684 = vrot.lane.b32.xlu0 %v1673_v41, %s2438_s0 }
 0x560   :  { %1853 = vrot.lane.b32.xlu2 %v2984_v55, %s2438_s0  ;;  %1784 = vrot.lane.b32.xlu1 %v1773_v52, %s2438_s0 }
 0x561   :  { %1759 = vrot.lane.b32.xlu0 %v1748_v17, %s2438_s0 }
 0x56a   :  { %v1629_v11 = vpop.permute.xlu2 %1628 }
 0x572   :  { %v1656_v30 = vpop.permute.xlu2 %1655 }
 0x57a   :  { %v1704_v60 = vpop.permute.xlu2 %1703 }
 0x582   :  { %v1606_v29 = vpop.permute.xlu1 %1605  ;;  %v1731_v38 = vpop.permute.xlu2 %1730 }
 0x583   :  { %v1604_v28 = vpop.permute.xlu0 %1603  ;;  %v1616_v24 = vadd.f32 %v1606_v29, %v3177_v58 }
 0x584   :  { %v1615_v55 = vadd.f32 %v1604_v28, %v3178_v15 }
 0x586   :  { %v1640_v31 = vadd.f32 %v1629_v11, %v1615_v55 }
 0x58a   :  { %v1654_v42 = vpop.permute.xlu1 %1653  ;;  %v1756_v57 = vpop.permute.xlu2 %1755 }
 0x58b   :  { %v1631_v20 = vpop.permute.xlu0 %1630  ;;  %v1665_v4 = vadd.f32 %v1654_v42, %v1640_v31 }
 0x58c   :  { %v1641_v63 = vadd.f32 %v1631_v20, %v1616_v24 }
 0x58e   :  { %v1666_v51 = vadd.f32 %v1656_v30, %v1641_v63 }
 0x592   :  { %v1681_v39 = vpop.permute.xlu1 %1680  ;;  %v1781_v41 = vpop.permute.xlu2 %1780 }
 0x593   :  { %v1679_v46 = vpop.permute.xlu0 %1678  ;;  %v1691_v14 = vadd.f32 %v1681_v39, %v1666_v51 }
 0x594   :  { %v1690_v12 = vadd.f32 %v1679_v46, %v1665_v4 }
 0x596   :  { %v1715_v52 = vadd.f32 %v1704_v60, %v1690_v12 }
 0x59a   :  { %v1729_v40 = vpop.permute.xlu1 %1728  ;;  %v1708_v63 = vpop.permute.xlu2 %1707 }
 0x59b   :  { %v1706_v45 = vpop.permute.xlu0 %1705  ;;  %v1740_v56 = vadd.f32 %v1729_v40, %v1715_v52 }
 0x59c   :  { %v1716_v2 = vadd.f32 %v1706_v45, %v1691_v14 }
 0x59e   :  { %v1741_v7 = vadd.f32 %v1731_v38, %v1716_v2 }
 0x5a0   :  { %v1766_v17 = vadd.f32 %v1756_v57, %v1741_v7 }
 0x5a2   :  { %v1754_v47 = vpop.permute.xlu1 %1753  ;;  %v1791_v20 = vadd.f32 %v1781_v41, %v1766_v17  ;;  %v1635_v40 = vpop.permute.xlu2 %1634 }
 0x5a3   :  { %v1608_v21 = vpop.permute.xlu0 %1607  ;;  %v1765_v24 = vadd.f32 %v1754_v47, %v1740_v56 }
 0x5a4   :  { %v2245_v30 = vmul.f32 -1.442695, %v1791_v20  ;;  %v1617_v42 = vadd.f32 %v1608_v21, %v2533_v23 }
 0x5a6   :  { %2397 = vpow2.f32 %v2245_v30 }
 0x5aa   :  { %v1779_v29 = vpop.permute.xlu1 %1778 }
 0x5ab   :  { %v1633_v58 = vpop.permute.xlu0 %1632  ;;  %v1790_v28 = vadd.f32 %v1779_v29, %v1765_v24 }
 0x5ac   :  { %v1642_v38 = vadd.f32 %v1633_v58, %v1617_v42  ;;  %v2398_v55 = vpop.eup %2397 }
 0x5ad   :  { %v2244_v15 = vmul.f32 -1.442695, %v1790_v28  ;;  %v1804_v57 = vadd.f32 1.0, %v2398_v55 }
 0x5af   :  { %2399 = vpow2.f32 %v2244_v15  ;;  %v1783_v15 = vpop.permute.xlu2 %1782  ;;  %vm1826_vm1 = vweird.f32 %v1804_v57 }
 0x5b0   :  { %2401 = vrcp.f32 %v1804_v57 }
 0x5b2   :  { %v1683_v39 = vpop.permute.xlu1 %1682 }
 0x5b3   :  { %v1658_v11 = vpop.permute.xlu0 %1657 }
 0x5b4   :  { %v1667_v46 = vadd.f32 %v1658_v11, %v1642_v38 }
 0x5b5   :  { %v2400_v51 = vpop.eup %2399 }
 0x5b6   :  { %v1692_v56 = vadd.f32 %v1683_v39, %v1667_v46  ;;  %v1803_v14 = vadd.f32 1.0, %v2400_v51  ;;  %v2402_v58 = vpop.eup %2401 }
 0x5b7   :  { %v1822_v29 = vmul.f32 %v2402_v58, %v1804_v57  ;;  %v1735_v46 = vpop.permute.xlu2 %1734  ;;  %vm1827_vm15 = vweird.f32 %v2402_v58 }
 0x5b8   :  { %v1717_v31 = vadd.f32 %v1708_v63, %v1692_v56  ;;  %2403 = vrcp.f32 %v1803_v14  ;;  %vm1828_vm3 = vmor %vm1826_vm1, %vm1827_vm15  ;;  %vm1811_vm4 = vweird.f32 %v1803_v14 }
 0x5b9   :  { %v1823_v39 = vsub.f32 1.0, %v1822_v29 }
 0x5ba   :  { %v1733_v60 = vpop.permute.xlu1 %1732 }
 0x5bb   :  { %v1610_v45 = vpop.permute.xlu0 %1609  ;;  %v1742_v2 = vadd.f32 %v1733_v60, %v1717_v31  ;;  %v1824_v55 = vmul.f32 %v2402_v58, %v1823_v39 }
 0x5bc   :  { %v1618_v12 = vadd.f32 %v1610_v45, %v2542_v34 }
 0x5bd   :  { %v1825_v31 = vadd.f32 %v2402_v58, %v1824_v55 }
 0x5be   :  { %v2404_v41 = vpop.eup %2403  ;;  %v1643_v52 = vadd.f32 %v1635_v40, %v1618_v12  ;;  %v1830_v12 = vand.u32 2147483647, %v1804_v57 }
 0x5bf   :  { %v1807_v24 = vmul.f32 %v2404_v41, %v1803_v14  ;;  %vm1812_vm2 = vweird.f32 %v2404_v41 }
 0x5c0   :  { %vm1813_vm5 = vmor %vm1811_vm4, %vm1812_vm2  ;;  %vm1831_vm6 = vcmp.eq.f32.partialorder %v1830_v12, 8.507059e+37 }
 0x5c1   :  { %v1808_v42 = vsub.f32 1.0, %v1807_v24 }
 0x5c2   :  { %v1660_v4 = vpop.permute.xlu1 %1659 }
 0x5c3   :  { %v1758_v47 = vpop.permute.xlu0 %1757  ;;  %v1668_v20 = vadd.f32 %v1660_v4, %v1643_v52  ;;  %v1809_v45 = vmul.f32 %v2404_v41, %v1808_v42  ;;  %v1832_v4 = vand.u32 2147483648, %v1804_v57  ;;  %v1829_v52 = vsel %vm1828_vm3, %v2402_v58, %v1825_v31  ;;  %v1854_v57 = vpop.permute.xlu2 %1853 }
 0x5c4   :  { %v1767_v7 = vadd.f32 %v1758_v47, %v1742_v2 }
 0x5c5   :  { %v1833_v29 = vor.u32 1.1754944e-38, %v1832_v4 }
 0x5c6   :  { %v1792_v21 = vadd.f32 %v1783_v15, %v1767_v7  ;;  %v1810_v7 = vadd.f32 %v2404_v41, %v1809_v45  ;;  %v1817_v15 = vand.u32 2147483648, %v1803_v14 }
 0x5c8   :  { %v2246_v17 = vmul.f32 -1.442695, %v1792_v21  ;;  %v1814_v24 = vsel %vm1813_vm5, %v2404_v41, %v1810_v7 }
 0x5ca   :  { %2405 = vpow2.f32 %v2246_v17  ;;  %v1710_v28 = vpop.permute.xlu1 %1709  ;;  %v1815_v17 = vand.u32 2147483647, %v1803_v14 }
 0x5cb   :  { %v1685_v30 = vpop.permute.xlu0 %1684 }
 0x5cc   :  { %v1693_v63 = vadd.f32 %v1685_v30, %v1668_v20  ;;  %vm1816_vm7 = vcmp.eq.f32.partialorder %v1815_v17, 8.507059e+37 }
 0x5ce   :  { %v1718_v11 = vadd.f32 %v1710_v28, %v1693_v63  ;;  %v1834_v28 = vsel %vm1831_vm6, %v1833_v29, %v1829_v52  ;;  %v1818_v63 = vor.u32 1.1754944e-38, %v1817_v15 }
 0x5d0   :  { %v2406_v38 = vpop.eup %2405  ;;  %v1743_v51 = vadd.f32 %v1735_v46, %v1718_v11  ;;  %v1819_v42 = vsel %vm1816_vm7, %v1818_v63, %v1814_v24 }
 0x5d1   :  { %v1805_v60 = vadd.f32 1.0, %v2406_v38  ;;  %v1856_v38 = vmul.f32 %v1854_v57, %v1834_v28 }
 0x5d2   :  { %v1785_v2 = vpop.permute.xlu1 %1784 }
 0x5d3   :  { %2407 = vrcp.f32 %v1805_v60  ;;  %v1760_v56 = vpop.permute.xlu0 %1759  ;;  %v1847_v14 = vand.u32 2147483648, %v1805_v60  ;;  %vm1841_vm9 = vweird.f32 %v1805_v60  ;;  %v1845_v58 = vand.u32 2147483647, %v1805_v60 }
 0x5d4   :  { %v1768_v40 = vadd.f32 %v1760_v56, %v1743_v51 }
 0x5d5   :  { %v1848_v45 = vor.u32 1.1754944e-38, %v1847_v14  ;;  %vm1846_vm11 = vcmp.eq.f32.partialorder %v1845_v58, 8.507059e+37  ;;  %v3181_v58 = vld [vmem:[#allocation3_spill] sm:$0xff] }
 0x5d6   :  { %v1793_v47 = vadd.f32 %v1785_v2, %v1768_v40 }
 0x5d8   :  { %2409 = vtanh.f32 %v1793_v47 }
 0x5d9   :  { %v2408_v21 = vpop.eup %2407 }
 0x5da   :  { %v1837_v20 = vmul.f32 %v2408_v21, %v1805_v60  ;;  %vm1842_vm8 = vweird.f32 %v2408_v21 }
 0x5db   :  { %vm1843_vm10 = vmor %vm1841_vm9, %vm1842_vm8 }
 0x5dc   :  { %v1838_v30 = vsub.f32 1.0, %v1837_v20 }
 0x5de   :  { %v2410_v39 = vpop.eup %2409  ;;  %v1839_v11 = vmul.f32 %v2408_v21, %v1838_v30 }
 0x5df   :  { %v1857_v46 = vmul.f32 %v2410_v39, %v1819_v42 }
 0x5e0   :  { %v1840_v51 = vadd.f32 %v2408_v21, %v1839_v11 }
 0x5e1   :  { %v3057_v55 = vadd.f32 %v1857_v46, %v1856_v38 }
 0x5e2   :  { %v1844_v41 = vsel %vm1843_vm10, %v2408_v21, %v1840_v51  ;;  %vm2130_vm10 = vcmask 130160  }
 0x5e3   :  { %2411 = vtanh.f32 %v3057_v55  ;;  %v1849_v40 = vsel %vm1846_vm11, %v1848_v45, %v1844_v41  ;;  %vm2200_vm11 = vcmask 130048  }
 0x5e9   :  { %v2412_v56 = vpop.eup %2411 }
 0x5ea   :  { %v1860_v31 = vmul.f32 %v2412_v56, %v1849_v40 }
 0x5ec   :  { %v1888_v2 = vperm.slane %v1860_v31, 1  ;;  %v1863_v4 = vperm.slane %v1860_v31, 0  ;;  %1862 = vst.msk [vmem:[#allocation2] sm:$0xff] %vm1861_vm12, %v1860_v31  ;;  %v1913_v60 = vperm.slane %v1860_v31, 2 }
 0x5ee   :  { %v1889_v47 = vmul.f32 %v1888_v2, %v2538_v27  ;;  %v1865_v12 = vmul.f32 %v1863_v4, %v2530_v19  ;;  %v1864_v7 = vmul.f32 %v1863_v4, %v2528_v18  ;;  %v1915_v15 = vmul.f32 %v1913_v60, %v2546_v37 }
 0x5ef   :  { %v1914_v21 = vmul.f32 %v1913_v60, %v2536_v26  ;;  %v1890_v52 = vmul.f32 %v1888_v2, %v2558_v62  ;;  %v1963_v18 = vperm.slane %v1860_v31, 4  ;;  %v1938_v19 = vperm.slane %v1860_v31, 3 }
 0x5f0   :  { %1897 = vrot.lane.b32.xlu2 %v1889_v47, %s2438_s0  ;;  %1874 = vrot.lane.b32.xlu1 %v1865_v12, %s2438_s0  ;;  %v1988_v26 = vperm.slane %v1860_v31, 5  ;;  %v1866_v24 = vmul.f32 %v1863_v4, %v2583_v10  ;;  %v1891_v28 = vmul.f32 %v1888_v2, %v2601_v25  ;;  %v1916_v10 = vmul.f32 %v1913_v60, %v2549_v48 }
 0x5f1   :  { %1872 = vrot.lane.b32.xlu0 %v1864_v7, %s2438_s0  ;;  %v1964_v27 = vmul.f32 %v1963_v18, %v2594_v16  ;;  %v1940_v17 = vmul.f32 %v1938_v19, %v2555_v54  ;;  %v1939_v29 = vmul.f32 %v1938_v19, %v2544_v36  ;;  %v1965_v20 = vmul.f32 %v1963_v18, %v2553_v53 }
 0x5f2   :  { %v1990_v37 = vmul.f32 %v1988_v26, %v2560_v0  ;;  %v1989_v62 = vmul.f32 %v1988_v26, %v2562_v1  ;;  %v2013_v36 = vperm.slane %v1860_v31, 6  ;;  %v2038_v53 = vperm.slane %v1860_v31, 7 }
 0x5f3   :  { %v1991_v25 = vmul.f32 %v1988_v26, %v2636_v50  ;;  %v1942_v50 = vmul.f32 %v1938_v19, %v2666_v5 }
 0x5f4   :  { %v2015_v54 = vmul.f32 %v2013_v36, %v2581_v9  ;;  %v2014_v16 = vmul.f32 %v2013_v36, %v2540_v32  ;;  %v2040_v0 = vmul.f32 %v2038_v53, %v2614_v35  ;;  %v2039_v1 = vmul.f32 %v2038_v53, %v2598_v22 }
 0x5f5   :  { %v1966_v32 = vmul.f32 %v1963_v18, %v2625_v44  ;;  %v1941_v9 = vmul.f32 %v1938_v19, %v2611_v33  ;;  %v1892_v22 = vmul.f32 %v1888_v2, %v2579_v8  ;;  %v1867_v35 = vmul.f32 %v1863_v4, %v2623_v43 }
 0x5f6   :  { %v2041_v48 = vmul.f32 %v2038_v53, %v2648_v59  ;;  %v1917_v33 = vmul.f32 %v1913_v60, %v2652_v61  ;;  %v2016_v44 = vmul.f32 %v2013_v36, %v2634_v49  ;;  %v1992_v8 = vmul.f32 %v1988_v26, %v2663_v3  ;;  %v3179_v59 = vld [vmem:[#allocation4_spill] sm:$0xff] }
 0x5f7   :  { %v1967_v43 = vmul.f32 %v1963_v18, %v2668_v6  ;;  %v2042_v49 = vmul.f32 %v2038_v53, %v2676_v13  ;;  %v2017_v61 = vmul.f32 %v2013_v36, %v3179_v59  ;;  %v3180_v13 = vld [vmem:[#allocation5_spill] sm:$0xff] }
 0x5f8   :  { %1924 = vrot.lane.b32.xlu2 %v1915_v15, %s2438_s0  ;;  %1922 = vrot.lane.b32.xlu1 %v1914_v21, %s2438_s0 }
 0x5f9   :  { %1899 = vrot.lane.b32.xlu0 %v1890_v52, %s2438_s0 }
 0x600   :  { %1972 = vrot.lane.b32.xlu2 %v1964_v27, %s2438_s0  ;;  %1949 = vrot.lane.b32.xlu1 %v1940_v17, %s2438_s0 }
 0x601   :  { %1947 = vrot.lane.b32.xlu0 %v1939_v29, %s2438_s0 }
 0x608   :  { %1999 = vrot.lane.b32.xlu2 %v1990_v37, %s2438_s0  ;;  %1997 = vrot.lane.b32.xlu1 %v1989_v62, %s2438_s0 }
 0x609   :  { %1974 = vrot.lane.b32.xlu0 %v1965_v20, %s2438_s0 }
 0x610   :  { %2024 = vrot.lane.b32.xlu2 %v2015_v54, %s2438_s0  ;;  %2022 = vrot.lane.b32.xlu1 %v2014_v16, %s2438_s0 }
 0x611   :  { %1876 = vrot.lane.b32.xlu0 %v1866_v24, %s2438_s0 }
 0x618   :  { %2049 = vrot.lane.b32.xlu2 %v2040_v0, %s2438_s0  ;;  %2047 = vrot.lane.b32.xlu1 %v2039_v1, %s2438_s0 }
 0x619   :  { %1901 = vrot.lane.b32.xlu0 %v1891_v28, %s2438_s0 }
 0x620   :  { %1976 = vrot.lane.b32.xlu2 %v1966_v32, %s2438_s0  ;;  %1951 = vrot.lane.b32.xlu1 %v1941_v9, %s2438_s0 }
 0x621   :  { %1926 = vrot.lane.b32.xlu0 %v1916_v10, %s2438_s0 }
 0x628   :  { %1903 = vrot.lane.b32.xlu2 %v1892_v22, %s2438_s0  ;;  %2001 = vrot.lane.b32.xlu1 %v1991_v25, %s2438_s0 }
 0x629   :  { %1878 = vrot.lane.b32.xlu0 %v1867_v35, %s2438_s0 }
 0x630   :  { %2051 = vrot.lane.b32.xlu2 %v2041_v48, %s2438_s0  ;;  %1928 = vrot.lane.b32.xlu1 %v1917_v33, %s2438_s0 }
 0x631   :  { %2026 = vrot.lane.b32.xlu0 %v2016_v44, %s2438_s0 }
 0x638   :  { %2003 = vrot.lane.b32.xlu2 %v1992_v8, %s2438_s0  ;;  %1978 = vrot.lane.b32.xlu1 %v1967_v43, %s2438_s0 }
 0x639   :  { %1953 = vrot.lane.b32.xlu0 %v1942_v50, %s2438_s0 }
 0x640   :  { %2122 = vrot.lane.b32.xlu2 %v3057_v55, %s2438_s0  ;;  %2053 = vrot.lane.b32.xlu1 %v2042_v49, %s2438_s0 }
 0x641   :  { %2028 = vrot.lane.b32.xlu0 %v2017_v61, %s2438_s0 }
 0x64a   :  { %v1898_v3 = vpop.permute.xlu2 %1897 }
 0x652   :  { %v1925_v6 = vpop.permute.xlu2 %1924 }
 0x65a   :  { %v1973_v63 = vpop.permute.xlu2 %1972 }
 0x662   :  { %v1875_v5 = vpop.permute.xlu1 %1874  ;;  %v2000_v42 = vpop.permute.xlu2 %1999 }
 0x663   :  { %v1873_v30 = vpop.permute.xlu0 %1872  ;;  %v1885_v46 = vadd.f32 %v1875_v5, %v3180_v13 }
 0x664   :  { %v1884_v55 = vadd.f32 %v1873_v30, %v3181_v58 }
 0x666   :  { %v1909_v31 = vadd.f32 %v1898_v3, %v1884_v55 }
 0x66a   :  { %v1923_v39 = vpop.permute.xlu1 %1922  ;;  %v2025_v56 = vpop.permute.xlu2 %2024 }
 0x66b   :  { %v1900_v57 = vpop.permute.xlu0 %1899  ;;  %v1934_v4 = vadd.f32 %v1923_v39, %v1909_v31 }
 0x66c   :  { %v1910_v51 = vadd.f32 %v1900_v57, %v1885_v46 }
 0x66e   :  { %v1935_v41 = vadd.f32 %v1925_v6, %v1910_v51 }
 0x672   :  { %v1950_v11 = vpop.permute.xlu1 %1949  ;;  %v2050_v15 = vpop.permute.xlu2 %2049 }
 0x673   :  { %v1948_v38 = vpop.permute.xlu0 %1947  ;;  %v1960_v40 = vadd.f32 %v1950_v11, %v1935_v41 }
 0x674   :  { %v1959_v12 = vadd.f32 %v1948_v38, %v1934_v4 }
 0x676   :  { %v1984_v21 = vadd.f32 %v1973_v63, %v1959_v12 }
 0x67a   :  { %v1998_v14 = vpop.permute.xlu1 %1997  ;;  %v1977_v62 = vpop.permute.xlu2 %1976 }
 0x67b   :  { %v1975_v45 = vpop.permute.xlu0 %1974  ;;  %v2009_v18 = vadd.f32 %v1998_v14, %v1984_v21 }
 0x67c   :  { %v1985_v2 = vadd.f32 %v1975_v45, %v1960_v40 }
 0x67e   :  { %v2010_v7 = vadd.f32 %v2000_v42, %v1985_v2 }
 0x680   :  { %v2035_v52 = vadd.f32 %v2025_v56, %v2010_v7  ;;  %v2132_v7 = vld [vmem:[%s3153_s2] sm:$0xff] }
 0x681   :  { %2138 = vperm.xlu0 %2300, %v2132_v7   ;;  %2169 = vrot.lane.b32.xlu1 %v2132_v7, %s2439_s23 }
 0x682   :  { %v2023_v47 = vpop.permute.xlu1 %2022  ;;  %v2060_v27 = vadd.f32 %v2050_v15, %v2035_v52  ;;  %v1904_v32 = vpop.permute.xlu2 %1903 }
 0x683   :  { %v1877_v60 = vpop.permute.xlu0 %1876  ;;  %v2034_v17 = vadd.f32 %v2023_v47, %v2009_v18 }
 0x684   :  { %v2248_v37 = vmul.f32 -1.442695, %v2060_v27  ;;  %v1886_v16 = vadd.f32 %v1877_v60, %v2533_v23 }
 0x686   :  { %2413 = vpow2.f32 %v2248_v37 }
 0x68a   :  { %v2048_v19 = vpop.permute.xlu1 %2047  ;;  %v2052_v43 = vpop.permute.xlu2 %2051 }
 0x68b   :  { %v1902_v29 = vpop.permute.xlu0 %1901  ;;  %v2059_v26 = vadd.f32 %v2048_v19, %v2034_v17 }
 0x68c   :  { %v1911_v24 = vadd.f32 %v1902_v29, %v1886_v16  ;;  %v2414_v0 = vpop.eup %2413 }
 0x68d   :  { %v2247_v20 = vmul.f32 -1.442695, %v2059_v26  ;;  %v2073_v10 = vadd.f32 1.0, %v2414_v0 }
 0x68f   :  { %2415 = vpow2.f32 %v2247_v20  ;;  %v2101_v40 = vand.u32 2147483648, %v2073_v10  ;;  %vm2095_vm14 = vweird.f32 %v2073_v10  ;;  %v2099_v2 = vand.u32 2147483647, %v2073_v10 }
 0x690   :  { %2417 = vrcp.f32 %v2073_v10 }
 0x691   :  { %v2102_v52 = vor.u32 1.1754944e-38, %v2101_v40  ;;  %vm2100_vm4 = vcmp.eq.f32.partialorder %v2099_v2, 8.507059e+37 }
 0x692   :  { %v1952_v36 = vpop.permute.xlu1 %1951 }
 0x693   :  { %v1927_v54 = vpop.permute.xlu0 %1926 }
 0x694   :  { %v1936_v53 = vadd.f32 %v1927_v54, %v1911_v24 }
 0x695   :  { %v2416_v28 = vpop.eup %2415 }
 0x696   :  { %v1961_v22 = vadd.f32 %v1952_v36, %v1936_v53  ;;  %v3129_v25 = vadd.f32 1.0, %v2416_v28  ;;  %v2418_v50 = vpop.eup %2417 }
 0x697   :  { %v2091_v6 = vmul.f32 %v2418_v50, %v2073_v10  ;;  %vm2096_vm13 = vweird.f32 %v2418_v50 }
 0x698   :  { %v1986_v35 = vadd.f32 %v1977_v62, %v1961_v22  ;;  %2419 = vrcp.f32 %v3129_v25  ;;  %v2086_v47 = vand.u32 2147483648, %v3129_v25  ;;  %vm3135_vm1 = vmor %vm2095_vm14, %vm2096_vm13  ;;  %vm2080_vm2 = vweird.f32 %v3129_v25 }
 0x699   :  { %v2092_v11 = vsub.f32 1.0, %v2091_v6  ;;  %v2084_v21 = vand.u32 2147483647, %v3129_v25 }
 0x69a   :  { %v2002_v1 = vpop.permute.xlu1 %2001  ;;  %v2087_v29 = vor.u32 1.1754944e-38, %v2086_v47 }
 0x69b   :  { %v1879_v9 = vpop.permute.xlu0 %1878  ;;  %v2011_v48 = vadd.f32 %v2002_v1, %v1986_v35  ;;  %v2093_v46 = vmul.f32 %v2418_v50, %v2092_v11  ;;  %vm2085_vm5 = vcmp.eq.f32.partialorder %v2084_v21, 8.507059e+37 }
 0x69c   :  { %v1887_v23 = vadd.f32 %v1879_v9, %v2542_v34  ;;  %v2004_v34 = vpop.permute.xlu2 %2003 }
 0x69d   :  { %v2094_v45 = vadd.f32 %v2418_v50, %v2093_v46 }
 0x69e   :  { %v2420_v59 = vpop.eup %2419  ;;  %v1912_v61 = vadd.f32 %v1904_v32, %v1887_v23 }
 0x69f   :  { %v2076_v30 = vmul.f32 %v2420_v59, %v3129_v25  ;;  %vm2081_vm15 = vweird.f32 %v2420_v59  ;;  %v2098_v15 = vsel %vm3135_vm1, %v2418_v50, %v2094_v45 }
 0x6a0   :  { %vm2082_vm3 = vmor %vm2080_vm2, %vm2081_vm15  ;;  %v2103_v27 = vsel %vm2100_vm4, %v2102_v52, %v2098_v15 }
 0x6a1   :  { %v2077_v38 = vsub.f32 1.0, %v2076_v30 }
 0x6a2   :  { %v1929_v33 = vpop.permute.xlu1 %1928 }
 0x6a3   :  { %v2027_v44 = vpop.permute.xlu0 %2026  ;;  %v1937_v5 = vadd.f32 %v1929_v33, %v1912_v61  ;;  %v2078_v58 = vmul.f32 %v2420_v59, %v2077_v38  ;;  %v2441_v33 = vmov 17  }
 0x6a4   :  { %v2036_v8 = vadd.f32 %v2027_v44, %v2011_v48  ;;  %v2123_v37 = vpop.permute.xlu2 %2122  ;;  %v2440_v48 = vmov 18   ;;  %2301 = vset.pattern.permute.xlu2 %v2441_v33  ;;  %v2442_v44 = vmov 19  }
 0x6a5   :  { %v2079_v4 = vadd.f32 %v2420_v59, %v2078_v58  ;;  %v2125_v36 = vmul.f32 %v2123_v37, %v2103_v27  ;;  %2302 = vset.pattern.permute.xlu1 %v2440_v48  ;;  %2166 = vperm.xlu2 %2301, %v2132_v7  }
 0x6a6   :  { %v2061_v49 = vadd.f32 %v2052_v43, %v2036_v8  ;;  %2196 = vperm.xlu1 %2302, %v2132_v7   ;;  %2304 = vset.pattern.permute.xlu0 %v2442_v44 }
 0x6a7   :  { %v2083_v19 = vsel %vm2082_vm3, %v2420_v59, %v2079_v4 }
 0x6a8   :  { %v2249_v3 = vmul.f32 -1.442695, %v2061_v49  ;;  %v2088_v20 = vsel %vm2085_vm5, %v2087_v29, %v2083_v19 }
 0x6aa   :  { %2421 = vpow2.f32 %v2249_v3  ;;  %v1979_v63 = vpop.permute.xlu1 %1978 }
 0x6ab   :  { %v1954_v39 = vpop.permute.xlu0 %1953 }
 0x6ac   :  { %v1962_v57 = vadd.f32 %v1954_v39, %v1937_v5 }
 0x6ad   :  { %2303 = vset.pattern.permute.xlu2 %v2442_v44 }
 0x6ae   :  { %v1987_v42 = vadd.f32 %v1979_v63, %v1962_v57  ;;  %2209 = vperm.xlu2 %2303, %v2132_v7  }
 0x6b0   :  { %v2422_v13 = vpop.eup %2421  ;;  %v2012_v14 = vadd.f32 %v2004_v34, %v1987_v42 }
 0x6b1   :  { %v2074_v51 = vadd.f32 1.0, %v2422_v13 }
 0x6b2   :  { %v2054_v56 = vpop.permute.xlu1 %2053 }
 0x6b3   :  { %2423 = vrcp.f32 %v2074_v51  ;;  %v2029_v55 = vpop.permute.xlu0 %2028  ;;  %v2116_v53 = vand.u32 2147483648, %v2074_v51  ;;  %vm2110_vm7 = vweird.f32 %v2074_v51  ;;  %v2114_v0 = vand.u32 2147483647, %v2074_v51 }
 0x6b4   :  { %v2037_v41 = vadd.f32 %v2029_v55, %v2012_v14 }
 0x6b5   :  { %v2117_v28 = vor.u32 1.1754944e-38, %v2116_v53  ;;  %vm2115_vm9 = vcmp.eq.f32.partialorder %v2114_v0, 8.507059e+37 }
 0x6b6   :  { %v2062_v31 = vadd.f32 %v2054_v56, %v2037_v41 }
 0x6b8   :  { %2425 = vtanh.f32 %v2062_v31 }
 0x6b9   :  { %v2424_v60 = vpop.eup %2423 }
 0x6ba   :  { %v2106_v18 = vmul.f32 %v2424_v60, %v2074_v51  ;;  %vm2111_vm6 = vweird.f32 %v2424_v60 }
 0x6bb   :  { %vm2112_vm8 = vmor %vm2110_vm7, %vm2111_vm6 }
 0x6bc   :  { %v2107_v17 = vsub.f32 1.0, %v2106_v18 }
 0x6be   :  { %v2426_v26 = vpop.eup %2425  ;;  %v2108_v62 = vmul.f32 %v2424_v60, %v2107_v17 }
 0x6bf   :  { %v2126_v54 = vmul.f32 %v2426_v26, %v2088_v20 }
 0x6c0   :  { %v2109_v24 = vadd.f32 %v2424_v60, %v2108_v62 }
 0x6c1   :  { %v2127_v16 = vadd.f32 %v2126_v54, %v2125_v36 }
 0x6c2   :  { %v2113_v1 = vsel %vm2112_vm8, %v2424_v60, %v2109_v24 }
 0x6c3   :  { %2427 = vtanh.f32 %v2127_v16  ;;  %v2118_v9 = vsel %vm2115_vm9, %v2117_v28, %v2113_v1 }
 0x6c9   :  { %v2428_v32 = vpop.eup %2427 }
 0x6ca   :  { %v2129_v10 = vmul.f32 %v2428_v32, %v2118_v9 }
 0x6cc   :  { %2131 = vst.msk [vmem:[#allocation2] sm:$0xff] %vm2130_vm10, %v2129_v10 }
 0x6d3   :  { %v2133_v22 = vld [vmem:[#allocation2] sm:$0xff] }
 0x6d4   :  { %v2134_v25 = vmax.f32 %v2133_v22, 0.0 }
 0x6d6   :  { %v2135_v35 = vmin.f32 %v2134_v25, 6.0 }
 0x6d8   :  { %2158 = vmatpush.msra.mxu1 %v2135_v35 }
 0x6d9   :  { %2250 = vmatmul.msk.f32.vlgmr.msra.gmra.mxu1 %vm39_vm0, %v2132_v7 }
 0x6f3   :  { %v2139_v23 = vpop.permute.xlu0 %2138  ;;  %v2170_v49 = vpop.permute.xlu1 %2169 }
 0x6ff   :  { %v2167_v61 = vpop.permute.xlu2 %2166 }
 0x708   :  { %v2210_v46 = vpop.permute.xlu2 %2209 }
 0x718   :  { %v2197_v30 = vpop.permute.xlu1 %2196 }
 0x756   :  { %v2160_v8 = vpop.f32.mrf.mxu1 }
 0x757   :  { %v2161_v43 = vadd.f32 %v2160_v8, %v2139_v23 }
 0x759   :  { %v2163_v50 = vmax.f32 %v2161_v43, 0.0 }
 0x75b   :  { %v2164_v59 = vmin.f32 %v2163_v50, 6.0 }
 0x75d   :  { %2188 = vmatpush.msra.mxu2 %v2164_v59 }
 0x75e   :  { %2251 = vmatmul.msk.f32.vlgmr.msra.gmra.mxu2 %vm39_vm0, %v2170_v49  ;;  %vm2217_vm0 = vcmask 122880  }
 0x7e1   :  { %v2190_v3 = vpop.f32.mrf.mxu2 }
 0x7e2   :  { %v2191_v6 = vadd.f32 %v2190_v3, %v2167_v61 }
 0x7e4   :  { %v2193_v5 = vmax.f32 %v2191_v6, 0.0 }
 0x7e6   :  { %v2194_v63 = vmin.f32 %v2193_v5, 6.0 }
 0x7e8   :  { %v2199_v39 = vmul.f32 %v2197_v30, %v2194_v63 }
 0x7ea   :  { %v2201_v57 = vsel %vm2200_vm11, %v2199_v39, 0.0 }
 0x7eb   :  { %v2202_v11 = vrot.slane %v2201_v57, 4 }
 0x7ed   :  { %v2203_v42 = vadd.f32 %v2202_v11, %v2201_v57 }
 0x7ef   :  { %v2204_v38 = vrot.slane %v2203_v42, 2 }
 0x7f1   :  { %v2205_v13 = vadd.f32 %v2204_v38, %v2203_v42 }
 0x7f3   :  { %v2206_v34 = vrot.slane %v2205_v13, 1 }
 0x7f5   :  { %v2207_v51 = vadd.f32 %v2206_v34, %v2205_v13 }
 0x7f7   :  { %v2212_v14 = vadd.f32 %v2210_v46, %v2207_v51 }
 0x7f9   :  { %v2213_v58 = vmax.f32 %v2212_v14, 0.0 }
 0x7fb   :  { %v2214_v55 = vmin.f32 %v2213_v58, 6.0 }
 0x7fd   :  { %v2215_v41 = vsub.f32 %v2214_v55, %v2214_v55 }
 0x7ff   :  { %v2216_v45 = vadd.f32 1.0, %v2215_v41 }
 0x801   :  { %2218 = vst.msk [vmem:[%s3154_s3] sm:$0x1] %vm2217_vm0, %v2216_v45 }

</bundles_post_ra>
